<compile_context>
chip_gen: v7x
topology: tpu7x:2x2x1
jax: 0.10.0
libtpu: 0.0.40
codegen_flags: <defaults>
</compile_context>

<pallas_src>
import functools

import jax
import jax.numpy as jnp
from jax.experimental import pallas as pl
from jax.experimental.pallas import tpu as pltpu

LANES = 128
TILE_GRAIN = 512                       # pad N so tiles never collapse to 128
VMEM_LIMIT = 32 * 1024 * 1024          # <= scoped/physical on all generations
XW_RESIDENT_BYTES = 8 * 1024 * 1024    # keep XW fully in VMEM below this


def _round_up(x, m):
    return (x + m - 1) // m * m


def _pick_tile(n, candidates):
    for c in candidates:
        if c <= n and n % c == 0:
            return c
    return n


# ------------------- XW = (X @ W) * D^{-1/2}  (feature transform) ------------

def _xw_kernel(x_ref, w_ref, dinv_ref, o_ref):
    xw = jnp.dot(x_ref[...], w_ref[...], preferred_element_type=jnp.float32)
    # Fold the "column" half of the symmetric normalization into XW rows.
    o_ref[...] = (xw * dinv_ref[...]).astype(o_ref.dtype)


def feature_transform(h_pad, w_pad, dinv, *, tm, out_dtype=jnp.bfloat16):
    """[N_pad, C_in] @ [C_in, C_pad], rows scaled by d_inv_sqrt -> bf16."""
    n_pad, c_in = h_pad.shape
    c_pad = w_pad.shape[1]
    return pl.pallas_call(
        _xw_kernel,
        out_shape=jax.ShapeDtypeStruct((n_pad, c_pad), out_dtype),
        grid_spec=pltpu.PrefetchScalarGridSpec(
            num_scalar_prefetch=0,
            grid=(n_pad // tm,),
            in_specs=[
                pl.BlockSpec((tm, c_in), lambda i: (i, 0)),
                pl.BlockSpec((c_in, c_pad), lambda i: (0, 0)),
                pl.BlockSpec((tm, 1), lambda i: (i, 0)),
            ],
            out_specs=pl.BlockSpec((tm, c_pad), lambda i: (i, 0)),
        ),
        compiler_params=pltpu.CompilerParams(
            dimension_semantics=("parallel",),
            vmem_limit_bytes=VMEM_LIMIT),
    )(h_pad, w_pad, dinv)


# ----------------- D^{-1/2} (A_hat @ XW) + b   (aggregation) -----------------

def _aggregate_kernel(a_ref, xw_ref, dinv_ref, b_ref, o_ref, acc_ref,
                      *, apply_relu, xw_resident, tk):
    k = pl.program_id(1)

    @pl.when(k == 0)
    def _():
        acc_ref[...] = jnp.zeros_like(acc_ref)

    # int8 counts -> bf16 on the VPU (free slot); MXU consumes bf16 x bf16.
    a = a_ref[...].astype(jnp.bfloat16)
    if xw_resident:
        start = pl.multiple_of(k * tk, tk)
        xw = xw_ref[pl.ds(start, tk), :]
    else:
        xw = xw_ref[...]
    acc_ref[...] += jnp.dot(a, xw, preferred_element_type=jnp.float32)

    @pl.when(k == pl.num_programs(1) - 1)
    def _():
        out = acc_ref[...] * dinv_ref[...] + b_ref[...]
        if apply_relu:
            out = jnp.maximum(out, 0.0)
        o_ref[...] = out.astype(o_ref.dtype)


def aggregate(a_int8, xw_bf16, dinv, b_pad, *, tm, tk, apply_relu, out_dtype):
    n_pad = a_int8.shape[0]
    c_pad = xw_bf16.shape[1]
    xw_resident = xw_bf16.size * 2 <= XW_RESIDENT_BYTES
    if xw_resident:
        # Full block + constant index_map -> copied to VMEM once, never re-streamed.
        xw_spec = pl.BlockSpec((n_pad, c_pad), lambda i, k: (0, 0))
    else:
        xw_spec = pl.BlockSpec((tk, c_pad), lambda i, k: (k, 0))
    kernel = functools.partial(_aggregate_kernel, apply_relu=apply_relu,
                               xw_resident=xw_resident, tk=tk)
    return pl.pallas_call(
        kernel,
        out_shape=jax.ShapeDtypeStruct((n_pad, c_pad), out_dtype),
        grid_spec=pltpu.PrefetchScalarGridSpec(
            num_scalar_prefetch=0,
            grid=(n_pad // tm, n_pad // tk),
            in_specs=[
                pl.BlockSpec((tm, tk), lambda i, k: (i, k)),
                xw_spec,
                pl.BlockSpec((tm, 1), lambda i, k: (i, 0)),
                pl.BlockSpec((1, c_pad), lambda i, k: (0, 0)),
            ],
            out_specs=pl.BlockSpec((tm, c_pad), lambda i, k: (i, 0)),
            scratch_shapes=[pltpu.VMEM((tm, c_pad), jnp.float32)],
        ),
        compiler_params=pltpu.CompilerParams(
            dimension_semantics=("parallel", "arbitrary"),
            vmem_limit_bytes=VMEM_LIMIT),
    )(a_int8, xw_bf16, dinv, b_pad)


# --------------------------------- GCN layer ---------------------------------

def gcn_layer(a_int8, h_pad, dinv, w, b, *, tm, tk, apply_relu, out_dtype):
    """One GCNConv layer on padded inputs: D^-1/2 A_hat D^-1/2 (H W) + b."""
    c_in_eff = h_pad.shape[1]          # may be lane-padded from previous layer
    c_in, c_out = w.shape
    c_pad = _round_up(c_out, LANES)

    # Zero-pad W / b to lane-dense widths; padded rows/cols contribute zero.
    w_pad = jnp.zeros((c_in_eff, c_pad), jnp.bfloat16)
    w_pad = w_pad.at[:c_in, :c_out].set(w.astype(jnp.bfloat16))
    b_pad = jnp.zeros((1, c_pad), jnp.float32)
    b_pad = b_pad.at[0, :c_out].set(b.astype(jnp.float32))

    xw = feature_transform(h_pad, w_pad, dinv, tm=tm)    # bf16, rows pre-scaled
    return aggregate(a_int8, xw, dinv, b_pad, tm=tm, tk=tk,
                     apply_relu=apply_relu, out_dtype=out_dtype)


# ------------------- raw A_hat (int8) + D^{-1/2} from edges ------------------

def build_a_hat_and_dinvsqrt(edge_index, num_nodes, n_pad):
    # Glue (data-dependent scatter); stays in plain JAX.
    src = edge_index[0]
    dst = edge_index[1]
    non_loop = src != dst

    # A_hat[i, j] = multiplicity of edge j->i (explicit self loops dropped,
    # mirroring add_remaining_self_loops) + [i == j].  Built once, padded,
    # directly in int8 (exact small integer counts).
    a_hat = jnp.zeros((n_pad, n_pad), jnp.int8)
    a_hat = a_hat.at[dst, src].add(non_loop.astype(jnp.int8))
    diag = jnp.arange(num_nodes)
    a_hat = a_hat.at[diag, diag].add(jnp.ones((num_nodes,), jnp.int8))

    # Degrees straight from the edge list (no dense N^2 reduction).
    deg = jnp.zeros((n_pad,), jnp.float32)
    deg = deg.at[dst].add(non_loop.astype(jnp.float32))
    deg = deg.at[:num_nodes].add(1.0)                    # the self loop
    d_inv_sqrt = jnp.where(deg > 0, jax.lax.rsqrt(deg), 0.0)
    return a_hat, d_inv_sqrt.reshape(n_pad, 1)


# ---------------------------------- forward ----------------------------------

def gcn_forward(x, edge_index, params):
    n, c_in = x.shape
    n_pad = _round_up(n, TILE_GRAIN)
    tm = _pick_tile(n_pad, (1024, 512, 256, 128))        # row tile (parallel)
    tk = _pick_tile(n_pad, (2048, 1024, 512, 256, 128))  # reduction tile

    a_hat, dinv = build_a_hat_and_dinvsqrt(edge_index, n, n_pad)

    x_pad = jnp.zeros((n_pad, c_in), jnp.bfloat16)
    x_pad = x_pad.at[:n, :].set(x.astype(jnp.bfloat16))

    h = gcn_layer(a_hat, x_pad, dinv, params["w1"], params["b1"],
                  tm=tm, tk=tk, apply_relu=True, out_dtype=jnp.bfloat16)
    out = gcn_layer(a_hat, h, dinv, params["w2"], params["b2"],
                    tm=tm, tk=tk, apply_relu=False, out_dtype=jnp.float32)

    c_out = params["w2"].shape[1]
    return out[:n, :c_out]

# TODO(synk): for genuinely sparse graphs a blocked-CSR kernel with
# PrefetchScalarGridSpec (scalar-prefetched block offsets) would skip zero
# column blocks; the dense O(N^2) formulation is kept here for parity.


def init_params(key, in_channels, hidden_channels, out_channels):
    k1, k2 = jax.random.split(key)

    def glorot(k, fan_in, fan_out):
        limit = jnp.sqrt(6.0 / (fan_in + fan_out))
        return jax.random.uniform(
            k, (fan_in, fan_out), minval=-limit, maxval=limit, dtype=jnp.float32
        )

    return {
        "w1": glorot(k1, in_channels, hidden_channels),
        "b1": jnp.zeros((hidden_channels,), jnp.float32),
        "w2": glorot(k2, hidden_channels, out_channels),
        "b2": jnp.zeros((out_channels,), jnp.float32),
    }


if __name__ == "__main__":
    key = jax.random.PRNGKey(0)
    k_x, k_e, k_p = jax.random.split(key, 3)

    num_nodes = 16
    in_channels = 8
    hidden_channels = 32
    out_channels = 8
    num_edges = 40

    x = jax.random.normal(k_x, (num_nodes, in_channels), dtype=jnp.float32)
    edge_index = jax.random.randint(
        k_e, (2, num_edges), minval=0, maxval=num_nodes, dtype=jnp.int32
    )
    params = init_params(k_p, in_channels, hidden_channels, out_channels)

    out = jax.jit(gcn_forward)(x, edge_index, params)
    jax.block_until_ready(out)
    assert out.shape == (num_nodes, out_channels)
    assert bool(jnp.all(jnp.isfinite(out)))
    print("KERNEL_OK")
</pallas_src>

<mosaic_0001>
module attributes {stable_mosaic.version = 11 : i64} {
  func.func @_xw_kernel(%arg0: i32, %arg1: memref<512x8xbf16, #tpu.memory_space<vmem>>, %arg2: memref<8x128xbf16, #tpu.memory_space<vmem>>, %arg3: memref<512x1xf32, #tpu.memory_space<vmem>>, %arg4: memref<512x128xbf16, #tpu.memory_space<vmem>>) attributes {dimension_semantics = [#tpu.dimension_semantics<parallel>], iteration_bounds = array<i64: 1>, scalar_prefetch = 0 : i64, scratch_operands = 0 : i64, tpu.core_type = #tpu.core_type<tc>, window_params = [{transform_indices = @transform_0, window_bounds = array<i64: 512, 8>}, {pipeline_mode = #tpu.pipeline_mode<synchronous>, transform_indices = @transform_1, window_bounds = array<i64: 8, 128>}, {transform_indices = @transform_2, window_bounds = array<i64: 512, 1>}, {transform_indices = @transform_3, window_bounds = array<i64: 512, 128>}]} {
    %c0 = arith.constant 0 : index
    %c0_0 = arith.constant 0 : index
    %0 = vector.load %arg1[%c0, %c0_0] : memref<512x8xbf16, #tpu.memory_space<vmem>>, vector<512x8xbf16>
    %c0_1 = arith.constant 0 : index
    %c0_2 = arith.constant 0 : index
    %1 = vector.load %arg2[%c0_1, %c0_2] : memref<8x128xbf16, #tpu.memory_space<vmem>>, vector<8x128xbf16>
    %cst = arith.constant dense<0.000000e+00> : vector<512x128xf32>
    %2 = tpu.matmul %0, %1, %cst {dimension_numbers = #tpu.dot_dimension_numbers<[1], [0], [0], [1], [0, 0, 1, 1], [], []>} : vector<512x8xbf16>, vector<8x128xbf16>, vector<512x128xf32> -> vector<512x128xf32>
    %c0_3 = arith.constant 0 : index
    %c0_4 = arith.constant 0 : index
    %3 = vector.load %arg3[%c0_3, %c0_4] : memref<512x1xf32, #tpu.memory_space<vmem>>, vector<512x1xf32>
    %4 = vector.broadcast %3 : vector<512x1xf32> to vector<512x128xf32>
    %5 = arith.mulf %2, %4 : vector<512x128xf32>
    %6 = arith.truncf %5 : vector<512x128xf32> to vector<512x128xbf16>
    %c0_5 = arith.constant 0 : index
    %c0_6 = arith.constant 0 : index
    %7 = vector.load %arg4[%c0_5, %c0_6] : memref<512x128xbf16, #tpu.memory_space<vmem>>, vector<512x128xbf16>
    tpu.vector_store %arg4[%c0_5, %c0_6], %6 {strides = array<i32>} : memref<512x128xbf16, #tpu.memory_space<vmem>>, vector<512x128xbf16>,
    return
  }
  func.func @transform_0(%arg0: i32) -> (i32, i32) {
    %c0_i32 = arith.constant 0 : i32
    %c0_i32_0 = arith.constant 0 : i32
    return %arg0, %c0_i32 : i32, i32
  }
  func.func @transform_1(%arg0: i32) -> (i32, i32) {
    %c0_i32 = arith.constant 0 : i32
    %c0_i32_0 = arith.constant 0 : i32
    %c0_i32_1 = arith.constant 0 : i32
    return %c0_i32, %c0_i32_0 : i32, i32
  }
  func.func @transform_2(%arg0: i32) -> (i32, i32) {
    %c0_i32 = arith.constant 0 : i32
    %c0_i32_0 = arith.constant 0 : i32
    return %arg0, %c0_i32 : i32, i32
  }
  func.func @transform_3(%arg0: i32) -> (i32, i32) {
    %c0_i32 = arith.constant 0 : i32
    %c0_i32_0 = arith.constant 0 : i32
    return %arg0, %c0_i32 : i32, i32
  }
}

module attributes {stable_mosaic.version = 11 : i64} {
  func.func @_aggregate_kernel(%arg0: i32, %arg1: i32, %arg2: memref<512x512xi8, #tpu.memory_space<vmem>>, %arg3: memref<512x128xbf16, #tpu.memory_space<vmem>>, %arg4: memref<512x1xf32, #tpu.memory_space<vmem>>, %arg5: memref<1x128xf32, #tpu.memory_space<vmem>>, %arg6: memref<512x128xbf16, #tpu.memory_space<vmem>>, %arg7: memref<512x128xf32, #tpu.memory_space<vmem>>) attributes {dimension_semantics = [#tpu.dimension_semantics<parallel>, #tpu.dimension_semantics<arbitrary>], iteration_bounds = array<i64: 1, 1>, scalar_prefetch = 0 : i64, scratch_operands = 1 : i64, tpu.core_type = #tpu.core_type<tc>, window_params = [{transform_indices = @transform_0, window_bounds = array<i64: 512, 512>}, {pipeline_mode = #tpu.pipeline_mode<synchronous>, transform_indices = @transform_1, window_bounds = array<i64: 512, 128>}, {transform_indices = @transform_2, window_bounds = array<i64: 512, 1>}, {pipeline_mode = #tpu.pipeline_mode<synchronous>, transform_indices = @transform_3, window_bounds = array<i64: 1, 128>}, {transform_indices = @transform_4, window_bounds = array<i64: 512, 128>}]} {
    %c0_i32 = arith.constant 0 : i32
    %0 = arith.cmpi eq, %arg1, %c0_i32 : i32
    %1 = arith.extui %0 : i1 to i32
    %c0_i32_0 = arith.constant 0 : i32
    %2 = arith.cmpi ne, %1, %c0_i32_0 : i32
    scf.if %2 {
      %cst_9 = arith.constant 0.000000e+00 : f32
      %16 = vector.broadcast %cst_9 : f32 to vector<512x128xf32>
      %c0_10 = arith.constant 0 : index
      %c0_11 = arith.constant 0 : index
      %17 = vector.load %arg7[%c0_10, %c0_11] : memref<512x128xf32, #tpu.memory_space<vmem>>, vector<512x128xf32>
      tpu.vector_store %arg7[%c0_10, %c0_11], %16 {strides = array<i32>} : memref<512x128xf32, #tpu.memory_space<vmem>>, vector<512x128xf32>,
    } else {
    }
    %c0 = arith.constant 0 : index
    %c0_1 = arith.constant 0 : index
    %3 = vector.load %arg2[%c0, %c0_1] : memref<512x512xi8, #tpu.memory_space<vmem>>, vector<512x512xi8>
    %4 = arith.sitofp %3 : vector<512x512xi8> to vector<512x512xbf16>
    %c512_i32 = arith.constant 512 : i32
    %5 = arith.muli %arg1, %c512_i32 : i32
    %6 = tpu.assume_multiple %5, 512 : i32
    %7 = arith.index_cast %6 : i32 to index
    %c0_2 = arith.constant 0 : index
    %8 = vector.load %arg3[%7, %c0_2] : memref<512x128xbf16, #tpu.memory_space<vmem>>, vector<512x128xbf16>
    %c0_3 = arith.constant 0 : index
    %c0_4 = arith.constant 0 : index
    %9 = vector.load %arg7[%c0_3, %c0_4] : memref<512x128xf32, #tpu.memory_space<vmem>>, vector<512x128xf32>
    %cst = arith.constant dense<0.000000e+00> : vector<512x128xf32>
    %10 = tpu.matmul %4, %8, %cst {dimension_numbers = #tpu.dot_dimension_numbers<[1], [0], [0], [1], [0, 0, 1, 1], [], []>} : vector<512x512xbf16>, vector<512x128xbf16>, vector<512x128xf32> -> vector<512x128xf32>
    %11 = arith.addf %9, %10 : vector<512x128xf32>
    %c0_5 = arith.constant 0 : index
    %c0_6 = arith.constant 0 : index
    %12 = vector.load %arg7[%c0_5, %c0_6] : memref<512x128xf32, #tpu.memory_space<vmem>>, vector<512x128xf32>
    tpu.vector_store %arg7[%c0_5, %c0_6], %11 {strides = array<i32>} : memref<512x128xf32, #tpu.memory_space<vmem>>, vector<512x128xf32>,
    %c0_i32_7 = arith.constant 0 : i32
    %13 = arith.cmpi eq, %arg1, %c0_i32_7 : i32
    %14 = arith.extui %13 : i1 to i32
    %c0_i32_8 = arith.constant 0 : i32
    %15 = arith.cmpi ne, %14, %c0_i32_8 : i32
    scf.if %15 {
      %c0_9 = arith.constant 0 : index
      %c0_10 = arith.constant 0 : index
      %16 = vector.load %arg7[%c0_9, %c0_10] : memref<512x128xf32, #tpu.memory_space<vmem>>, vector<512x128xf32>
      %c0_11 = arith.constant 0 : index
      %c0_12 = arith.constant 0 : index
      %17 = vector.load %arg4[%c0_11, %c0_12] : memref<512x1xf32, #tpu.memory_space<vmem>>, vector<512x1xf32>
      %18 = vector.broadcast %17 : vector<512x1xf32> to vector<512x128xf32>
      %19 = arith.mulf %16, %18 : vector<512x128xf32>
      %c0_13 = arith.constant 0 : index
      %c0_14 = arith.constant 0 : index
      %20 = vector.load %arg5[%c0_13, %c0_14] : memref<1x128xf32, #tpu.memory_space<vmem>>, vector<1x128xf32>
      %21 = vector.broadcast %20 : vector<1x128xf32> to vector<512x128xf32>
      %22 = arith.addf %19, %21 : vector<512x128xf32>
      %cst_15 = arith.constant 0.000000e+00 : f32
      %23 = vector.broadcast %cst_15 : f32 to vector<512x128xf32>
      %24 = arith.maximumf %22, %23 : vector<512x128xf32>
      %25 = arith.truncf %24 : vector<512x128xf32> to vector<512x128xbf16>
      %c0_16 = arith.constant 0 : index
      %c0_17 = arith.constant 0 : index
      %26 = vector.load %arg6[%c0_16, %c0_17] : memref<512x128xbf16, #tpu.memory_space<vmem>>, vector<512x128xbf16>
      tpu.vector_store %arg6[%c0_16, %c0_17], %25 {strides = array<i32>} : memref<512x128xbf16, #tpu.memory_space<vmem>>, vector<512x128xbf16>,
    } else {
    }
    return
  }
  func.func @transform_0(%arg0: i32, %arg1: i32) -> (i32, i32) {
    %c0_i32 = arith.constant 0 : i32
    return %arg0, %arg1 : i32, i32
  }
  func.func @transform_1(%arg0: i32, %arg1: i32) -> (i32, i32) {
    %c0_i32 = arith.constant 0 : i32
    %c0_i32_0 = arith.constant 0 : i32
    %c0_i32_1 = arith.constant 0 : i32
    return %c0_i32, %c0_i32_0 : i32, i32
  }
  func.func @transform_2(%arg0: i32, %arg1: i32) -> (i32, i32) {
    %c0_i32 = arith.constant 0 : i32
    %c0_i32_0 = arith.constant 0 : i32
    return %arg0, %c0_i32 : i32, i32
  }
  func.func @transform_3(%arg0: i32, %arg1: i32) -> (i32, i32) {
    %c0_i32 = arith.constant 0 : i32
    %c0_i32_0 = arith.constant 0 : i32
    %c0_i32_1 = arith.constant 0 : i32
    return %c0_i32, %c0_i32_0 : i32, i32
  }
  func.func @transform_4(%arg0: i32, %arg1: i32) -> (i32, i32) {
    %c0_i32 = arith.constant 0 : i32
    %c0_i32_0 = arith.constant 0 : i32
    return %arg0, %c0_i32 : i32, i32
  }
}

module attributes {stable_mosaic.version = 11 : i64} {
  func.func @_xw_kernel(%arg0: i32, %arg1: memref<512x128xbf16, #tpu.memory_space<vmem>>, %arg2: memref<128x128xbf16, #tpu.memory_space<vmem>>, %arg3: memref<512x1xf32, #tpu.memory_space<vmem>>, %arg4: memref<512x128xbf16, #tpu.memory_space<vmem>>) attributes {dimension_semantics = [#tpu.dimension_semantics<parallel>], iteration_bounds = array<i64: 1>, scalar_prefetch = 0 : i64, scratch_operands = 0 : i64, tpu.core_type = #tpu.core_type<tc>, window_params = [{transform_indices = @transform_0, window_bounds = array<i64: 512, 128>}, {pipeline_mode = #tpu.pipeline_mode<synchronous>, transform_indices = @transform_1, window_bounds = array<i64: 128, 128>}, {transform_indices = @transform_2, window_bounds = array<i64: 512, 1>}, {transform_indices = @transform_3, window_bounds = array<i64: 512, 128>}]} {
    %c0 = arith.constant 0 : index
    %c0_0 = arith.constant 0 : index
    %0 = vector.load %arg1[%c0, %c0_0] : memref<512x128xbf16, #tpu.memory_space<vmem>>, vector<512x128xbf16>
    %c0_1 = arith.constant 0 : index
    %c0_2 = arith.constant 0 : index
    %1 = vector.load %arg2[%c0_1, %c0_2] : memref<128x128xbf16, #tpu.memory_space<vmem>>, vector<128x128xbf16>
    %cst = arith.constant dense<0.000000e+00> : vector<512x128xf32>
    %2 = tpu.matmul %0, %1, %cst {dimension_numbers = #tpu.dot_dimension_numbers<[1], [0], [0], [1], [0, 0, 1, 1], [], []>} : vector<512x128xbf16>, vector<128x128xbf16>, vector<512x128xf32> -> vector<512x128xf32>
    %c0_3 = arith.constant 0 : index
    %c0_4 = arith.constant 0 : index
    %3 = vector.load %arg3[%c0_3, %c0_4] : memref<512x1xf32, #tpu.memory_space<vmem>>, vector<512x1xf32>
    %4 = vector.broadcast %3 : vector<512x1xf32> to vector<512x128xf32>
    %5 = arith.mulf %2, %4 : vector<512x128xf32>
    %6 = arith.truncf %5 : vector<512x128xf32> to vector<512x128xbf16>
    %c0_5 = arith.constant 0 : index
    %c0_6 = arith.constant 0 : index
    %7 = vector.load %arg4[%c0_5, %c0_6] : memref<512x128xbf16, #tpu.memory_space<vmem>>, vector<512x128xbf16>
    tpu.vector_store %arg4[%c0_5, %c0_6], %6 {strides = array<i32>} : memref<512x128xbf16, #tpu.memory_space<vmem>>, vector<512x128xbf16>,
    return
  }
  func.func @transform_0(%arg0: i32) -> (i32, i32) {
    %c0_i32 = arith.constant 0 : i32
    %c0_i32_0 = arith.constant 0 : i32
    return %arg0, %c0_i32 : i32, i32
  }
  func.func @transform_1(%arg0: i32) -> (i32, i32) {
    %c0_i32 = arith.constant 0 : i32
    %c0_i32_0 = arith.constant 0 : i32
    %c0_i32_1 = arith.constant 0 : i32
    return %c0_i32, %c0_i32_0 : i32, i32
  }
  func.func @transform_2(%arg0: i32) -> (i32, i32) {
    %c0_i32 = arith.constant 0 : i32
    %c0_i32_0 = arith.constant 0 : i32
    return %arg0, %c0_i32 : i32, i32
  }
  func.func @transform_3(%arg0: i32) -> (i32, i32) {
    %c0_i32 = arith.constant 0 : i32
    %c0_i32_0 = arith.constant 0 : i32
    return %arg0, %c0_i32 : i32, i32
  }
}

module attributes {stable_mosaic.version = 11 : i64} {
  func.func @_aggregate_kernel(%arg0: i32, %arg1: i32, %arg2: memref<512x512xi8, #tpu.memory_space<vmem>>, %arg3: memref<512x128xbf16, #tpu.memory_space<vmem>>, %arg4: memref<512x1xf32, #tpu.memory_space<vmem>>, %arg5: memref<1x128xf32, #tpu.memory_space<vmem>>, %arg6: memref<512x128xf32, #tpu.memory_space<vmem>>, %arg7: memref<512x128xf32, #tpu.memory_space<vmem>>) attributes {dimension_semantics = [#tpu.dimension_semantics<parallel>, #tpu.dimension_semantics<arbitrary>], iteration_bounds = array<i64: 1, 1>, scalar_prefetch = 0 : i64, scratch_operands = 1 : i64, tpu.core_type = #tpu.core_type<tc>, window_params = [{transform_indices = @transform_0, window_bounds = array<i64: 512, 512>}, {pipeline_mode = #tpu.pipeline_mode<synchronous>, transform_indices = @transform_1, window_bounds = array<i64: 512, 128>}, {transform_indices = @transform_2, window_bounds = array<i64: 512, 1>}, {pipeline_mode = #tpu.pipeline_mode<synchronous>, transform_indices = @transform_3, window_bounds = array<i64: 1, 128>}, {transform_indices = @transform_4, window_bounds = array<i64: 512, 128>}]} {
    %c0_i32 = arith.constant 0 : i32
    %0 = arith.cmpi eq, %arg1, %c0_i32 : i32
    %1 = arith.extui %0 : i1 to i32
    %c0_i32_0 = arith.constant 0 : i32
    %2 = arith.cmpi ne, %1, %c0_i32_0 : i32
    scf.if %2 {
      %cst_9 = arith.constant 0.000000e+00 : f32
      %16 = vector.broadcast %cst_9 : f32 to vector<512x128xf32>
      %c0_10 = arith.constant 0 : index
      %c0_11 = arith.constant 0 : index
      %17 = vector.load %arg7[%c0_10, %c0_11] : memref<512x128xf32, #tpu.memory_space<vmem>>, vector<512x128xf32>
      tpu.vector_store %arg7[%c0_10, %c0_11], %16 {strides = array<i32>} : memref<512x128xf32, #tpu.memory_space<vmem>>, vector<512x128xf32>,
    } else {
    }
    %c0 = arith.constant 0 : index
    %c0_1 = arith.constant 0 : index
    %3 = vector.load %arg2[%c0, %c0_1] : memref<512x512xi8, #tpu.memory_space<vmem>>, vector<512x512xi8>
    %4 = arith.sitofp %3 : vector<512x512xi8> to vector<512x512xbf16>
    %c512_i32 = arith.constant 512 : i32
    %5 = arith.muli %arg1, %c512_i32 : i32
    %6 = tpu.assume_multiple %5, 512 : i32
    %7 = arith.index_cast %6 : i32 to index
    %c0_2 = arith.constant 0 : index
    %8 = vector.load %arg3[%7, %c0_2] : memref<512x128xbf16, #tpu.memory_space<vmem>>, vector<512x128xbf16>
    %c0_3 = arith.constant 0 : index
    %c0_4 = arith.constant 0 : index
    %9 = vector.load %arg7[%c0_3, %c0_4] : memref<512x128xf32, #tpu.memory_space<vmem>>, vector<512x128xf32>
    %cst = arith.constant dense<0.000000e+00> : vector<512x128xf32>
    %10 = tpu.matmul %4, %8, %cst {dimension_numbers = #tpu.dot_dimension_numbers<[1], [0], [0], [1], [0, 0, 1, 1], [], []>} : vector<512x512xbf16>, vector<512x128xbf16>, vector<512x128xf32> -> vector<512x128xf32>
    %11 = arith.addf %9, %10 : vector<512x128xf32>
    %c0_5 = arith.constant 0 : index
    %c0_6 = arith.constant 0 : index
    %12 = vector.load %arg7[%c0_5, %c0_6] : memref<512x128xf32, #tpu.memory_space<vmem>>, vector<512x128xf32>
    tpu.vector_store %arg7[%c0_5, %c0_6], %11 {strides = array<i32>} : memref<512x128xf32, #tpu.memory_space<vmem>>, vector<512x128xf32>,
    %c0_i32_7 = arith.constant 0 : i32
    %13 = arith.cmpi eq, %arg1, %c0_i32_7 : i32
    %14 = arith.extui %13 : i1 to i32
    %c0_i32_8 = arith.constant 0 : i32
    %15 = arith.cmpi ne, %14, %c0_i32_8 : i32
    scf.if %15 {
      %c0_9 = arith.constant 0 : index
      %c0_10 = arith.constant 0 : index
      %16 = vector.load %arg7[%c0_9, %c0_10] : memref<512x128xf32, #tpu.memory_space<vmem>>, vector<512x128xf32>
      %c0_11 = arith.constant 0 : index
      %c0_12 = arith.constant 0 : index
      %17 = vector.load %arg4[%c0_11, %c0_12] : memref<512x1xf32, #tpu.memory_space<vmem>>, vector<512x1xf32>
      %18 = vector.broadcast %17 : vector<512x1xf32> to vector<512x128xf32>
      %19 = arith.mulf %16, %18 : vector<512x128xf32>
      %c0_13 = arith.constant 0 : index
      %c0_14 = arith.constant 0 : index
      %20 = vector.load %arg5[%c0_13, %c0_14] : memref<1x128xf32, #tpu.memory_space<vmem>>, vector<1x128xf32>
      %21 = vector.broadcast %20 : vector<1x128xf32> to vector<512x128xf32>
      %22 = arith.addf %19, %21 : vector<512x128xf32>
      %c0_15 = arith.constant 0 : index
      %c0_16 = arith.constant 0 : index
      %23 = vector.load %arg6[%c0_15, %c0_16] : memref<512x128xf32, #tpu.memory_space<vmem>>, vector<512x128xf32>
      tpu.vector_store %arg6[%c0_15, %c0_16], %22 {strides = array<i32>} : memref<512x128xf32, #tpu.memory_space<vmem>>, vector<512x128xf32>,
    } else {
    }
    return
  }
  func.func @transform_0(%arg0: i32, %arg1: i32) -> (i32, i32) {
    %c0_i32 = arith.constant 0 : i32
    return %arg0, %arg1 : i32, i32
  }
  func.func @transform_1(%arg0: i32, %arg1: i32) -> (i32, i32) {
    %c0_i32 = arith.constant 0 : i32
    %c0_i32_0 = arith.constant 0 : i32
    %c0_i32_1 = arith.constant 0 : i32
    return %c0_i32, %c0_i32_0 : i32, i32
  }
  func.func @transform_2(%arg0: i32, %arg1: i32) -> (i32, i32) {
    %c0_i32 = arith.constant 0 : i32
    %c0_i32_0 = arith.constant 0 : i32
    return %arg0, %c0_i32 : i32, i32
  }
  func.func @transform_3(%arg0: i32, %arg1: i32) -> (i32, i32) {
    %c0_i32 = arith.constant 0 : i32
    %c0_i32_0 = arith.constant 0 : i32
    %c0_i32_1 = arith.constant 0 : i32
    return %c0_i32, %c0_i32_0 : i32, i32
  }
  func.func @transform_4(%arg0: i32, %arg1: i32) -> (i32, i32) {
    %c0_i32 = arith.constant 0 : i32
    %c0_i32_0 = arith.constant 0 : i32
    return %arg0, %c0_i32 : i32, i32
  }
}

</mosaic_0001>

<bundles_post_ra>
// kernel: gcn_forward.6
= control target key start
LH: loop header
LB: loop body
LE: loop exit
PB: predicated region body
PF: predicated region fallthrough
CT: control target
= control target key end

     0   :  { %v1934_v0 = vmov 0   ;;  %s2501_s2 = inlined_call_operand.vmem [shape: f32[512,1], index: 2, kind: input, shape index: {}]   ;;  %s2502_s1 = inlined_call_operand.vmem [shape: bf16[128,128], index: 1, kind: input, shape index: {}]   ;;  %s2503_s0 = inlined_call_operand.vmem [shape: bf16[512,128], index: 0, kind: input, shape index: {}]   ;;  %s2504_s3 = inlined_call_operand.vmem [shape: bf16[512,128], index: 3, kind: output, shape index: {}]  }
   0x1   :  { %1893 = vset.pattern.permute.xlu1 %v1934_v0  ;;  %1892 = vset.pattern.permute.xlu0 %v1934_v0  ;;  %v626_v1 = vld [vmem:[%s2501_s2 + $0x10] sm:$0xff]  ;;  %v624_v2 = vld [vmem:[%s2501_s2] sm:$0xff]  ;;  %v627_v4 = vld [vmem:[%s2501_s2 + $0x18] sm:$0xff] }
   0x2   :  { %700 = vperm.xlu1 %1893, %v626_v1   ;;  %690 = vperm.xlu0 %1892, %v624_v2   ;;  %v1894_v3 = vld [vmem:[%s2502_s1] sm:$0xff]   ;;  %v625_v5 = vld [vmem:[%s2501_s2 + $0x8] sm:$0xff]  ;;  %v1896_v9 = vld [vmem:[%s2502_s1 + $0x10] sm:$0xff]  }
   0x3   :  { %1795 = vmatprep.subr.bf16.mxu0 %v1894_v3  ;;  %1875 = vmatprep.subr.bf16.mxu1 %v1894_v3  ;;  %v1895_v6 = vld [vmem:[%s2502_s1 + $0x8] sm:$0xff]   ;;  %v628_v8 = vld [vmem:[%s2501_s2 + $0x20] sm:$0xff]  ;;  %v631_v10 = vld [vmem:[%s2501_s2 + $0x38] sm:$0xff] }
   0x4   :  { %1796 = vmatpush3.bf16.msra.mxu0 %v1894_v3  ;;  %1883 = vmatpush3.bf16.msra.mxu1 %v1894_v3  ;;  %v629_v7 = vld [vmem:[%s2501_s2 + $0x28] sm:$0xff]  ;;  %v630_v11 = vld [vmem:[%s2501_s2 + $0x30] sm:$0xff]  ;;  %v1897_v12 = vld [vmem:[%s2502_s1 + $0x18] sm:$0xff]  }
   0x5   :  { %1797 = vmatprep.subr.bf16.mxu0 %v1895_v6  ;;  %1876 = vmatprep.subr.bf16.mxu1 %v1895_v6  ;;  %v633_v13 = vld [vmem:[%s2501_s2 + $0x48] sm:$0xff]  ;;  %v632_v14 = vld [vmem:[%s2501_s2 + $0x40] sm:$0xff]  ;;  %v635_v18 = vld [vmem:[%s2501_s2 + $0x58] sm:$0xff] }
   0x6   :  { %705 = vperm.xlu1 %1893, %v627_v4   ;;  %695 = vperm.xlu0 %1892, %v625_v5   ;;  %v1898_v15 = vld [vmem:[%s2502_s1 + $0x20] sm:$0xff]   ;;  %v634_v19 = vld [vmem:[%s2501_s2 + $0x50] sm:$0xff]  ;;  %v1899_v20 = vld [vmem:[%s2502_s1 + $0x28] sm:$0xff]  }
   0x7   :  { %v1902_v16 = vld [vmem:[%s2503_s0] sm:$0xff]   ;;  %v637_v21 = vld [vmem:[%s2501_s2 + $0x68] sm:$0xff]  ;;  %v1900_v23 = vld [vmem:[%s2502_s1 + $0x30] sm:$0xff]  }
   0x8   :  { %1798 = vmatpush3.bf16.msra.mxu0 %v1895_v6  ;;  %1884 = vmatpush3.bf16.msra.mxu1 %v1895_v6  ;;  %v1903_v17 = vld [vmem:[%s2503_s0 + $0x80] sm:$0xff]   ;;  %v639_v24 = vld [vmem:[%s2501_s2 + $0x78] sm:$0xff]  ;;  %v638_v25 = vld [vmem:[%s2501_s2 + $0x70] sm:$0xff] }
   0x9   :  { %1799 = vmatprep.subr.bf16.mxu0 %v1896_v9  ;;  %1877 = vmatprep.subr.bf16.mxu1 %v1896_v9  ;;  %v636_v22 = vld [vmem:[%s2501_s2 + $0x60] sm:$0xff]  ;;  %v1901_v26 = vld [vmem:[%s2502_s1 + $0x38] sm:$0xff]   ;;  %v641_v27 = vld [vmem:[%s2501_s2 + $0x88] sm:$0xff] }
   0xa   :  { %715 = vperm.xlu1 %1893, %v629_v7   ;;  %710 = vperm.xlu0 %1892, %v628_v8   ;;  %v640_v28 = vld [vmem:[%s2501_s2 + $0x80] sm:$0xff]  ;;  %v1904_v29 = vld [vmem:[%s2503_s0 + $0x8] sm:$0xff]   ;;  %v1906_v31 = vld [vmem:[%s2503_s0 + $0x10] sm:$0xff]  }
   0xb   :  { %1811 = vmatprep.mubr.bf16.mxu0 %v1902_v16  ;;  %1843 = vmatprep.mubr.bf16.mxu1 %v1903_v17  ;;  %v1905_v30 = vld [vmem:[%s2503_s0 + $0x88] sm:$0xff]   ;;  %v1907_v32 = vld [vmem:[%s2503_s0 + $0x90] sm:$0xff]   ;;  %v643_v33 = vld [vmem:[%s2501_s2 + $0x98] sm:$0xff] }
   0xc   :  { %1800 = vmatpush3.bf16.msra.mxu0 %v1896_v9  ;;  %1885 = vmatpush3.bf16.msra.mxu1 %v1896_v9  ;;  %v642_v34 = vld [vmem:[%s2501_s2 + $0x90] sm:$0xff]  ;;  %v645_v35 = vld [vmem:[%s2501_s2 + $0xa8] sm:$0xff]  ;;  %v644_v36 = vld [vmem:[%s2501_s2 + $0xa0] sm:$0xff] }
   0xd   :  { %1801 = vmatprep.subr.bf16.mxu0 %v1897_v12  ;;  %1878 = vmatprep.subr.bf16.mxu1 %v1897_v12  ;;  %v1908_v37 = vld [vmem:[%s2503_s0 + $0x18] sm:$0xff]   ;;  %v1910_v39 = vld [vmem:[%s2503_s0 + $0x20] sm:$0xff]   ;;  %v646_v42 = vld [vmem:[%s2501_s2 + $0xb0] sm:$0xff] }
   0xe   :  { %725 = vperm.xlu1 %1893, %v631_v10   ;;  %720 = vperm.xlu0 %1892, %v630_v11   ;;  %v1909_v38 = vld [vmem:[%s2503_s0 + $0x98] sm:$0xff]   ;;  %v1911_v40 = vld [vmem:[%s2503_s0 + $0xa0] sm:$0xff]   ;;  %v649_v43 = vld [vmem:[%s2501_s2 + $0xc8] sm:$0xff] }
   0xf   :  { %v647_v41 = vld [vmem:[%s2501_s2 + $0xb8] sm:$0xff]  ;;  %v648_v44 = vld [vmem:[%s2501_s2 + $0xc0] sm:$0xff]  ;;  %v1912_v45 = vld [vmem:[%s2503_s0 + $0x28] sm:$0xff]  }
  0x10   :  { %1802 = vmatpush3.bf16.msra.mxu0 %v1897_v12  ;;  %1886 = vmatpush3.bf16.msra.mxu1 %v1897_v12  ;;  %v1913_v46 = vld [vmem:[%s2503_s0 + $0xa8] sm:$0xff]   ;;  %v1914_v47 = vld [vmem:[%s2503_s0 + $0x30] sm:$0xff]   ;;  %v651_v49 = vld [vmem:[%s2501_s2 + $0xd8] sm:$0xff] }
  0x11   :  { %1803 = vmatprep.subr.bf16.mxu0 %v1898_v15  ;;  %1879 = vmatprep.subr.bf16.mxu1 %v1898_v15  ;;  %v1915_v48 = vld [vmem:[%s2503_s0 + $0xb0] sm:$0xff]   ;;  %v653_v51 = vld [vmem:[%s2501_s2 + $0xe8] sm:$0xff]  ;;  %v652_v52 = vld [vmem:[%s2501_s2 + $0xe0] sm:$0xff] }
  0x12   :  { %735 = vperm.xlu1 %1893, %v633_v13   ;;  %730 = vperm.xlu0 %1892, %v632_v14   ;;  %v650_v50 = vld [vmem:[%s2501_s2 + $0xd0] sm:$0xff]  ;;  %v1916_v53 = vld [vmem:[%s2503_s0 + $0x38] sm:$0xff]   ;;  %v1918_v55 = vld [vmem:[%s2503_s0 + $0x40] sm:$0xff]  }
  0x13   :  { %v1917_v54 = vld [vmem:[%s2503_s0 + $0xb8] sm:$0xff]   ;;  %v1919_v56 = vld [vmem:[%s2503_s0 + $0xc0] sm:$0xff]   ;;  %v654_v58 = vld [vmem:[%s2501_s2 + $0xf0] sm:$0xff] }
  0x14   :  { %1804 = vmatpush3.bf16.msra.mxu0 %v1898_v15  ;;  %1887 = vmatpush3.bf16.msra.mxu1 %v1898_v15  ;;  %v655_v57 = vld [vmem:[%s2501_s2 + $0xf8] sm:$0xff]  ;;  %v657_v59 = vld [vmem:[%s2501_s2 + $0x108] sm:$0xff]  ;;  %v656_v60 = vld [vmem:[%s2501_s2 + $0x100] sm:$0xff] }
  0x15   :  { %1805 = vmatprep.subr.bf16.mxu0 %v1899_v20  ;;  %1880 = vmatprep.subr.bf16.mxu1 %v1899_v20  ;;  %v1920_v61 = vld [vmem:[%s2503_s0 + $0x48] sm:$0xff]   ;;  %v1922_v63 = vld [vmem:[%s2503_s0 + $0x50] sm:$0xff]   ;;  %v659_v1 = vld [vmem:[%s2501_s2 + $0x118] sm:$0xff] }
  0x16   :  { %745 = vperm.xlu1 %1893, %v635_v18   ;;  %740 = vperm.xlu0 %1892, %v634_v19   ;;  %v1921_v62 = vld [vmem:[%s2503_s0 + $0xc8] sm:$0xff]   ;;  %v1923_v0 = vld [vmem:[%s2503_s0 + $0xd0] sm:$0xff]   ;;  %v660_v4 = vld [vmem:[%s2501_s2 + $0x120] sm:$0xff] }
  0x17   :  { %v658_v2 = vld [vmem:[%s2501_s2 + $0x110] sm:$0xff]  ;;  %v661_v3 = vld [vmem:[%s2501_s2 + $0x128] sm:$0xff]  ;;  %v1924_v5 = vld [vmem:[%s2503_s0 + $0x58] sm:$0xff]  }
  0x18   :  { %1806 = vmatpush3.bf16.msra.mxu0 %v1899_v20  ;;  %1888 = vmatpush3.bf16.msra.mxu1 %v1899_v20  ;;  %v1925_v6 = vld [vmem:[%s2503_s0 + $0xd8] sm:$0xff]   ;;  %v1926_v7 = vld [vmem:[%s2503_s0 + $0x60] sm:$0xff]   ;;  %v662_v10 = vld [vmem:[%s2501_s2 + $0x130] sm:$0xff] }
  0x19   :  { %1807 = vmatprep.subr.bf16.mxu0 %v1900_v23  ;;  %1881 = vmatprep.subr.bf16.mxu1 %v1900_v23  ;;  %v1927_v8 = vld [vmem:[%s2503_s0 + $0xe0] sm:$0xff]   ;;  %v663_v9 = vld [vmem:[%s2501_s2 + $0x138] sm:$0xff]  ;;  %v665_v11 = vld [vmem:[%s2501_s2 + $0x148] sm:$0xff] }
  0x1a   :  { %755 = vperm.xlu1 %1893, %v637_v21   ;;  %750 = vperm.xlu0 %1892, %v636_v22   ;;  %v664_v12 = vld [vmem:[%s2501_s2 + $0x140] sm:$0xff]  ;;  %v1928_v13 = vld [vmem:[%s2503_s0 + $0x68] sm:$0xff]   ;;  %v1930_v15 = vld [vmem:[%s2503_s0 + $0x70] sm:$0xff]  }
  0x1b   :  { %v1929_v14 = vld [vmem:[%s2503_s0 + $0xe8] sm:$0xff]   ;;  %v1931_v16 = vld [vmem:[%s2503_s0 + $0xf0] sm:$0xff]   ;;  %v667_v17 = vld [vmem:[%s2501_s2 + $0x158] sm:$0xff] }
  0x1c   :  { %1808 = vmatpush3.bf16.msra.mxu0 %v1900_v23  ;;  %1889 = vmatpush3.bf16.msra.mxu1 %v1900_v23  ;;  %v666_v18 = vld [vmem:[%s2501_s2 + $0x150] sm:$0xff]  ;;  %v669_v19 = vld [vmem:[%s2501_s2 + $0x168] sm:$0xff]  ;;  %v668_v20 = vld [vmem:[%s2501_s2 + $0x160] sm:$0xff] }
  0x1d   :  { %1809 = vmatprep.subr.bf16.mxu0 %v1901_v26  ;;  %1882 = vmatprep.subr.bf16.mxu1 %v1901_v26  ;;  %v1932_v21 = vld [vmem:[%s2503_s0 + $0x78] sm:$0xff]  }
  0x1e   :  { %765 = vperm.xlu1 %1893, %v639_v24   ;;  %760 = vperm.xlu0 %1892, %v638_v25   ;;  %v1933_v22 = vld [vmem:[%s2503_s0 + $0xf8] sm:$0xff]   ;;  %v670_v24 = vld [vmem:[%s2501_s2 + $0x170] sm:$0xff]  ;;  %v673_v25 = vld [vmem:[%s2501_s2 + $0x188] sm:$0xff] }
  0x1f   :  { %v671_v23 = vld [vmem:[%s2501_s2 + $0x178] sm:$0xff] }
  0x20   :  { %1810 = vmatpush3.bf16.msra.mxu0 %v1901_v26  ;;  %1890 = vmatpush3.bf16.msra.mxu1 %v1901_v26  ;;  %v672_v26 = vld [vmem:[%s2501_s2 + $0x180] sm:$0xff] }
  0x22   :  { %775 = vperm.xlu1 %1893, %v641_v27   ;;  %770 = vperm.xlu0 %1892, %v640_v28   ;;  %v675_v27 = vld [vmem:[%s2501_s2 + $0x198] sm:$0xff]  ;;  %v674_v28 = vld [vmem:[%s2501_s2 + $0x190] sm:$0xff] }
  0x23   :  { %1812 = vmatmul.mubr.bf16.vlgmr.msra.gmra.mrb[0].mxu0 %v1904_v29  ;;  %1844 = vmatmul.mubr.bf16.vlgmr.msra.gmra.mrb[0].mxu1 %v1905_v30  ;;  %v677_v29 = vld [vmem:[%s2501_s2 + $0x1a8] sm:$0xff]  ;;  %v676_v30 = vld [vmem:[%s2501_s2 + $0x1a0] sm:$0xff] }
  0x24   :  { %1815 = vmatprep.mubr.bf16.mxu0 %v1906_v31  ;;  %1847 = vmatprep.mubr.bf16.mxu1 %v1907_v32  ;;  %v679_v31 = vld [vmem:[%s2501_s2 + $0x1b8] sm:$0xff]  ;;  %v678_v32 = vld [vmem:[%s2501_s2 + $0x1b0] sm:$0xff] }
  0x26   :  { %785 = vperm.xlu1 %1893, %v643_v33   ;;  %780 = vperm.xlu0 %1892, %v642_v34   ;;  %v681_v33 = vld [vmem:[%s2501_s2 + $0x1c8] sm:$0xff]  ;;  %v680_v34 = vld [vmem:[%s2501_s2 + $0x1c0] sm:$0xff] }
  0x2a   :  { %795 = vperm.xlu1 %1893, %v645_v35   ;;  %790 = vperm.xlu0 %1892, %v644_v36   ;;  %v683_v35 = vld [vmem:[%s2501_s2 + $0x1d8] sm:$0xff]  ;;  %v682_v36 = vld [vmem:[%s2501_s2 + $0x1d0] sm:$0xff] }
  0x2b   :  { %1816 = vmatmul.mubr.bf16.gmra.mrb[4].mxu0 %v1908_v37  ;;  %1848 = vmatmul.mubr.bf16.gmra.mrb[4].mxu1 %v1909_v38  ;;  %v685_v37 = vld [vmem:[%s2501_s2 + $0x1e8] sm:$0xff]  ;;  %v684_v38 = vld [vmem:[%s2501_s2 + $0x1e0] sm:$0xff] }
  0x2c   :  { %1819 = vmatprep.mubr.bf16.mxu0 %v1910_v39  ;;  %1851 = vmatprep.mubr.bf16.mxu1 %v1911_v40  ;;  %v687_v39 = vld [vmem:[%s2501_s2 + $0x1f8] sm:$0xff]  ;;  %v686_v40 = vld [vmem:[%s2501_s2 + $0x1f0] sm:$0xff] }
  0x2e   :  { %805 = vperm.xlu1 %1893, %v647_v41   ;;  %800 = vperm.xlu0 %1892, %v646_v42  }
  0x32   :  { %815 = vperm.xlu1 %1893, %v649_v43   ;;  %810 = vperm.xlu0 %1892, %v648_v44  }
  0x33   :  { %1820 = vmatmul.mubr.bf16.gmra.mrb[8].mxu0 %v1912_v45  ;;  %1852 = vmatmul.mubr.bf16.gmra.mrb[8].mxu1 %v1913_v46 }
  0x34   :  { %1823 = vmatprep.mubr.bf16.mxu0 %v1914_v47  ;;  %1855 = vmatprep.mubr.bf16.mxu1 %v1915_v48 }
  0x36   :  { %825 = vperm.xlu1 %1893, %v651_v49   ;;  %820 = vperm.xlu0 %1892, %v650_v50  }
  0x3a   :  { %835 = vperm.xlu1 %1893, %v653_v51   ;;  %830 = vperm.xlu0 %1892, %v652_v52  }
  0x3b   :  { %1824 = vmatmul.mubr.bf16.gmra.mrb[12].mxu0 %v1916_v53  ;;  %1856 = vmatmul.mubr.bf16.gmra.mrb[12].mxu1 %v1917_v54 }
  0x3c   :  { %1827 = vmatprep.mubr.bf16.mxu0 %v1918_v55  ;;  %1859 = vmatprep.mubr.bf16.mxu1 %v1919_v56 }
  0x3e   :  { %845 = vperm.xlu1 %1893, %v655_v57   ;;  %840 = vperm.xlu0 %1892, %v654_v58  }
  0x42   :  { %855 = vperm.xlu1 %1893, %v657_v59   ;;  %850 = vperm.xlu0 %1892, %v656_v60  }
  0x43   :  { %1828 = vmatmul.mubr.bf16.gmra.mrb[16].mxu0 %v1920_v61  ;;  %1860 = vmatmul.mubr.bf16.gmra.mrb[16].mxu1 %v1921_v62 }
  0x44   :  { %1831 = vmatprep.mubr.bf16.mxu0 %v1922_v63  ;;  %1863 = vmatprep.mubr.bf16.mxu1 %v1923_v0 }
  0x46   :  { %865 = vperm.xlu1 %1893, %v659_v1   ;;  %860 = vperm.xlu0 %1892, %v658_v2  }
  0x4a   :  { %875 = vperm.xlu1 %1893, %v661_v3   ;;  %870 = vperm.xlu0 %1892, %v660_v4  }
  0x4b   :  { %1832 = vmatmul.mubr.bf16.gmra.mrb[20].mxu0 %v1924_v5  ;;  %1864 = vmatmul.mubr.bf16.gmra.mrb[20].mxu1 %v1925_v6 }
  0x4c   :  { %1835 = vmatprep.mubr.bf16.mxu0 %v1926_v7  ;;  %1867 = vmatprep.mubr.bf16.mxu1 %v1927_v8 }
  0x4e   :  { %885 = vperm.xlu1 %1893, %v663_v9   ;;  %880 = vperm.xlu0 %1892, %v662_v10  }
  0x52   :  { %895 = vperm.xlu1 %1893, %v665_v11   ;;  %890 = vperm.xlu0 %1892, %v664_v12  }
  0x53   :  { %1836 = vmatmul.mubr.bf16.gmra.mrb[24].mxu0 %v1928_v13  ;;  %1868 = vmatmul.mubr.bf16.gmra.mrb[24].mxu1 %v1929_v14 }
  0x54   :  { %1839 = vmatprep.mubr.bf16.mxu0 %v1930_v15  ;;  %1871 = vmatprep.mubr.bf16.mxu1 %v1931_v16 }
  0x56   :  { %905 = vperm.xlu1 %1893, %v667_v17   ;;  %900 = vperm.xlu0 %1892, %v666_v18  }
  0x5a   :  { %915 = vperm.xlu1 %1893, %v669_v19   ;;  %910 = vperm.xlu0 %1892, %v668_v20  }
  0x5b   :  { %1840 = vmatmul.mubr.bf16.gmra.mrb[28].mxu0 %v1932_v21  ;;  %1872 = vmatmul.mubr.bf16.gmra.mrb[28].mxu1 %v1933_v22 }
  0x5e   :  { %925 = vperm.xlu1 %1893, %v671_v23   ;;  %920 = vperm.xlu0 %1892, %v670_v24  }
  0x62   :  { %935 = vperm.xlu1 %1893, %v673_v25   ;;  %930 = vperm.xlu0 %1892, %v672_v26  }
  0x66   :  { %945 = vperm.xlu1 %1893, %v675_v27   ;;  %940 = vperm.xlu0 %1892, %v674_v28  }
  0x6a   :  { %955 = vperm.xlu1 %1893, %v677_v29   ;;  %950 = vperm.xlu0 %1892, %v676_v30  }
  0x6e   :  { %965 = vperm.xlu1 %1893, %v679_v31   ;;  %960 = vperm.xlu0 %1892, %v678_v32  }
  0x72   :  { %975 = vperm.xlu1 %1893, %v681_v33   ;;  %970 = vperm.xlu0 %1892, %v680_v34  }
  0x76   :  { %985 = vperm.xlu1 %1893, %v683_v35   ;;  %980 = vperm.xlu0 %1892, %v682_v36  }
  0x7a   :  { %995 = vperm.xlu1 %1893, %v685_v37   ;;  %990 = vperm.xlu0 %1892, %v684_v38  }
  0x7e   :  { %1005 = vperm.xlu1 %1893, %v687_v39   ;;  %1000 = vperm.xlu0 %1892, %v686_v40  }
  0x81   :  { %v701_v41 = vpop.permute.xlu1 %700  ;;  %v691_v42 = vpop.permute.xlu0 %690 }
  0x85   :  { %v706_v43 = vpop.permute.xlu1 %705  ;;  %v696_v44 = vpop.permute.xlu0 %695 }
  0x89   :  { %v2267_v45 = vpop.permute.xlu1 %715  ;;  %v2269_v46 = vpop.permute.xlu0 %710 }
  0x8d   :  { %v2271_v47 = vpop.permute.xlu1 %725  ;;  %v2273_v48 = vpop.permute.xlu0 %720 }
  0x91   :  { %v2275_v49 = vpop.permute.xlu1 %735  ;;  %v2277_v50 = vpop.permute.xlu0 %730 }
  0x95   :  { %v2279_v51 = vpop.permute.xlu1 %745  ;;  %v2281_v52 = vpop.permute.xlu0 %740 }
  0x99   :  { %v2283_v53 = vpop.permute.xlu1 %755  ;;  %v2285_v54 = vpop.permute.xlu0 %750 }
  0x9d   :  { %v2287_v55 = vpop.permute.xlu1 %765  ;;  %v2289_v56 = vpop.permute.xlu0 %760 }
  0xa1   :  { %v2291_v57 = vpop.permute.xlu1 %775  ;;  %v2293_v58 = vpop.permute.xlu0 %770 }
  0xa5   :  { %v2295_v59 = vpop.permute.xlu1 %785  ;;  %v2297_v60 = vpop.permute.xlu0 %780 }
  0xa9   :  { %v2299_v61 = vpop.permute.xlu1 %795  ;;  %v2301_v62 = vpop.permute.xlu0 %790 }
  0xad   :  { %v2303_v63 = vpop.permute.xlu1 %805  ;;  %v2305_v0 = vpop.permute.xlu0 %800 }
  0xb1   :  { %v2307_v1 = vpop.permute.xlu1 %815  ;;  %v2309_v2 = vpop.permute.xlu0 %810 }
  0xb2   :  { %2505 = vst [vmem:[#allocation2_spill] sm:$0xff] %v2307_v1  ;;  %2506 = vst [vmem:[#allocation3_spill] sm:$0xff] %v2309_v2 }
  0xb5   :  { %v2311_v3 = vpop.permute.xlu1 %825  ;;  %v2313_v4 = vpop.permute.xlu0 %820 }
  0xb6   :  { %2507 = vst [vmem:[#allocation4_spill] sm:$0xff] %v2311_v3  ;;  %2508 = vst [vmem:[#allocation5_spill] sm:$0xff] %v2313_v4 }
  0xb9   :  { %v2315_v5 = vpop.permute.xlu1 %835  ;;  %v2317_v6 = vpop.permute.xlu0 %830 }
  0xba   :  { %2509 = vst [vmem:[#allocation6_spill] sm:$0xff] %v2315_v5  ;;  %2510 = vst [vmem:[#allocation7_spill] sm:$0xff] %v2317_v6 }
  0xbd   :  { %v2319_v7 = vpop.permute.xlu1 %845  ;;  %v2321_v8 = vpop.permute.xlu0 %840 }
  0xbe   :  { %2511 = vst [vmem:[#allocation8_spill] sm:$0xff] %v2319_v7  ;;  %2512 = vst [vmem:[#allocation9_spill] sm:$0xff] %v2321_v8 }
  0xc1   :  { %v856_v9 = vpop.permute.xlu1 %855  ;;  %v851_v10 = vpop.permute.xlu0 %850 }
  0xc5   :  { %v866_v11 = vpop.permute.xlu1 %865  ;;  %v861_v12 = vpop.permute.xlu0 %860 }
  0xc9   :  { %v876_v13 = vpop.permute.xlu1 %875  ;;  %v871_v14 = vpop.permute.xlu0 %870 }
  0xcd   :  { %v886_v15 = vpop.permute.xlu1 %885  ;;  %v881_v16 = vpop.permute.xlu0 %880 }
  0xd1   :  { %v2323_v17 = vpop.permute.xlu1 %895  ;;  %v2325_v18 = vpop.permute.xlu0 %890 }
  0xd5   :  { %v2327_v19 = vpop.permute.xlu1 %905  ;;  %v2329_v20 = vpop.permute.xlu0 %900 }
  0xd9   :  { %v2331_v21 = vpop.permute.xlu1 %915  ;;  %v2333_v22 = vpop.permute.xlu0 %910 }
  0xdd   :  { %v2335_v23 = vpop.permute.xlu1 %925  ;;  %v2337_v24 = vpop.permute.xlu0 %920 }
  0xe1   :  { %v2339_v25 = vpop.permute.xlu1 %935  ;;  %v2341_v26 = vpop.permute.xlu0 %930 }
  0xe5   :  { %v2343_v1 = vpop.permute.xlu1 %945  ;;  %v2345_v2 = vpop.permute.xlu0 %940 }
  0xf6   :  { %v1813_v27 = vpop.f32.mrb[0].mxu0  ;;  %v1845_v28 = vpop.f32.mrb[0].mxu1 }
  0xf7   :  { %v369_v29 = vpop.f32.mrb[1].mxu0  ;;  %v497_v30 = vpop.f32.mrb[1].mxu1  ;;  %v1010_v33 = vmul.f32 %v1813_v27, %v701_v41  ;;  %v1042_v34 = vmul.f32 %v1845_v28, %v861_v12 }
  0xf8   :  { %v1814_v31 = vpop.f32.mrb[2].mxu0  ;;  %v1846_v32 = vpop.f32.mrb[2].mxu1  ;;  %v1008_v39 = vmul.f32 %v691_v42, %v369_v29  ;;  %v1040_v40 = vmul.f32 %v851_v10, %v497_v30 }
  0xf9   :  { %v1011_v35 = vmul.f32 %v1814_v31, %v706_v43  ;;  %v1043_v36 = vmul.f32 %v1846_v32, %v866_v11  ;;  %v372_v37 = vpop.f32.mrb[3].mxu0  ;;  %v500_v38 = vpop.f32.mrb[3].mxu1 }
  0xfa   :  { %v1009_v5 = vmul.f32 %v696_v44, %v372_v37  ;;  %v1041_v6 = vmul.f32 %v856_v9, %v500_v38  ;;  %v2363_v32 = vpop.permute.xlu1 %955 }
  0xfb   :  { %v1572_v7 = vpack.c.bf16 %v1011_v35, %v1010_v33  ;;  %v1652_v8 = vpack.c.bf16 %v1043_v36, %v1042_v34  ;;  %v2365_v33 = vpop.permute.xlu0 %950 }
  0xfc   :  { %v1567_v3 = vpack.c.bf16 %v1009_v5, %v1008_v39  ;;  %v1647_v4 = vpack.c.bf16 %v1041_v6, %v1040_v40 }
  0xfd   :  { %1724 = vst [vmem:[%s2504_s3 + $0x8] sm:$0xff] %v1572_v7   ;;  %1740 = vst [vmem:[%s2504_s3 + $0x88] sm:$0xff] %v1652_v8  }
  0xfe   :  { %v1817_v41 = vpop.f32.mrb[4].mxu0  ;;  %v1849_v42 = vpop.f32.mrb[4].mxu1  ;;  %1568 = vst [vmem:[%s2504_s3] sm:$0xff] %v1567_v3   ;;  %1739 = vst [vmem:[%s2504_s3 + $0x80] sm:$0xff] %v1647_v4  }
  0xff   :  { %v1014_v43 = vmul.f32 %v1817_v41, %v2273_v48  ;;  %v385_v44 = vpop.f32.mrb[5].mxu0  ;;  %v513_v5 = vpop.f32.mrb[5].mxu1  ;;  %v1046_v9 = vmul.f32 %v1849_v42, %v881_v16 }
 0x100   :  { %v1818_v6 = vpop.f32.mrb[6].mxu0  ;;  %v1850_v7 = vpop.f32.mrb[6].mxu1  ;;  %v1012_v27 = vmul.f32 %v2269_v46, %v385_v44  ;;  %v1044_v28 = vmul.f32 %v871_v14, %v513_v5 }
 0x101   :  { %v1015_v10 = vmul.f32 %v1818_v6, %v2271_v47  ;;  %v1047_v8 = vmul.f32 %v1850_v7, %v886_v15  ;;  %v388_v11 = vpop.f32.mrb[7].mxu0  ;;  %v516_v12 = vpop.f32.mrb[7].mxu1 }
 0x102   :  { %v1013_v3 = vmul.f32 %v2267_v45, %v388_v11  ;;  %v1045_v29 = vmul.f32 %v876_v13, %v516_v12  ;;  %v2387_v6 = vpop.permute.xlu1 %965 }
 0x103   :  { %v1582_v30 = vpack.c.bf16 %v1015_v10, %v1014_v43  ;;  %v1662_v4 = vpack.c.bf16 %v1047_v8, %v1046_v9 }
 0x104   :  { %v1577_v31 = vpack.c.bf16 %v1013_v3, %v1012_v27  ;;  %v1657_v48 = vpack.c.bf16 %v1045_v29, %v1044_v28 }
 0x105   :  { %1726 = vst [vmem:[%s2504_s3 + $0x18] sm:$0xff] %v1582_v30   ;;  %1742 = vst [vmem:[%s2504_s3 + $0x98] sm:$0xff] %v1662_v4  }
 0x106   :  { %1725 = vst [vmem:[%s2504_s3 + $0x10] sm:$0xff] %v1577_v31   ;;  %1741 = vst [vmem:[%s2504_s3 + $0x90] sm:$0xff] %v1657_v48   ;;  %v1821_v45 = vpop.f32.mrb[8].mxu0  ;;  %v1853_v46 = vpop.f32.mrb[8].mxu1 }
 0x107   :  { %v1018_v47 = vmul.f32 %v1821_v45, %v2281_v52  ;;  %v401_v13 = vpop.f32.mrb[9].mxu0  ;;  %v529_v14 = vpop.f32.mrb[9].mxu1  ;;  %v1050_v34 = vmul.f32 %v1853_v46, %v2329_v20 }
 0x108   :  { %v1822_v15 = vpop.f32.mrb[10].mxu0  ;;  %v1854_v16 = vpop.f32.mrb[10].mxu1  ;;  %v1016_v39 = vmul.f32 %v2277_v50, %v401_v13  ;;  %v1048_v40 = vmul.f32 %v2325_v18, %v529_v14 }
 0x109   :  { %v1019_v35 = vmul.f32 %v1822_v15, %v2279_v51  ;;  %v1051_v36 = vmul.f32 %v1854_v16, %v2327_v19  ;;  %v404_v37 = vpop.f32.mrb[11].mxu0  ;;  %v532_v38 = vpop.f32.mrb[11].mxu1 }
 0x10a   :  { %v1017_v41 = vmul.f32 %v2275_v49, %v404_v37  ;;  %v1049_v52 = vmul.f32 %v2323_v17, %v532_v38  ;;  %v2389_v20 = vpop.permute.xlu0 %960  ;;  %v2411_v48 = vpop.permute.xlu1 %975 }
 0x10b   :  { %v1592_v42 = vpack.c.bf16 %v1019_v35, %v1018_v47  ;;  %v1672_v43 = vpack.c.bf16 %v1051_v36, %v1050_v34 }
 0x10c   :  { %v1587_v44 = vpack.c.bf16 %v1017_v41, %v1016_v39  ;;  %v1667_v5 = vpack.c.bf16 %v1049_v52, %v1048_v40 }
 0x10d   :  { %1728 = vst [vmem:[%s2504_s3 + $0x28] sm:$0xff] %v1592_v42   ;;  %1744 = vst [vmem:[%s2504_s3 + $0xa8] sm:$0xff] %v1672_v43  }
 0x10e   :  { %1727 = vst [vmem:[%s2504_s3 + $0x20] sm:$0xff] %v1587_v44   ;;  %1743 = vst [vmem:[%s2504_s3 + $0xa0] sm:$0xff] %v1667_v5   ;;  %v1825_v49 = vpop.f32.mrb[12].mxu0  ;;  %v1857_v50 = vpop.f32.mrb[12].mxu1 }
 0x10f   :  { %v1022_v51 = vmul.f32 %v1825_v49, %v2289_v56  ;;  %v417_v17 = vpop.f32.mrb[13].mxu0  ;;  %v545_v18 = vpop.f32.mrb[13].mxu1  ;;  %v1054_v9 = vmul.f32 %v1857_v50, %v2337_v24 }
 0x110   :  { %v1826_v19 = vpop.f32.mrb[14].mxu0  ;;  %v1858_v7 = vpop.f32.mrb[14].mxu1  ;;  %v1020_v27 = vmul.f32 %v2285_v54, %v417_v17  ;;  %v1052_v28 = vmul.f32 %v2333_v22, %v545_v18 }
 0x111   :  { %v1023_v10 = vmul.f32 %v1826_v19, %v2287_v55  ;;  %v1055_v8 = vmul.f32 %v1858_v7, %v2335_v23  ;;  %v420_v11 = vpop.f32.mrb[15].mxu0  ;;  %v548_v12 = vpop.f32.mrb[15].mxu1 }
 0x112   :  { %v1021_v3 = vmul.f32 %v2283_v53, %v420_v11  ;;  %v1053_v56 = vmul.f32 %v2331_v21, %v548_v12  ;;  %v2413_v24 = vpop.permute.xlu0 %970  ;;  %v986_v40 = vpop.permute.xlu1 %985  ;;  %v2514_v12 = vld [vmem:[#allocation4_spill] sm:$0xff] }
 0x113   :  { %v1602_v29 = vpack.c.bf16 %v1023_v10, %v1022_v51  ;;  %v1682_v30 = vpack.c.bf16 %v1055_v8, %v1054_v9 }
 0x114   :  { %v1597_v4 = vpack.c.bf16 %v1021_v3, %v1020_v27  ;;  %v1677_v31 = vpack.c.bf16 %v1053_v56, %v1052_v28 }
 0x115   :  { %1730 = vst [vmem:[%s2504_s3 + $0x38] sm:$0xff] %v1602_v29   ;;  %1746 = vst [vmem:[%s2504_s3 + $0xb8] sm:$0xff] %v1682_v30   ;;  %v2515_v29 = vld [vmem:[#allocation3_spill] sm:$0xff] }
 0x116   :  { %1729 = vst [vmem:[%s2504_s3 + $0x30] sm:$0xff] %v1597_v4   ;;  %1745 = vst [vmem:[%s2504_s3 + $0xb0] sm:$0xff] %v1677_v31   ;;  %v1829_v53 = vpop.f32.mrb[16].mxu0  ;;  %v1861_v54 = vpop.f32.mrb[16].mxu1  ;;  %v2516_v31 = vld [vmem:[#allocation2_spill] sm:$0xff] }
 0x117   :  { %v1026_v55 = vmul.f32 %v1829_v53, %v2297_v60  ;;  %v433_v21 = vpop.f32.mrb[17].mxu0  ;;  %v561_v22 = vpop.f32.mrb[17].mxu1  ;;  %v1058_v46 = vmul.f32 %v1861_v54, %v2345_v2 }
 0x118   :  { %v1830_v23 = vpop.f32.mrb[18].mxu0  ;;  %v1862_v45 = vpop.f32.mrb[18].mxu1  ;;  %v1024_v16 = vmul.f32 %v2293_v58, %v433_v21  ;;  %v1056_v34 = vmul.f32 %v2341_v26, %v561_v22 }
 0x119   :  { %v1027_v47 = vmul.f32 %v1830_v23, %v2295_v59  ;;  %v1059_v13 = vmul.f32 %v1862_v45, %v2343_v1  ;;  %v436_v14 = vpop.f32.mrb[19].mxu0  ;;  %v564_v15 = vpop.f32.mrb[19].mxu1 }
 0x11a   :  { %v1025_v35 = vmul.f32 %v2291_v57, %v436_v14  ;;  %v1057_v60 = vmul.f32 %v2339_v25, %v564_v15  ;;  %v981_v2 = vpop.permute.xlu0 %980  ;;  %v996_v9 = vpop.permute.xlu1 %995 }
 0x11b   :  { %v1612_v36 = vpack.c.bf16 %v1027_v47, %v1026_v55  ;;  %v1692_v37 = vpack.c.bf16 %v1059_v13, %v1058_v46  ;;  %v2517_v47 = vld [vmem:[#allocation9_spill] sm:$0xff] }
 0x11c   :  { %v1607_v38 = vpack.c.bf16 %v1025_v35, %v1024_v16  ;;  %v1687_v39 = vpack.c.bf16 %v1057_v60, %v1056_v34  ;;  %v2518_v60 = vld [vmem:[#allocation8_spill] sm:$0xff] }
 0x11d   :  { %1732 = vst [vmem:[%s2504_s3 + $0x48] sm:$0xff] %v1612_v36   ;;  %1748 = vst [vmem:[%s2504_s3 + $0xc8] sm:$0xff] %v1692_v37  }
 0x11e   :  { %1731 = vst [vmem:[%s2504_s3 + $0x40] sm:$0xff] %v1607_v38   ;;  %1747 = vst [vmem:[%s2504_s3 + $0xc0] sm:$0xff] %v1687_v39   ;;  %v1833_v57 = vpop.f32.mrb[20].mxu0  ;;  %v1865_v58 = vpop.f32.mrb[20].mxu1 }
 0x11f   :  { %v1030_v59 = vmul.f32 %v1833_v57, %v2305_v0  ;;  %v449_v1 = vpop.f32.mrb[21].mxu0  ;;  %v577_v25 = vpop.f32.mrb[21].mxu1  ;;  %v1062_v52 = vmul.f32 %v1865_v58, %v2389_v20  ;;  %v2520_v58 = vld [vmem:[#allocation6_spill] sm:$0xff] }
 0x120   :  { %v1834_v26 = vpop.f32.mrb[22].mxu0  ;;  %v1866_v41 = vpop.f32.mrb[22].mxu1  ;;  %v1028_v49 = vmul.f32 %v2301_v62, %v449_v1  ;;  %v1060_v50 = vmul.f32 %v2365_v33, %v577_v25 }
 0x121   :  { %v1031_v42 = vmul.f32 %v1834_v26, %v2303_v63  ;;  %v1063_v43 = vmul.f32 %v1866_v41, %v2387_v6  ;;  %v452_v44 = vpop.f32.mrb[23].mxu0  ;;  %v580_v5 = vpop.f32.mrb[23].mxu1  ;;  %v2513_v63 = vld [vmem:[#allocation5_spill] sm:$0xff] }
 0x122   :  { %v1029_v51 = vmul.f32 %v2299_v61, %v452_v44  ;;  %v1061_v0 = vmul.f32 %v2363_v32, %v580_v5  ;;  %v991_v20 = vpop.permute.xlu0 %990  ;;  %v1006_v45 = vpop.permute.xlu1 %1005 }
 0x123   :  { %v1622_v17 = vpack.c.bf16 %v1031_v42, %v1030_v59  ;;  %v1702_v18 = vpack.c.bf16 %v1063_v43, %v1062_v52 }
 0x124   :  { %v1617_v19 = vpack.c.bf16 %v1029_v51, %v1028_v49  ;;  %v1697_v7 = vpack.c.bf16 %v1061_v0, %v1060_v50 }
 0x125   :  { %1734 = vst [vmem:[%s2504_s3 + $0x58] sm:$0xff] %v1622_v17   ;;  %1750 = vst [vmem:[%s2504_s3 + $0xd8] sm:$0xff] %v1702_v18  }
 0x126   :  { %1733 = vst [vmem:[%s2504_s3 + $0x50] sm:$0xff] %v1617_v19   ;;  %1749 = vst [vmem:[%s2504_s3 + $0xd0] sm:$0xff] %v1697_v7   ;;  %v1837_v61 = vpop.f32.mrb[24].mxu0  ;;  %v1869_v62 = vpop.f32.mrb[24].mxu1 }
 0x127   :  { %v1034_v32 = vmul.f32 %v1837_v61, %v2513_v63  ;;  %v465_v33 = vpop.f32.mrb[25].mxu0  ;;  %v593_v6 = vpop.f32.mrb[25].mxu1  ;;  %v1066_v11 = vmul.f32 %v1869_v62, %v981_v2 }
 0x128   :  { %v1838_v10 = vpop.f32.mrb[26].mxu0  ;;  %v1870_v8 = vpop.f32.mrb[26].mxu1  ;;  %v1032_v30 = vmul.f32 %v2515_v29, %v465_v33  ;;  %v1064_v4 = vmul.f32 %v2413_v24, %v593_v6 }
 0x129   :  { %v1035_v27 = vmul.f32 %v1838_v10, %v2514_v12  ;;  %v1067_v28 = vmul.f32 %v1870_v8, %v986_v40  ;;  %v468_v3 = vpop.f32.mrb[27].mxu0  ;;  %v596_v56 = vpop.f32.mrb[27].mxu1  ;;  %v2519_v40 = vld [vmem:[#allocation7_spill] sm:$0xff] }
 0x12a   :  { %v1033_v53 = vmul.f32 %v2516_v31, %v468_v3  ;;  %v1065_v54 = vmul.f32 %v2411_v48, %v596_v56  ;;  %v1001_v46 = vpop.permute.xlu0 %1000 }
 0x12b   :  { %v1632_v55 = vpack.c.bf16 %v1035_v27, %v1034_v32  ;;  %v1712_v21 = vpack.c.bf16 %v1067_v28, %v1066_v11 }
 0x12c   :  { %v1627_v22 = vpack.c.bf16 %v1033_v53, %v1032_v30  ;;  %v1707_v23 = vpack.c.bf16 %v1065_v54, %v1064_v4 }
 0x12d   :  { %1736 = vst [vmem:[%s2504_s3 + $0x68] sm:$0xff] %v1632_v55   ;;  %1752 = vst [vmem:[%s2504_s3 + $0xe8] sm:$0xff] %v1712_v21  }
 0x12e   :  { %1735 = vst [vmem:[%s2504_s3 + $0x60] sm:$0xff] %v1627_v22   ;;  %1751 = vst [vmem:[%s2504_s3 + $0xe0] sm:$0xff] %v1707_v23   ;;  %v1841_v48 = vpop.f32.mrb[28].mxu0  ;;  %v1873_v24 = vpop.f32.mrb[28].mxu1 }
 0x12f   :  { %v1038_v13 = vmul.f32 %v1841_v48, %v2517_v47  ;;  %v481_v14 = vpop.f32.mrb[29].mxu0  ;;  %v609_v15 = vpop.f32.mrb[29].mxu1  ;;  %v1070_v35 = vmul.f32 %v1873_v24, %v1001_v46 }
 0x130   :  { %v1842_v16 = vpop.f32.mrb[30].mxu0  ;;  %v1874_v34 = vpop.f32.mrb[30].mxu1  ;;  %v1036_v2 = vmul.f32 %v2519_v40, %v481_v14  ;;  %v1068_v57 = vmul.f32 %v991_v20, %v609_v15 }
 0x131   :  { %v1039_v36 = vmul.f32 %v1842_v16, %v2518_v60  ;;  %v1071_v37 = vmul.f32 %v1874_v34, %v1006_v45  ;;  %v484_v38 = vpop.f32.mrb[31].mxu0  ;;  %v612_v39 = vpop.f32.mrb[31].mxu1 }
 0x132   :  { %v1037_v59 = vmul.f32 %v2520_v58, %v484_v38  ;;  %v1069_v1 = vmul.f32 %v996_v9, %v612_v39 }
 0x133   :  { %v1642_v25 = vpack.c.bf16 %v1039_v36, %v1038_v13  ;;  %v1722_v26 = vpack.c.bf16 %v1071_v37, %v1070_v35 }
 0x134   :  { %v1637_v41 = vpack.c.bf16 %v1037_v59, %v1036_v2  ;;  %v1717_v52 = vpack.c.bf16 %v1069_v1, %v1068_v57 }
 0x135   :  { %1738 = vst [vmem:[%s2504_s3 + $0x78] sm:$0xff] %v1642_v25   ;;  %1754 = vst [vmem:[%s2504_s3 + $0xf8] sm:$0xff] %v1722_v26  }
 0x136   :  { %1737 = vst [vmem:[%s2504_s3 + $0x70] sm:$0xff] %v1637_v41   ;;  %1753 = vst [vmem:[%s2504_s3 + $0xf0] sm:$0xff] %v1717_v52  }

// kernel: gcn_forward.4
= control target key start
LH: loop header
LB: loop body
LE: loop exit
PB: predicated region body
PF: predicated region fallthrough
CT: control target
= control target key end

     0   :  { %vm337_vm0 = vcmask 1043456   ;;  %v1923_v0 = vmov 0   ;;  %vm240_vm1 = vcmask 64512   ;;  %s2498_s2 = inlined_call_operand.vmem [shape: f32[512,1], index: 2, kind: input, shape index: {}]   ;;  %s2499_s1 = inlined_call_operand.vmem [shape: bf16[8,128], index: 1, kind: input, shape index: {}]   ;;  %s2500_s0 = inlined_call_operand.vmem [shape: bf16[512,8], index: 0, kind: input, shape index: {}]   ;;  %s2501_s3 = inlined_call_operand.vmem [shape: bf16[512,128], index: 3, kind: output, shape index: {}]  }
   0x1   :  { %1890 = vset.pattern.permute.xlu1 %v1923_v0  ;;  %1889 = vset.pattern.permute.xlu0 %v1923_v0  ;;  %v632_v1 = vld [vmem:[%s2498_s2 + $0x10] sm:$0xff]  ;;  %v630_v2 = vld [vmem:[%s2498_s2] sm:$0xff]  ;;  %v633_v7 = vld [vmem:[%s2498_s2 + $0x18] sm:$0xff] }
   0x2   :  { %v79_v3 = vld [vmem:[%s2499_s1] sm:$0xf]  ;;  %706 = vperm.xlu1 %1890, %v632_v1   ;;  %696 = vperm.xlu0 %1889, %v630_v2   ;;  %v631_v8 = vld [vmem:[%s2498_s2 + $0x8] sm:$0xff]  ;;  %v1895_v13 = vld [vmem:[%s2500_s0 + $0x10] sm:$0xff]  }
   0x3   :  { %v339_v4 = vsel %vm337_vm0, %v79_v3, 0  ;;  %v1891_v5 = vld [vmem:[%s2500_s0] sm:$0xff]   ;;  %1886 = vmatprep.subr.msk.bf16.mxu0 %vm337_vm0, %v79_v3  ;;  %1887 = vmatprep.subr.msk.bf16.mxu1 %vm337_vm0, %v79_v3  ;;  %v1893_v9 = vld [vmem:[%s2500_s0 + $0x8] sm:$0xff]   ;;  %v1896_v14 = vld [vmem:[%s2500_s0 + $0x90] sm:$0xff]  }
   0x4   :  { %v1892_v6 = vld [vmem:[%s2500_s0 + $0x80] sm:$0xff]   ;;  %1819 = vmatpush3.bf16.msra.mxu0 %v339_v4  ;;  %1885 = vmatpush3.bf16.msra.mxu1 %v339_v4  ;;  %v1894_v10 = vld [vmem:[%s2500_s0 + $0x88] sm:$0xff]   ;;  %v637_v15 = vld [vmem:[%s2498_s2 + $0x38] sm:$0xff] }
   0x5   :  { %1820 = vmatprep.mubr.msk.bf16.mxu0 %vm240_vm1, %v1891_v5  ;;  %1852 = vmatprep.mubr.msk.bf16.mxu1 %vm240_vm1, %v1892_v6  ;;  %v635_v11 = vld [vmem:[%s2498_s2 + $0x28] sm:$0xff]  ;;  %v634_v12 = vld [vmem:[%s2498_s2 + $0x20] sm:$0xff]  ;;  %v636_v16 = vld [vmem:[%s2498_s2 + $0x30] sm:$0xff] }
   0x6   :  { %711 = vperm.xlu1 %1890, %v633_v7   ;;  %701 = vperm.xlu0 %1889, %v631_v8   ;;  %v1897_v17 = vld [vmem:[%s2500_s0 + $0x18] sm:$0xff]   ;;  %v1899_v19 = vld [vmem:[%s2500_s0 + $0x20] sm:$0xff]   ;;  %v639_v20 = vld [vmem:[%s2498_s2 + $0x48] sm:$0xff] }
   0x7   :  { %1821 = vmatmul.mubr.msk.bf16.vlgmr.msra.gmra.mrb[0].mxu0 %vm240_vm1, %v1893_v9  ;;  %1853 = vmatmul.mubr.msk.bf16.vlgmr.msra.gmra.mrb[0].mxu1 %vm240_vm1, %v1894_v10  ;;  %v1898_v18 = vld [vmem:[%s2500_s0 + $0x98] sm:$0xff]   ;;  %v1900_v21 = vld [vmem:[%s2500_s0 + $0xa0] sm:$0xff]   ;;  %v640_v24 = vld [vmem:[%s2498_s2 + $0x50] sm:$0xff] }
   0x8   :  { %1824 = vmatprep.mubr.msk.bf16.mxu0 %vm240_vm1, %v1895_v13  ;;  %1856 = vmatprep.mubr.msk.bf16.mxu1 %vm240_vm1, %v1896_v14  ;;  %v638_v22 = vld [vmem:[%s2498_s2 + $0x40] sm:$0xff]  ;;  %v641_v23 = vld [vmem:[%s2498_s2 + $0x58] sm:$0xff]  ;;  %v1901_v25 = vld [vmem:[%s2500_s0 + $0x28] sm:$0xff]  }
   0x9   :  { %v1902_v26 = vld [vmem:[%s2500_s0 + $0xa8] sm:$0xff]   ;;  %v1903_v27 = vld [vmem:[%s2500_s0 + $0x30] sm:$0xff]   ;;  %v642_v30 = vld [vmem:[%s2498_s2 + $0x60] sm:$0xff] }
   0xa   :  { %721 = vperm.xlu1 %1890, %v635_v11   ;;  %716 = vperm.xlu0 %1889, %v634_v12   ;;  %v1904_v28 = vld [vmem:[%s2500_s0 + $0xb0] sm:$0xff]   ;;  %v643_v29 = vld [vmem:[%s2498_s2 + $0x68] sm:$0xff]  ;;  %v645_v31 = vld [vmem:[%s2498_s2 + $0x78] sm:$0xff] }
   0xb   :  { %v644_v32 = vld [vmem:[%s2498_s2 + $0x70] sm:$0xff]  ;;  %v1905_v33 = vld [vmem:[%s2500_s0 + $0x38] sm:$0xff]   ;;  %v1907_v35 = vld [vmem:[%s2500_s0 + $0x40] sm:$0xff]  }
   0xc   :  { %v1906_v34 = vld [vmem:[%s2500_s0 + $0xb8] sm:$0xff]   ;;  %v1908_v36 = vld [vmem:[%s2500_s0 + $0xc0] sm:$0xff]   ;;  %v647_v37 = vld [vmem:[%s2498_s2 + $0x88] sm:$0xff] }
   0xd   :  { %v646_v38 = vld [vmem:[%s2498_s2 + $0x80] sm:$0xff]  ;;  %v649_v39 = vld [vmem:[%s2498_s2 + $0x98] sm:$0xff]  ;;  %v648_v40 = vld [vmem:[%s2498_s2 + $0x90] sm:$0xff] }
   0xe   :  { %731 = vperm.xlu1 %1890, %v637_v15   ;;  %726 = vperm.xlu0 %1889, %v636_v16   ;;  %v1909_v41 = vld [vmem:[%s2500_s0 + $0x48] sm:$0xff]   ;;  %v1911_v43 = vld [vmem:[%s2500_s0 + $0x50] sm:$0xff]   ;;  %v650_v46 = vld [vmem:[%s2498_s2 + $0xa0] sm:$0xff] }
   0xf   :  { %1825 = vmatmul.mubr.msk.bf16.gmra.mrb[4].mxu0 %vm240_vm1, %v1897_v17  ;;  %1857 = vmatmul.mubr.msk.bf16.gmra.mrb[4].mxu1 %vm240_vm1, %v1898_v18  ;;  %v1910_v42 = vld [vmem:[%s2500_s0 + $0xc8] sm:$0xff]   ;;  %v1912_v44 = vld [vmem:[%s2500_s0 + $0xd0] sm:$0xff]   ;;  %v653_v47 = vld [vmem:[%s2498_s2 + $0xb8] sm:$0xff] }
  0x10   :  { %1828 = vmatprep.mubr.msk.bf16.mxu0 %vm240_vm1, %v1899_v19  ;;  %1860 = vmatprep.mubr.msk.bf16.mxu1 %vm240_vm1, %v1900_v21  ;;  %v651_v45 = vld [vmem:[%s2498_s2 + $0xa8] sm:$0xff]  ;;  %v652_v48 = vld [vmem:[%s2498_s2 + $0xb0] sm:$0xff]  ;;  %v1913_v49 = vld [vmem:[%s2500_s0 + $0x58] sm:$0xff]  }
  0x11   :  { %v1914_v50 = vld [vmem:[%s2500_s0 + $0xd8] sm:$0xff]   ;;  %v1915_v51 = vld [vmem:[%s2500_s0 + $0x60] sm:$0xff]   ;;  %v655_v53 = vld [vmem:[%s2498_s2 + $0xc8] sm:$0xff] }
  0x12   :  { %741 = vperm.xlu1 %1890, %v639_v20   ;;  %736 = vperm.xlu0 %1889, %v638_v22   ;;  %v1916_v52 = vld [vmem:[%s2500_s0 + $0xe0] sm:$0xff]   ;;  %v657_v55 = vld [vmem:[%s2498_s2 + $0xd8] sm:$0xff]  ;;  %v656_v56 = vld [vmem:[%s2498_s2 + $0xd0] sm:$0xff] }
  0x13   :  { %v654_v54 = vld [vmem:[%s2498_s2 + $0xc0] sm:$0xff]  ;;  %v1917_v57 = vld [vmem:[%s2500_s0 + $0x68] sm:$0xff]   ;;  %v1919_v59 = vld [vmem:[%s2500_s0 + $0x70] sm:$0xff]  }
  0x14   :  { %v1918_v58 = vld [vmem:[%s2500_s0 + $0xe8] sm:$0xff]   ;;  %v1920_v60 = vld [vmem:[%s2500_s0 + $0xf0] sm:$0xff]   ;;  %v658_v62 = vld [vmem:[%s2498_s2 + $0xe0] sm:$0xff] }
  0x15   :  { %v659_v61 = vld [vmem:[%s2498_s2 + $0xe8] sm:$0xff]  ;;  %v661_v63 = vld [vmem:[%s2498_s2 + $0xf8] sm:$0xff]  ;;  %v660_v0 = vld [vmem:[%s2498_s2 + $0xf0] sm:$0xff] }
  0x16   :  { %751 = vperm.xlu1 %1890, %v641_v23   ;;  %746 = vperm.xlu0 %1889, %v640_v24   ;;  %v1921_v1 = vld [vmem:[%s2500_s0 + $0x78] sm:$0xff]   ;;  %v663_v3 = vld [vmem:[%s2498_s2 + $0x108] sm:$0xff]  ;;  %v662_v4 = vld [vmem:[%s2498_s2 + $0x100] sm:$0xff] }
  0x17   :  { %1829 = vmatmul.mubr.msk.bf16.gmra.mrb[8].mxu0 %vm240_vm1, %v1901_v25  ;;  %1861 = vmatmul.mubr.msk.bf16.gmra.mrb[8].mxu1 %vm240_vm1, %v1902_v26  ;;  %v1922_v2 = vld [vmem:[%s2500_s0 + $0xf8] sm:$0xff]   ;;  %v664_v6 = vld [vmem:[%s2498_s2 + $0x110] sm:$0xff]  ;;  %v667_v7 = vld [vmem:[%s2498_s2 + $0x128] sm:$0xff] }
  0x18   :  { %1832 = vmatprep.mubr.msk.bf16.mxu0 %vm240_vm1, %v1903_v27  ;;  %1864 = vmatprep.mubr.msk.bf16.mxu1 %vm240_vm1, %v1904_v28  ;;  %v665_v5 = vld [vmem:[%s2498_s2 + $0x118] sm:$0xff]  ;;  %v666_v8 = vld [vmem:[%s2498_s2 + $0x120] sm:$0xff]  ;;  %v668_v10 = vld [vmem:[%s2498_s2 + $0x130] sm:$0xff] }
  0x19   :  { %v669_v9 = vld [vmem:[%s2498_s2 + $0x138] sm:$0xff]  ;;  %v671_v11 = vld [vmem:[%s2498_s2 + $0x148] sm:$0xff]  ;;  %v670_v12 = vld [vmem:[%s2498_s2 + $0x140] sm:$0xff] }
  0x1a   :  { %761 = vperm.xlu1 %1890, %v643_v29   ;;  %756 = vperm.xlu0 %1889, %v642_v30   ;;  %v673_v13 = vld [vmem:[%s2498_s2 + $0x158] sm:$0xff]  ;;  %v672_v14 = vld [vmem:[%s2498_s2 + $0x150] sm:$0xff]  ;;  %v675_v15 = vld [vmem:[%s2498_s2 + $0x168] sm:$0xff] }
  0x1b   :  { %v674_v16 = vld [vmem:[%s2498_s2 + $0x160] sm:$0xff]  ;;  %v677_v17 = vld [vmem:[%s2498_s2 + $0x178] sm:$0xff]  ;;  %v676_v18 = vld [vmem:[%s2498_s2 + $0x170] sm:$0xff] }
  0x1c   :  { %v679_v19 = vld [vmem:[%s2498_s2 + $0x188] sm:$0xff]  ;;  %v678_v20 = vld [vmem:[%s2498_s2 + $0x180] sm:$0xff]  ;;  %v681_v21 = vld [vmem:[%s2498_s2 + $0x198] sm:$0xff] }
  0x1d   :  { %v680_v22 = vld [vmem:[%s2498_s2 + $0x190] sm:$0xff]  ;;  %v683_v23 = vld [vmem:[%s2498_s2 + $0x1a8] sm:$0xff]  ;;  %v682_v24 = vld [vmem:[%s2498_s2 + $0x1a0] sm:$0xff] }
  0x1e   :  { %771 = vperm.xlu1 %1890, %v645_v31   ;;  %766 = vperm.xlu0 %1889, %v644_v32   ;;  %v685_v25 = vld [vmem:[%s2498_s2 + $0x1b8] sm:$0xff]  ;;  %v684_v26 = vld [vmem:[%s2498_s2 + $0x1b0] sm:$0xff]  ;;  %v687_v27 = vld [vmem:[%s2498_s2 + $0x1c8] sm:$0xff] }
  0x1f   :  { %1833 = vmatmul.mubr.msk.bf16.gmra.mrb[12].mxu0 %vm240_vm1, %v1905_v33  ;;  %1865 = vmatmul.mubr.msk.bf16.gmra.mrb[12].mxu1 %vm240_vm1, %v1906_v34  ;;  %v686_v28 = vld [vmem:[%s2498_s2 + $0x1c0] sm:$0xff]  ;;  %v689_v29 = vld [vmem:[%s2498_s2 + $0x1d8] sm:$0xff]  ;;  %v688_v30 = vld [vmem:[%s2498_s2 + $0x1d0] sm:$0xff] }
  0x20   :  { %1836 = vmatprep.mubr.msk.bf16.mxu0 %vm240_vm1, %v1907_v35  ;;  %1868 = vmatprep.mubr.msk.bf16.mxu1 %vm240_vm1, %v1908_v36  ;;  %v691_v31 = vld [vmem:[%s2498_s2 + $0x1e8] sm:$0xff]  ;;  %v690_v32 = vld [vmem:[%s2498_s2 + $0x1e0] sm:$0xff]  ;;  %v693_v33 = vld [vmem:[%s2498_s2 + $0x1f8] sm:$0xff] }
  0x21   :  { %v692_v34 = vld [vmem:[%s2498_s2 + $0x1f0] sm:$0xff] }
  0x22   :  { %781 = vperm.xlu1 %1890, %v647_v37   ;;  %776 = vperm.xlu0 %1889, %v646_v38  }
  0x26   :  { %791 = vperm.xlu1 %1890, %v649_v39   ;;  %786 = vperm.xlu0 %1889, %v648_v40  }
  0x27   :  { %1837 = vmatmul.mubr.msk.bf16.gmra.mrb[16].mxu0 %vm240_vm1, %v1909_v41  ;;  %1869 = vmatmul.mubr.msk.bf16.gmra.mrb[16].mxu1 %vm240_vm1, %v1910_v42 }
  0x28   :  { %1840 = vmatprep.mubr.msk.bf16.mxu0 %vm240_vm1, %v1911_v43  ;;  %1872 = vmatprep.mubr.msk.bf16.mxu1 %vm240_vm1, %v1912_v44 }
  0x2a   :  { %801 = vperm.xlu1 %1890, %v651_v45   ;;  %796 = vperm.xlu0 %1889, %v650_v46  }
  0x2e   :  { %811 = vperm.xlu1 %1890, %v653_v47   ;;  %806 = vperm.xlu0 %1889, %v652_v48  }
  0x2f   :  { %1841 = vmatmul.mubr.msk.bf16.gmra.mrb[20].mxu0 %vm240_vm1, %v1913_v49  ;;  %1873 = vmatmul.mubr.msk.bf16.gmra.mrb[20].mxu1 %vm240_vm1, %v1914_v50 }
  0x30   :  { %1844 = vmatprep.mubr.msk.bf16.mxu0 %vm240_vm1, %v1915_v51  ;;  %1876 = vmatprep.mubr.msk.bf16.mxu1 %vm240_vm1, %v1916_v52 }
  0x32   :  { %821 = vperm.xlu1 %1890, %v655_v53   ;;  %816 = vperm.xlu0 %1889, %v654_v54  }
  0x36   :  { %831 = vperm.xlu1 %1890, %v657_v55   ;;  %826 = vperm.xlu0 %1889, %v656_v56  }
  0x37   :  { %1845 = vmatmul.mubr.msk.bf16.gmra.mrb[24].mxu0 %vm240_vm1, %v1917_v57  ;;  %1877 = vmatmul.mubr.msk.bf16.gmra.mrb[24].mxu1 %vm240_vm1, %v1918_v58 }
  0x38   :  { %1848 = vmatprep.mubr.msk.bf16.mxu0 %vm240_vm1, %v1919_v59  ;;  %1880 = vmatprep.mubr.msk.bf16.mxu1 %vm240_vm1, %v1920_v60 }
  0x3a   :  { %841 = vperm.xlu1 %1890, %v659_v61   ;;  %836 = vperm.xlu0 %1889, %v658_v62  }
  0x3e   :  { %851 = vperm.xlu1 %1890, %v661_v63   ;;  %846 = vperm.xlu0 %1889, %v660_v0  }
  0x3f   :  { %1849 = vmatmul.mubr.msk.bf16.gmra.mrb[28].mxu0 %vm240_vm1, %v1921_v1  ;;  %1881 = vmatmul.mubr.msk.bf16.gmra.mrb[28].mxu1 %vm240_vm1, %v1922_v2 }
  0x42   :  { %861 = vperm.xlu1 %1890, %v663_v3   ;;  %856 = vperm.xlu0 %1889, %v662_v4  }
  0x46   :  { %871 = vperm.xlu1 %1890, %v665_v5   ;;  %866 = vperm.xlu0 %1889, %v664_v6  }
  0x4a   :  { %881 = vperm.xlu1 %1890, %v667_v7   ;;  %876 = vperm.xlu0 %1889, %v666_v8  }
  0x4e   :  { %891 = vperm.xlu1 %1890, %v669_v9   ;;  %886 = vperm.xlu0 %1889, %v668_v10  }
  0x52   :  { %901 = vperm.xlu1 %1890, %v671_v11   ;;  %896 = vperm.xlu0 %1889, %v670_v12  }
  0x56   :  { %911 = vperm.xlu1 %1890, %v673_v13   ;;  %906 = vperm.xlu0 %1889, %v672_v14  }
  0x5a   :  { %921 = vperm.xlu1 %1890, %v675_v15   ;;  %916 = vperm.xlu0 %1889, %v674_v16  }
  0x5e   :  { %931 = vperm.xlu1 %1890, %v677_v17   ;;  %926 = vperm.xlu0 %1889, %v676_v18  }
  0x62   :  { %941 = vperm.xlu1 %1890, %v679_v19   ;;  %936 = vperm.xlu0 %1889, %v678_v20  }
  0x66   :  { %951 = vperm.xlu1 %1890, %v681_v21   ;;  %946 = vperm.xlu0 %1889, %v680_v22  }
  0x6a   :  { %961 = vperm.xlu1 %1890, %v683_v23   ;;  %956 = vperm.xlu0 %1889, %v682_v24  }
  0x6e   :  { %971 = vperm.xlu1 %1890, %v685_v25   ;;  %966 = vperm.xlu0 %1889, %v684_v26  }
  0x72   :  { %981 = vperm.xlu1 %1890, %v687_v27   ;;  %976 = vperm.xlu0 %1889, %v686_v28  }
  0x76   :  { %991 = vperm.xlu1 %1890, %v689_v29   ;;  %986 = vperm.xlu0 %1889, %v688_v30  }
  0x7a   :  { %1001 = vperm.xlu1 %1890, %v691_v31   ;;  %996 = vperm.xlu0 %1889, %v690_v32  }
  0x7e   :  { %1011 = vperm.xlu1 %1890, %v693_v33   ;;  %1006 = vperm.xlu0 %1889, %v692_v34  }
  0x81   :  { %v707_v35 = vpop.permute.xlu1 %706  ;;  %v697_v36 = vpop.permute.xlu0 %696 }
  0x85   :  { %v712_v37 = vpop.permute.xlu1 %711  ;;  %v702_v38 = vpop.permute.xlu0 %701 }
  0x89   :  { %v2267_v39 = vpop.permute.xlu1 %721  ;;  %v2269_v40 = vpop.permute.xlu0 %716 }
  0x8d   :  { %v2271_v41 = vpop.permute.xlu1 %731  ;;  %v2273_v42 = vpop.permute.xlu0 %726 }
  0x91   :  { %v2275_v43 = vpop.permute.xlu1 %741  ;;  %v2277_v44 = vpop.permute.xlu0 %736 }
  0x95   :  { %v2279_v45 = vpop.permute.xlu1 %751  ;;  %v2281_v46 = vpop.permute.xlu0 %746 }
  0x99   :  { %v2283_v47 = vpop.permute.xlu1 %761  ;;  %v2285_v48 = vpop.permute.xlu0 %756 }
  0x9d   :  { %v2287_v49 = vpop.permute.xlu1 %771  ;;  %v2289_v50 = vpop.permute.xlu0 %766 }
  0xa1   :  { %v2291_v51 = vpop.permute.xlu1 %781  ;;  %v2293_v52 = vpop.permute.xlu0 %776 }
  0xa5   :  { %v2295_v53 = vpop.permute.xlu1 %791  ;;  %v2297_v54 = vpop.permute.xlu0 %786 }
  0xa9   :  { %v2299_v55 = vpop.permute.xlu1 %801  ;;  %v2301_v56 = vpop.permute.xlu0 %796 }
  0xad   :  { %v2303_v57 = vpop.permute.xlu1 %811  ;;  %v2305_v58 = vpop.permute.xlu0 %806 }
  0xb1   :  { %v2307_v59 = vpop.permute.xlu1 %821  ;;  %v2309_v60 = vpop.permute.xlu0 %816 }
  0xb5   :  { %v2311_v61 = vpop.permute.xlu1 %831  ;;  %v2313_v62 = vpop.permute.xlu0 %826 }
  0xb9   :  { %v2315_v63 = vpop.permute.xlu1 %841  ;;  %v2317_v0 = vpop.permute.xlu0 %836 }
  0xba   :  { %2502 = vst [vmem:[#allocation2_spill] sm:$0xff] %v2315_v63 }
  0xbd   :  { %v2319_v1 = vpop.permute.xlu1 %851  ;;  %v2321_v2 = vpop.permute.xlu0 %846 }
  0xc1   :  { %v862_v3 = vpop.permute.xlu1 %861  ;;  %v857_v4 = vpop.permute.xlu0 %856 }
  0xc5   :  { %v872_v5 = vpop.permute.xlu1 %871  ;;  %v867_v6 = vpop.permute.xlu0 %866 }
  0xc9   :  { %v882_v7 = vpop.permute.xlu1 %881  ;;  %v877_v8 = vpop.permute.xlu0 %876 }
  0xcd   :  { %v892_v9 = vpop.permute.xlu1 %891  ;;  %v887_v10 = vpop.permute.xlu0 %886 }
  0xd1   :  { %v2323_v11 = vpop.permute.xlu1 %901  ;;  %v2325_v12 = vpop.permute.xlu0 %896 }
  0xd5   :  { %v2327_v13 = vpop.permute.xlu1 %911  ;;  %v2329_v14 = vpop.permute.xlu0 %906 }
  0xd9   :  { %v2331_v15 = vpop.permute.xlu1 %921  ;;  %v2333_v16 = vpop.permute.xlu0 %916 }
  0xda   :  { %v1822_v17 = vpop.f32.mrb[0].mxu0  ;;  %v1854_v19 = vpop.f32.mrb[0].mxu1 }
  0xdb   :  { %v1016_v18 = vmul.f32 %v1822_v17, %v707_v35  ;;  %v375_v20 = vpop.f32.mrb[1].mxu0  ;;  %v503_v21 = vpop.f32.mrb[1].mxu1  ;;  %v1048_v26 = vmul.f32 %v1854_v19, %v867_v6 }
  0xdc   :  { %v1823_v22 = vpop.f32.mrb[2].mxu0  ;;  %v1855_v24 = vpop.f32.mrb[2].mxu1  ;;  %v1014_v27 = vmul.f32 %v697_v36, %v375_v20  ;;  %v1046_v32 = vmul.f32 %v857_v4, %v503_v21 }
  0xdd   :  { %v1017_v23 = vmul.f32 %v1823_v22, %v712_v37  ;;  %v378_v25 = vpop.f32.mrb[3].mxu0  ;;  %v1049_v28 = vmul.f32 %v1855_v24, %v872_v5  ;;  %v506_v30 = vpop.f32.mrb[3].mxu1 }
  0xde   :  { %v1015_v29 = vmul.f32 %v702_v38, %v378_v25  ;;  %v2335_v31 = vpop.permute.xlu1 %931  ;;  %v1047_v34 = vmul.f32 %v862_v3, %v506_v30  ;;  %v2337_v63 = vpop.permute.xlu0 %926 }
  0xdf   :  { %v1602_v33 = vpack.c.bf16 %v1017_v23, %v1016_v18  ;;  %v1682_v35 = vpack.c.bf16 %v1049_v28, %v1048_v26 }
  0xe0   :  { %v1597_v17 = vpack.c.bf16 %v1015_v29, %v1014_v27  ;;  %v1677_v37 = vpack.c.bf16 %v1047_v34, %v1046_v32 }
  0xe1   :  { %1754 = vst [vmem:[%s2501_s3 + $0x8] sm:$0xff] %v1602_v33   ;;  %1770 = vst [vmem:[%s2501_s3 + $0x88] sm:$0xff] %v1682_v35  }
  0xe2   :  { %1598 = vst [vmem:[%s2501_s3] sm:$0xff] %v1597_v17   ;;  %v2348_v36 = vpop.permute.xlu1 %941  ;;  %v1826_v38 = vpop.f32.mrb[4].mxu0  ;;  %1769 = vst [vmem:[%s2501_s3 + $0x80] sm:$0xff] %v1677_v37  }
  0xe3   :  { %v2353_v3 = vpop.permute.xlu0 %936  ;;  %v1020_v4 = vmul.f32 %v1826_v38, %v2273_v42  ;;  %v1858_v5 = vpop.f32.mrb[4].mxu1 }
  0xe4   :  { %v391_v6 = vpop.f32.mrb[5].mxu0  ;;  %v519_v18 = vpop.f32.mrb[5].mxu1  ;;  %v1052_v21 = vmul.f32 %v1858_v5, %v887_v10 }
  0xe5   :  { %v1827_v19 = vpop.f32.mrb[6].mxu0  ;;  %v1859_v20 = vpop.f32.mrb[6].mxu1  ;;  %v1018_v26 = vmul.f32 %v2269_v40, %v391_v6  ;;  %v1050_v27 = vmul.f32 %v877_v8, %v519_v18 }
  0xe6   :  { %v1021_v22 = vmul.f32 %v1827_v19, %v2271_v41  ;;  %v1053_v23 = vmul.f32 %v1859_v20, %v892_v9  ;;  %v394_v24 = vpop.f32.mrb[7].mxu0  ;;  %v522_v25 = vpop.f32.mrb[7].mxu1 }
  0xe7   :  { %v1019_v28 = vmul.f32 %v2267_v39, %v394_v24  ;;  %v1051_v29 = vmul.f32 %v882_v7, %v522_v25  ;;  %v2359_v30 = vpop.permute.xlu1 %951  ;;  %v2361_v42 = vpop.permute.xlu0 %946 }
  0xe8   :  { %v1612_v32 = vpack.c.bf16 %v1021_v22, %v1020_v4  ;;  %v1692_v33 = vpack.c.bf16 %v1053_v23, %v1052_v21 }
  0xe9   :  { %v1607_v34 = vpack.c.bf16 %v1019_v28, %v1018_v26  ;;  %v1687_v35 = vpack.c.bf16 %v1051_v29, %v1050_v27 }
  0xea   :  { %1756 = vst [vmem:[%s2501_s3 + $0x18] sm:$0xff] %v1612_v32   ;;  %1772 = vst [vmem:[%s2501_s3 + $0x98] sm:$0xff] %v1692_v33   ;;  %v1830_v40 = vpop.f32.mrb[8].mxu0  ;;  %v1862_v8 = vpop.f32.mrb[8].mxu1 }
  0xeb   :  { %1755 = vst [vmem:[%s2501_s3 + $0x10] sm:$0xff] %v1607_v34   ;;  %1771 = vst [vmem:[%s2501_s3 + $0x90] sm:$0xff] %v1687_v35   ;;  %v2375_v39 = vpop.permute.xlu1 %961  ;;  %v2377_v41 = vpop.permute.xlu0 %956  ;;  %v1024_v7 = vmul.f32 %v1830_v40, %v2281_v46  ;;  %v1056_v5 = vmul.f32 %v1862_v8, %v2329_v14 }
  0xec   :  { %v407_v9 = vpop.f32.mrb[9].mxu0  ;;  %v535_v10 = vpop.f32.mrb[9].mxu1 }
  0xed   :  { %v1831_v17 = vpop.f32.mrb[10].mxu0  ;;  %v1863_v38 = vpop.f32.mrb[10].mxu1  ;;  %v1022_v6 = vmul.f32 %v2277_v44, %v407_v9  ;;  %v1054_v21 = vmul.f32 %v2325_v12, %v535_v10 }
  0xee   :  { %v1025_v37 = vmul.f32 %v1831_v17, %v2279_v45  ;;  %v410_v4 = vpop.f32.mrb[11].mxu0  ;;  %v1057_v18 = vmul.f32 %v1863_v38, %v2327_v13  ;;  %v538_v20 = vpop.f32.mrb[11].mxu1 }
  0xef   :  { %v1023_v19 = vmul.f32 %v2275_v43, %v410_v4  ;;  %v1055_v22 = vmul.f32 %v2323_v11, %v538_v20  ;;  %v2396_v43 = vpop.permute.xlu1 %971  ;;  %v967_v12 = vpop.permute.xlu0 %966 }
  0xf0   :  { %v1622_v46 = vpack.c.bf16 %v1025_v37, %v1024_v7  ;;  %v1702_v23 = vpack.c.bf16 %v1057_v18, %v1056_v5 }
  0xf1   :  { %v1617_v24 = vpack.c.bf16 %v1023_v19, %v1022_v6  ;;  %v1697_v45 = vpack.c.bf16 %v1055_v22, %v1054_v21 }
  0xf2   :  { %1758 = vst [vmem:[%s2501_s3 + $0x28] sm:$0xff] %v1622_v46   ;;  %v1834_v14 = vpop.f32.mrb[12].mxu0  ;;  %1774 = vst [vmem:[%s2501_s3 + $0xa8] sm:$0xff] %v1702_v23   ;;  %v1866_v11 = vpop.f32.mrb[12].mxu1 }
  0xf3   :  { %1757 = vst [vmem:[%s2501_s3 + $0x20] sm:$0xff] %v1617_v24   ;;  %v1028_v44 = vmul.f32 %v1834_v14, %v2289_v50  ;;  %1773 = vst [vmem:[%s2501_s3 + $0xa0] sm:$0xff] %v1697_v45   ;;  %v423_v13 = vpop.f32.mrb[13].mxu0  ;;  %v551_v25 = vpop.f32.mrb[13].mxu1  ;;  %v1060_v32 = vmul.f32 %v1866_v11, %v2337_v63 }
  0xf4   :  { %v1835_v26 = vpop.f32.mrb[14].mxu0  ;;  %v1867_v28 = vpop.f32.mrb[14].mxu1  ;;  %v1026_v33 = vmul.f32 %v2285_v48, %v423_v13  ;;  %v1058_v40 = vmul.f32 %v2333_v16, %v551_v25 }
  0xf5   :  { %v1029_v27 = vmul.f32 %v1835_v26, %v2287_v49  ;;  %v426_v29 = vpop.f32.mrb[15].mxu0  ;;  %v1061_v34 = vmul.f32 %v1867_v28, %v2335_v31  ;;  %v554_v35 = vpop.f32.mrb[15].mxu1 }
  0xf6   :  { %v1027_v50 = vmul.f32 %v2283_v47, %v426_v29  ;;  %v1059_v8 = vmul.f32 %v2331_v15, %v554_v35  ;;  %v2412_v17 = vpop.permute.xlu1 %981  ;;  %v2421_v15 = vpop.permute.xlu0 %976 }
  0xf7   :  { %v1632_v7 = vpack.c.bf16 %v1029_v27, %v1028_v44  ;;  %v1712_v9 = vpack.c.bf16 %v1061_v34, %v1060_v32 }
  0xf8   :  { %v1627_v10 = vpack.c.bf16 %v1027_v50, %v1026_v33  ;;  %v1707_v49 = vpack.c.bf16 %v1059_v8, %v1058_v40 }
  0xf9   :  { %1760 = vst [vmem:[%s2501_s3 + $0x38] sm:$0xff] %v1632_v7   ;;  %1776 = vst [vmem:[%s2501_s3 + $0xb8] sm:$0xff] %v1712_v9  }
  0xfa   :  { %v1838_v63 = vpop.f32.mrb[16].mxu0  ;;  %1759 = vst [vmem:[%s2501_s3 + $0x30] sm:$0xff] %v1627_v10   ;;  %v1870_v48 = vpop.f32.mrb[16].mxu1  ;;  %1775 = vst [vmem:[%s2501_s3 + $0xb0] sm:$0xff] %v1707_v49  }
  0xfb   :  { %v1032_v47 = vmul.f32 %v1838_v63, %v2297_v54  ;;  %v439_v16 = vpop.f32.mrb[17].mxu0  ;;  %v567_v31 = vpop.f32.mrb[17].mxu1  ;;  %v1064_v6 = vmul.f32 %v1870_v48, %v2361_v42 }
  0xfc   :  { %v1839_v37 = vpop.f32.mrb[18].mxu0  ;;  %v1871_v4 = vpop.f32.mrb[18].mxu1  ;;  %v1030_v18 = vmul.f32 %v2293_v52, %v439_v16  ;;  %v1062_v21 = vmul.f32 %v2353_v3, %v567_v31 }
  0xfd   :  { %v1033_v38 = vmul.f32 %v1839_v37, %v2295_v53  ;;  %v442_v5 = vpop.f32.mrb[19].mxu0  ;;  %v1065_v54 = vmul.f32 %v1871_v4, %v2359_v30  ;;  %v570_v20 = vpop.f32.mrb[19].mxu1 }
  0xfe   :  { %v1031_v19 = vmul.f32 %v2291_v51, %v442_v5  ;;  %v1063_v22 = vmul.f32 %v2348_v36, %v570_v20  ;;  %v992_v23 = vpop.permute.xlu1 %991  ;;  %v987_v53 = vpop.permute.xlu0 %986 }
  0xff   :  { %v1642_v46 = vpack.c.bf16 %v1033_v38, %v1032_v47  ;;  %v1722_v24 = vpack.c.bf16 %v1065_v54, %v1064_v6 }
 0x100   :  { %v1637_v45 = vpack.c.bf16 %v1031_v19, %v1030_v18  ;;  %v1717_v42 = vpack.c.bf16 %v1063_v22, %v1062_v21 }
 0x101   :  { %1762 = vst [vmem:[%s2501_s3 + $0x48] sm:$0xff] %v1642_v46   ;;  %1778 = vst [vmem:[%s2501_s3 + $0xc8] sm:$0xff] %v1722_v24  }
 0x102   :  { %v1842_v52 = vpop.f32.mrb[20].mxu0  ;;  %1761 = vst [vmem:[%s2501_s3 + $0x40] sm:$0xff] %v1637_v45   ;;  %v1874_v51 = vpop.f32.mrb[20].mxu1  ;;  %1777 = vst [vmem:[%s2501_s3 + $0xc0] sm:$0xff] %v1717_v42  }
 0x103   :  { %v455_v36 = vpop.f32.mrb[21].mxu0  ;;  %v583_v3 = vpop.f32.mrb[21].mxu1  ;;  %v1036_v14 = vmul.f32 %v1842_v52, %v2305_v58  ;;  %v1068_v25 = vmul.f32 %v1874_v51, %v967_v12 }
 0x104   :  { %v1843_v30 = vpop.f32.mrb[22].mxu0  ;;  %v1875_v11 = vpop.f32.mrb[22].mxu1  ;;  %v1034_v26 = vmul.f32 %v2301_v56, %v455_v36  ;;  %v1066_v32 = vmul.f32 %v2377_v41, %v583_v3 }
 0x105   :  { %v1037_v44 = vmul.f32 %v1843_v30, %v2303_v57  ;;  %v458_v13 = vpop.f32.mrb[23].mxu0  ;;  %v1069_v27 = vmul.f32 %v1875_v11, %v2396_v43  ;;  %v586_v29 = vpop.f32.mrb[23].mxu1 }
 0x106   :  { %v1035_v28 = vmul.f32 %v2299_v55, %v458_v13  ;;  %v1067_v34 = vmul.f32 %v2375_v39, %v586_v29  ;;  %v1002_v58 = vpop.permute.xlu1 %1001  ;;  %v997_v12 = vpop.permute.xlu0 %996 }
 0x107   :  { %v1652_v33 = vpack.c.bf16 %v1037_v44, %v1036_v14  ;;  %v1732_v50 = vpack.c.bf16 %v1069_v27, %v1068_v25 }
 0x108   :  { %v1647_v35 = vpack.c.bf16 %v1035_v28, %v1034_v26  ;;  %v1727_v57 = vpack.c.bf16 %v1067_v34, %v1066_v32 }
 0x109   :  { %1764 = vst [vmem:[%s2501_s3 + $0x58] sm:$0xff] %v1652_v33   ;;  %1780 = vst [vmem:[%s2501_s3 + $0xd8] sm:$0xff] %v1732_v50  }
 0x10a   :  { %1763 = vst [vmem:[%s2501_s3 + $0x50] sm:$0xff] %v1647_v35   ;;  %v1846_v55 = vpop.f32.mrb[24].mxu0  ;;  %1779 = vst [vmem:[%s2501_s3 + $0xd0] sm:$0xff] %v1727_v57   ;;  %v1878_v56 = vpop.f32.mrb[24].mxu1 }
 0x10b   :  { %v471_v39 = vpop.f32.mrb[25].mxu0  ;;  %v599_v41 = vpop.f32.mrb[25].mxu1  ;;  %v1040_v40 = vmul.f32 %v1846_v55, %v2313_v62  ;;  %v1072_v10 = vmul.f32 %v1878_v56, %v987_v53 }
 0x10c   :  { %v1847_v43 = vpop.f32.mrb[26].mxu0  ;;  %v1879_v8 = vpop.f32.mrb[26].mxu1  ;;  %v1038_v49 = vmul.f32 %v2309_v60, %v471_v39  ;;  %v1070_v16 = vmul.f32 %v2421_v15, %v599_v41 }
 0x10d   :  { %v1041_v7 = vmul.f32 %v1847_v43, %v2311_v61  ;;  %v474_v9 = vpop.f32.mrb[27].mxu0  ;;  %v1073_v63 = vmul.f32 %v1879_v8, %v992_v23  ;;  %v602_v48 = vpop.f32.mrb[27].mxu1  ;;  %v2503_v23 = vld [vmem:[#allocation2_spill] sm:$0xff] }
 0x10e   :  { %v1039_v47 = vmul.f32 %v2307_v59, %v474_v9  ;;  %v1071_v37 = vmul.f32 %v2412_v17, %v602_v48  ;;  %v1012_v5 = vpop.permute.xlu1 %1011  ;;  %v1007_v62 = vpop.permute.xlu0 %1006 }
 0x10f   :  { %v1662_v31 = vpack.c.bf16 %v1041_v7, %v1040_v40  ;;  %v1742_v38 = vpack.c.bf16 %v1073_v63, %v1072_v10 }
 0x110   :  { %v1657_v4 = vpack.c.bf16 %v1039_v47, %v1038_v49  ;;  %v1737_v61 = vpack.c.bf16 %v1071_v37, %v1070_v16 }
 0x111   :  { %1766 = vst [vmem:[%s2501_s3 + $0x68] sm:$0xff] %v1662_v31   ;;  %1782 = vst [vmem:[%s2501_s3 + $0xe8] sm:$0xff] %v1742_v38  }
 0x112   :  { %1765 = vst [vmem:[%s2501_s3 + $0x60] sm:$0xff] %v1657_v4   ;;  %v1850_v59 = vpop.f32.mrb[28].mxu0  ;;  %1781 = vst [vmem:[%s2501_s3 + $0xe0] sm:$0xff] %v1737_v61   ;;  %v1882_v60 = vpop.f32.mrb[28].mxu1 }
 0x113   :  { %v487_v17 = vpop.f32.mrb[29].mxu0  ;;  %v615_v15 = vpop.f32.mrb[29].mxu1  ;;  %v1044_v18 = vmul.f32 %v1850_v59, %v2321_v2  ;;  %v1076_v21 = vmul.f32 %v1882_v60, %v1007_v62 }
 0x114   :  { %v1851_v6 = vpop.f32.mrb[30].mxu0  ;;  %v1883_v19 = vpop.f32.mrb[30].mxu1  ;;  %v1042_v46 = vmul.f32 %v2317_v0, %v487_v17  ;;  %v1074_v53 = vmul.f32 %v997_v12, %v615_v15 }
 0x115   :  { %v1045_v54 = vmul.f32 %v1851_v6, %v2319_v1  ;;  %v490_v20 = vpop.f32.mrb[31].mxu0  ;;  %v1077_v22 = vmul.f32 %v1883_v19, %v1012_v5  ;;  %v618_v45 = vpop.f32.mrb[31].mxu1 }
 0x116   :  { %v1043_v24 = vmul.f32 %v2503_v23, %v490_v20  ;;  %v1075_v52 = vmul.f32 %v1002_v58, %v618_v45 }
 0x117   :  { %v1672_v42 = vpack.c.bf16 %v1045_v54, %v1044_v18  ;;  %v1752_v51 = vpack.c.bf16 %v1077_v22, %v1076_v21 }
 0x118   :  { %v1667_v36 = vpack.c.bf16 %v1043_v24, %v1042_v46  ;;  %v1747_v2 = vpack.c.bf16 %v1075_v52, %v1074_v53 }
 0x119   :  { %1768 = vst [vmem:[%s2501_s3 + $0x78] sm:$0xff] %v1672_v42   ;;  %1784 = vst [vmem:[%s2501_s3 + $0xf8] sm:$0xff] %v1752_v51  }
 0x11a   :  { %1767 = vst [vmem:[%s2501_s3 + $0x70] sm:$0xff] %v1667_v36   ;;  %1783 = vst [vmem:[%s2501_s3 + $0xf0] sm:$0xff] %v1747_v2  }

// kernel: gcn_forward.5
= control target key start
LH: loop header
LB: loop body
LE: loop exit
PB: predicated region body
PF: predicated region fallthrough
CT: control target
= control target key end

     0   :  { %v3505_v0 = vmov 0   ;;  %s4239_s1 = inlined_call_operand.vmem [shape: bf16[512,128], index: 1, kind: input, shape index: {}]   ;;  %s4240_s0 = inlined_call_operand.vmem [shape: s8[512,512], index: 0, kind: input, shape index: {}]   ;;  %s4241_s2 = inlined_call_operand.vmem [shape: f32[512,1], index: 2, kind: input, shape index: {}]   ;;  %s4242_s3 = inlined_call_operand.vmem [shape: f32[1,128], index: 3, kind: input, shape index: {}]   ;;  %s4243_s4 = inlined_call_operand.vmem [shape: bf16[512,128], index: 4, kind: output, shape index: {}]  }
   0x1   :  { %1243 = vmatprep.subr.bf16.mxu1 %v3505_v0  ;;  %1532 = vmatprep.subr.bf16.mxu0 %v3505_v0  ;;  %v3472_v1 = vld [vmem:[%s4239_s1] sm:$0xff]   ;;  %v3474_v3 = vld [vmem:[%s4239_s1 + $0x8] sm:$0xff]   ;;  %v3476_v5 = vld [vmem:[%s4239_s1 + $0x10] sm:$0xff]  }
   0x2   :  { %v3473_v2 = vld [vmem:[%s4239_s1 + $0x80] sm:$0xff]   ;;  %3470 = vset.pattern.permute.xlu0 %v3505_v0  ;;  %3471 = vset.pattern.permute.xlu1 %v3505_v0  ;;  %v3475_v4 = vld [vmem:[%s4239_s1 + $0x88] sm:$0xff]   ;;  %v3477_v6 = vld [vmem:[%s4239_s1 + $0x90] sm:$0xff]  }
   0x3   :  { %1244 = vmatpush1.bf16.msra.mxu1 %v3472_v1  ;;  %1533 = vmatpush1.bf16.msra.mxu0 %v3473_v2  ;;  %v3478_v7 = vld [vmem:[%s4239_s1 + $0x18] sm:$0xff]   ;;  %v3480_v9 = vld [vmem:[%s4239_s1 + $0x20] sm:$0xff]   ;;  %v3482_v11 = vld [vmem:[%s4239_s1 + $0x28] sm:$0xff]  }
   0x4   :  { %1245 = vmatprep.subr.bf16.mxu1 %v3505_v0  ;;  %1534 = vmatprep.subr.bf16.mxu0 %v3505_v0  ;;  %v3479_v8 = vld [vmem:[%s4239_s1 + $0x98] sm:$0xff]   ;;  %v3481_v10 = vld [vmem:[%s4239_s1 + $0xa0] sm:$0xff]   ;;  %v3483_v12 = vld [vmem:[%s4239_s1 + $0xa8] sm:$0xff]  }
   0x5   :  { %v3484_v13 = vld [vmem:[%s4239_s1 + $0x30] sm:$0xff]   ;;  %v3486_v15 = vld [vmem:[%s4239_s1 + $0x38] sm:$0xff]   ;;  %v3488_v17 = vld [vmem:[%s4239_s1 + $0x40] sm:$0xff]  }
   0x6   :  { %v3485_v14 = vld [vmem:[%s4239_s1 + $0xb0] sm:$0xff]   ;;  %v3487_v16 = vld [vmem:[%s4239_s1 + $0xb8] sm:$0xff]   ;;  %v3489_v18 = vld [vmem:[%s4239_s1 + $0xc0] sm:$0xff]  }
   0x7   :  { %1246 = vmatpush1.bf16.msra.mxu1 %v3474_v3  ;;  %1535 = vmatpush1.bf16.msra.mxu0 %v3475_v4  ;;  %v3608_v19 = vld [vmem:[%s4240_s0] sm:$0xff]  ;;  %v3613_v20 = vld [vmem:[%s4240_s0 + $0x8] sm:$0xff]  ;;  %v3492_v29 = vld [vmem:[%s4239_s1 + $0x50] sm:$0xff]  }
   0x8   :  { %1247 = vmatprep.subr.bf16.mxu1 %v3505_v0  ;;  %1536 = vmatprep.subr.bf16.mxu0 %v3505_v0  ;;  %v150_v21 = vunpack.c.l.s8.bf16 %v3608_v19  ;;  %v152_v22 = vunpack.c.l.s8.bf16 %v3613_v20  ;;  %v151_v23 = vunpack.c.h.s8.bf16 %v3608_v19  ;;  %v153_v24 = vunpack.c.h.s8.bf16 %v3613_v20  ;;  %v3490_v25 = vld [vmem:[%s4239_s1 + $0x48] sm:$0xff]   ;;  %v3493_v30 = vld [vmem:[%s4239_s1 + $0xd0] sm:$0xff]   ;;  %v2016_v31 = vld [vmem:[%s4241_s2] sm:$0xff] }
   0x9   :  { %v3491_v26 = vld [vmem:[%s4239_s1 + $0xc8] sm:$0xff]   ;;  %v2018_v32 = vld [vmem:[%s4241_s2 + $0x10] sm:$0xff]  ;;  %2082 = vperm.xlu0 %3470, %v2016_v31   ;;  %v3494_v33 = vld [vmem:[%s4239_s1 + $0x58] sm:$0xff]  }
   0xa   :  { %v2926_v27 = vcombine.high %v150_v21, %v152_v22  ;;  %v2928_v28 = vcombine.high %v151_v23, %v153_v24  ;;  %2092 = vperm.xlu1 %3471, %v2018_v32   ;;  %v2017_v34 = vld [vmem:[%s4241_s2 + $0x8] sm:$0xff]  ;;  %v2019_v35 = vld [vmem:[%s4241_s2 + $0x18] sm:$0xff]  ;;  %v3496_v37 = vld [vmem:[%s4239_s1 + $0x60] sm:$0xff]   ;;  %v2925_v59 = vcombine.low %v150_v21, %v152_v22  ;;  %v2927_v60 = vcombine.low %v151_v23, %v153_v24 }
   0xb   :  { %1248 = vmatpush1.bf16.msra.mxu1 %v3476_v5  ;;  %1537 = vmatpush1.bf16.msra.mxu0 %v3477_v6  ;;  %v3495_v36 = vld [vmem:[%s4239_s1 + $0xd8] sm:$0xff]   ;;  %v2021_v38 = vld [vmem:[%s4241_s2 + $0x28] sm:$0xff]  ;;  %v2020_v39 = vld [vmem:[%s4241_s2 + $0x20] sm:$0xff] }
   0xc   :  { %1249 = vmatprep.subr.bf16.mxu1 %v3505_v0  ;;  %1538 = vmatprep.subr.bf16.mxu0 %v3505_v0  ;;  %v3497_v40 = vld [vmem:[%s4239_s1 + $0xe0] sm:$0xff]   ;;  %v3498_v41 = vld [vmem:[%s4239_s1 + $0x68] sm:$0xff]   ;;  %v2023_v42 = vld [vmem:[%s4241_s2 + $0x38] sm:$0xff] }
   0xd   :  { %1275 = vmatprep.mubr.bf16.mxu1 %v2926_v27  ;;  %1564 = vmatprep.mubr.bf16.mxu0 %v2928_v28  ;;  %v2022_v43 = vld [vmem:[%s4241_s2 + $0x30] sm:$0xff]  ;;  %v3499_v44 = vld [vmem:[%s4239_s1 + $0xe8] sm:$0xff]   ;;  %v2024_v47 = vld [vmem:[%s4241_s2 + $0x40] sm:$0xff] }
   0xe   :  { %2087 = vperm.xlu0 %3470, %v2017_v34   ;;  %2097 = vperm.xlu1 %3471, %v2019_v35   ;;  %v3500_v45 = vld [vmem:[%s4239_s1 + $0x70] sm:$0xff]   ;;  %v2025_v46 = vld [vmem:[%s4241_s2 + $0x48] sm:$0xff]  ;;  %v89_v50 = vld [vmem:[%s4240_s0 + $0x18] sm:$0xff] }
   0xf   :  { %1250 = vmatpush1.bf16.msra.mxu1 %v3478_v7  ;;  %1539 = vmatpush1.bf16.msra.mxu0 %v3479_v8  ;;  %v3501_v48 = vld [vmem:[%s4239_s1 + $0xf0] sm:$0xff]   ;;  %v3502_v51 = vld [vmem:[%s4239_s1 + $0x78] sm:$0xff]   ;;  %v156_v53 = vunpack.c.l.s8.bf16 %v89_v50  ;;  %v157_v58 = vunpack.c.h.s8.bf16 %v89_v50  ;;  %v2029_v62 = vld [vmem:[%s4241_s2 + $0x68] sm:$0xff] }
  0x10   :  { %1251 = vmatprep.subr.bf16.mxu1 %v3505_v0  ;;  %1540 = vmatprep.subr.bf16.mxu0 %v3505_v0  ;;  %v88_v49 = vld [vmem:[%s4240_s0 + $0x10] sm:$0xff]  ;;  %v2027_v54 = vld [vmem:[%s4241_s2 + $0x58] sm:$0xff]  ;;  %v91_v1 = vld [vmem:[%s4240_s0 + $0x28] sm:$0xff] }
  0x11   :  { %v154_v52 = vunpack.c.l.s8.bf16 %v88_v49  ;;  %v2026_v55 = vld [vmem:[%s4241_s2 + $0x50] sm:$0xff]  ;;  %v3503_v56 = vld [vmem:[%s4239_s1 + $0xf8] sm:$0xff]   ;;  %v155_v57 = vunpack.c.h.s8.bf16 %v88_v49  ;;  %v2028_v2 = vld [vmem:[%s4241_s2 + $0x60] sm:$0xff]  ;;  %v160_v4 = vunpack.c.l.s8.bf16 %v91_v1  ;;  %v161_v7 = vunpack.c.h.s8.bf16 %v91_v1 }
  0x12   :  { %2107 = vperm.xlu1 %3471, %v2021_v38   ;;  %2102 = vperm.xlu0 %3470, %v2020_v39   ;;  %v2031_v5 = vld [vmem:[%s4241_s2 + $0x78] sm:$0xff]  ;;  %v2030_v8 = vld [vmem:[%s4241_s2 + $0x70] sm:$0xff]  ;;  %v94_v28 = vld [vmem:[%s4240_s0 + $0x40] sm:$0xff] }
  0x13   :  { %1252 = vmatpush1.bf16.msra.mxu1 %v3480_v9  ;;  %1541 = vmatpush1.bf16.msra.mxu0 %v3481_v10  ;;  %v2930_v61 = vcombine.high %v154_v52, %v156_v53  ;;  %v2932_v63 = vcombine.high %v155_v57, %v157_v58  ;;  %v2929_v9 = vcombine.low %v154_v52, %v156_v53  ;;  %v2035_v19 = vld [vmem:[%s4241_s2 + $0x98] sm:$0xff]  ;;  %v2034_v22 = vld [vmem:[%s4241_s2 + $0x90] sm:$0xff]  ;;  %v166_v31 = vunpack.c.l.s8.bf16 %v94_v28 }
  0x14   :  { %1253 = vmatprep.subr.bf16.mxu1 %v3505_v0  ;;  %1542 = vmatprep.subr.bf16.mxu0 %v3505_v0  ;;  %v2931_v10 = vcombine.low %v155_v57, %v157_v58  ;;  %v167_v34 = vunpack.c.h.s8.bf16 %v94_v28  ;;  %v2042_v50 = vld [vmem:[%s4241_s2 + $0xd0] sm:$0xff]  ;;  %v99_v57 = vld [vmem:[%s4240_s0 + $0x68] sm:$0xff]  ;;  %v2044_v58 = vld [vmem:[%s4241_s2 + $0xe0] sm:$0xff] }
  0x15   :  { %v2054_v28 = vld [vmem:[%s4241_s2 + $0x130] sm:$0xff] }
  0x16   :  { %2117 = vperm.xlu1 %3471, %v2023_v42   ;;  %2112 = vperm.xlu0 %3470, %v2022_v43   ;;  %v96_v42 = vld [vmem:[%s4240_s0 + $0x50] sm:$0xff]  ;;  %v97_v43 = vld [vmem:[%s4240_s0 + $0x58] sm:$0xff] }
  0x17   :  { %1254 = vmatpush1.bf16.msra.mxu1 %v3482_v11  ;;  %1543 = vmatpush1.bf16.msra.mxu0 %v3483_v12  ;;  %v2033_v12 = vld [vmem:[%s4241_s2 + $0x88] sm:$0xff]  ;;  %v173_v49 = vunpack.c.h.s8.bf16 %v97_v43 }
  0x18   :  { %1255 = vmatprep.subr.bf16.mxu1 %v3505_v0  ;;  %1544 = vmatprep.subr.bf16.mxu0 %v3505_v0 }
  0x1a   :  { %2127 = vperm.xlu1 %3471, %v2025_v46   ;;  %2122 = vperm.xlu0 %3470, %v2024_v47   ;;  %v172_v46 = vunpack.c.l.s8.bf16 %v97_v43  ;;  %v2043_v47 = vld [vmem:[%s4241_s2 + $0xd8] sm:$0xff] }
  0x1b   :  { %1256 = vmatpush1.bf16.msra.mxu1 %v3484_v13  ;;  %1545 = vmatpush1.bf16.msra.mxu0 %v3485_v14  ;;  %v92_v14 = vld [vmem:[%s4240_s0 + $0x30] sm:$0xff] }
  0x1c   :  { %1257 = vmatprep.subr.bf16.mxu1 %v3505_v0  ;;  %1546 = vmatprep.subr.bf16.mxu0 %v3505_v0  ;;  %v163_v20 = vunpack.c.h.s8.bf16 %v92_v14 }
  0x1e   :  { %2137 = vperm.xlu1 %3471, %v2027_v54   ;;  %2132 = vperm.xlu0 %3470, %v2026_v55   ;;  %v2045_v54 = vld [vmem:[%s4241_s2 + $0xe8] sm:$0xff] }
  0x1f   :  { %1258 = vmatpush1.bf16.msra.mxu1 %v3486_v15  ;;  %1547 = vmatpush1.bf16.msra.mxu0 %v3487_v16  ;;  %v93_v15 = vld [vmem:[%s4240_s0 + $0x38] sm:$0xff]  ;;  %v2032_v16 = vld [vmem:[%s4241_s2 + $0x80] sm:$0xff] }
  0x20   :  { %1259 = vmatprep.subr.bf16.mxu1 %v3505_v0  ;;  %1548 = vmatprep.subr.bf16.mxu0 %v3505_v0  ;;  %v165_v21 = vunpack.c.h.s8.bf16 %v93_v15 }
  0x22   :  { %2147 = vperm.xlu1 %3471, %v2029_v62   ;;  %2142 = vperm.xlu0 %3470, %v2028_v2   ;;  %v2940_v27 = vcombine.high %v163_v20, %v165_v21  ;;  %v2939_v38 = vcombine.low %v163_v20, %v165_v21  ;;  %v102_v20 = vld [vmem:[%s4240_s0 + $0x80] sm:$0xff]  ;;  %v103_v21 = vld [vmem:[%s4240_s0 + $0x88] sm:$0xff] }
  0x23   :  { %1260 = vmatpush1.bf16.msra.mxu1 %v3488_v17  ;;  %1549 = vmatpush1.bf16.msra.mxu0 %v3489_v18  ;;  %v162_v17 = vunpack.c.l.s8.bf16 %v92_v14  ;;  %v164_v18 = vunpack.c.l.s8.bf16 %v93_v15  ;;  %v2050_v14 = vld [vmem:[%s4241_s2 + $0x110] sm:$0xff] }
  0x24   :  { %1261 = vmatprep.subr.bf16.mxu1 %v3505_v0  ;;  %1550 = vmatprep.subr.bf16.mxu0 %v3505_v0 }
  0x26   :  { %2157 = vperm.xlu1 %3471, %v2031_v5   ;;  %2152 = vperm.xlu0 %3470, %v2030_v8   ;;  %v2048_v8 = vld [vmem:[%s4241_s2 + $0x100] sm:$0xff] }
  0x27   :  { %1262 = vmatpush1.bf16.msra.mxu1 %v3490_v25  ;;  %1551 = vmatpush1.bf16.msra.mxu0 %v3491_v26  ;;  %v2938_v25 = vcombine.high %v162_v17, %v164_v18  ;;  %v2037_v26 = vld [vmem:[%s4241_s2 + $0xa8] sm:$0xff] }
  0x28   :  { %1263 = vmatprep.subr.bf16.mxu1 %v3505_v0  ;;  %1552 = vmatprep.subr.bf16.mxu0 %v3505_v0 }
  0x2a   :  { %2167 = vperm.xlu1 %3471, %v2033_v12   ;;  %2162 = vperm.xlu0 %3470, %v2032_v16  }
  0x2b   :  { %1264 = vmatpush1.bf16.msra.mxu1 %v3492_v29  ;;  %1553 = vmatpush1.bf16.msra.mxu0 %v3493_v30  ;;  %v95_v29 = vld [vmem:[%s4240_s0 + $0x48] sm:$0xff]  ;;  %v2036_v30 = vld [vmem:[%s4241_s2 + $0xa0] sm:$0xff] }
  0x2c   :  { %1265 = vmatprep.subr.bf16.mxu1 %v3505_v0  ;;  %1554 = vmatprep.subr.bf16.mxu0 %v3505_v0  ;;  %v168_v32 = vunpack.c.l.s8.bf16 %v95_v29  ;;  %v169_v35 = vunpack.c.h.s8.bf16 %v95_v29 }
  0x2e   :  { %2177 = vperm.xlu1 %3471, %v2035_v19   ;;  %2172 = vperm.xlu0 %3470, %v2034_v22   ;;  %v2942_v39 = vcombine.high %v166_v31, %v168_v32  ;;  %v2943_v52 = vcombine.low %v167_v34, %v169_v35  ;;  %v2052_v22 = vld [vmem:[%s4241_s2 + $0x120] sm:$0xff] }
  0x2f   :  { %1266 = vmatpush1.bf16.msra.mxu1 %v3494_v33  ;;  %1555 = vmatpush1.bf16.msra.mxu0 %v3495_v36  ;;  %v2039_v33 = vld [vmem:[%s4241_s2 + $0xb8] sm:$0xff]  ;;  %v2038_v36 = vld [vmem:[%s4241_s2 + $0xb0] sm:$0xff] }
  0x30   :  { %1267 = vmatprep.subr.bf16.mxu1 %v3505_v0  ;;  %1556 = vmatprep.subr.bf16.mxu0 %v3505_v0 }
  0x32   :  { %2187 = vperm.xlu1 %3471, %v2037_v26   ;;  %2182 = vperm.xlu0 %3470, %v2036_v30   ;;  %v183_v26 = vunpack.c.h.s8.bf16 %v102_v20 }
  0x33   :  { %1268 = vmatpush1.bf16.msra.mxu1 %v3496_v37  ;;  %1557 = vmatpush1.bf16.msra.mxu0 %v3497_v40  ;;  %v2937_v37 = vcombine.low %v162_v17, %v164_v18  ;;  %v2041_v40 = vld [vmem:[%s4241_s2 + $0xc8] sm:$0xff] }
  0x34   :  { %1269 = vmatprep.subr.bf16.mxu1 %v3505_v0  ;;  %1558 = vmatprep.subr.bf16.mxu0 %v3505_v0  ;;  %v2053_v18 = vld [vmem:[%s4241_s2 + $0x128] sm:$0xff] }
  0x36   :  { %2197 = vperm.xlu1 %3471, %v2039_v33   ;;  %2192 = vperm.xlu0 %3470, %v2038_v36   ;;  %v2056_v36 = vld [vmem:[%s4241_s2 + $0x140] sm:$0xff] }
  0x37   :  { %1270 = vmatpush1.bf16.msra.mxu1 %v3498_v41  ;;  %1559 = vmatpush1.bf16.msra.mxu0 %v3499_v44  ;;  %v2944_v41 = vcombine.high %v167_v34, %v169_v35  ;;  %v2040_v44 = vld [vmem:[%s4241_s2 + $0xc0] sm:$0xff]  ;;  %v104_v34 = vld [vmem:[%s4240_s0 + $0x90] sm:$0xff]  ;;  %v105_v35 = vld [vmem:[%s4240_s0 + $0x98] sm:$0xff] }
  0x38   :  { %1271 = vmatprep.subr.bf16.mxu1 %v3505_v0  ;;  %1560 = vmatprep.subr.bf16.mxu0 %v3505_v0 }
  0x3a   :  { %2207 = vperm.xlu1 %3471, %v2041_v40   ;;  %2202 = vperm.xlu0 %3470, %v2040_v44   ;;  %v187_v40 = vunpack.c.h.s8.bf16 %v104_v34 }
  0x3b   :  { %1272 = vmatpush1.bf16.msra.mxu1 %v3500_v45  ;;  %1561 = vmatpush1.bf16.msra.mxu0 %v3501_v48  ;;  %v170_v45 = vunpack.c.l.s8.bf16 %v96_v42  ;;  %v171_v48 = vunpack.c.h.s8.bf16 %v96_v42  ;;  %v2058_v42 = vld [vmem:[%s4241_s2 + $0x150] sm:$0xff] }
  0x3c   :  { %1273 = vmatprep.subr.bf16.mxu1 %v3505_v0  ;;  %1562 = vmatprep.subr.bf16.mxu0 %v3505_v0  ;;  %v90_v0 = vld [vmem:[%s4240_s0 + $0x20] sm:$0xff] }
  0x3d   :  { %v158_v3 = vunpack.c.l.s8.bf16 %v90_v0  ;;  %v159_v6 = vunpack.c.h.s8.bf16 %v90_v0  ;;  %v2946_v53 = vcombine.high %v170_v45, %v172_v46  ;;  %v2948_v55 = vcombine.high %v171_v48, %v173_v49  ;;  %v2046_v0 = vld [vmem:[%s4241_s2 + $0xf0] sm:$0xff] }
  0x3e   :  { %2217 = vperm.xlu1 %3471, %v2043_v47   ;;  %2212 = vperm.xlu0 %3470, %v2042_v50   ;;  %v2945_v1 = vcombine.low %v170_v45, %v172_v46  ;;  %v2947_v2 = vcombine.low %v171_v48, %v173_v49  ;;  %v2061_v46 = vld [vmem:[%s4241_s2 + $0x168] sm:$0xff]  ;;  %v106_v48 = vld [vmem:[%s4240_s0 + $0xa0] sm:$0xff] }
  0x3f   :  { %1274 = vmatpush1.bf16.msra.mxu1 %v3502_v51  ;;  %1563 = vmatpush1.bf16.msra.mxu0 %v3503_v56  ;;  %v2934_v11 = vcombine.high %v158_v3, %v160_v4  ;;  %v2936_v13 = vcombine.high %v159_v6, %v161_v7  ;;  %v2933_v23 = vcombine.low %v158_v3, %v160_v4  ;;  %v98_v56 = vld [vmem:[%s4240_s0 + $0x60] sm:$0xff]  ;;  %v2049_v4 = vld [vmem:[%s4241_s2 + $0x108] sm:$0xff] }
  0x40   :  { %v2935_v24 = vcombine.low %v159_v6, %v161_v7  ;;  %v2941_v51 = vcombine.low %v166_v31, %v168_v32  ;;  %v175_v62 = vunpack.c.h.s8.bf16 %v98_v56  ;;  %v100_v6 = vld [vmem:[%s4240_s0 + $0x70] sm:$0xff]  ;;  %v101_v7 = vld [vmem:[%s4240_s0 + $0x78] sm:$0xff]  ;;  %v2057_v32 = vld [vmem:[%s4241_s2 + $0x148] sm:$0xff] }
  0x41   :  { %v179_v12 = vunpack.c.h.s8.bf16 %v100_v6  ;;  %v107_v49 = vld [vmem:[%s4240_s0 + $0xa8] sm:$0xff]  ;;  %v2060_v50 = vld [vmem:[%s4241_s2 + $0x160] sm:$0xff] }
  0x42   :  { %1276 = vmatmul.mubr.bf16.vlgmr.msra.gmra.mrb[0].mxu1 %v2925_v59  ;;  %1565 = vmatmul.mubr.bf16.vlgmr.msra.gmra.mrb[0].mxu0 %v2927_v60  ;;  %v174_v59 = vunpack.c.l.s8.bf16 %v98_v56  ;;  %v176_v60 = vunpack.c.l.s8.bf16 %v99_v57  ;;  %v2062_v56 = vld [vmem:[%s4241_s2 + $0x170] sm:$0xff] }
  0x43   :  { %1283 = vmatprep.mubr.bf16.mxu1 %v2930_v61  ;;  %1572 = vmatprep.mubr.bf16.mxu0 %v2932_v63  ;;  %v2047_v61 = vld [vmem:[%s4241_s2 + $0xf8] sm:$0xff]  ;;  %v177_v63 = vunpack.c.h.s8.bf16 %v99_v57 }
  0x44   :  { %2227 = vperm.xlu1 %3471, %v2045_v54   ;;  %2222 = vperm.xlu0 %3470, %v2044_v58   ;;  %v2950_v3 = vcombine.high %v174_v59, %v176_v60  ;;  %v2949_v15 = vcombine.low %v174_v59, %v176_v60  ;;  %v191_v54 = vunpack.c.h.s8.bf16 %v106_v48  ;;  %v2065_v60 = vld [vmem:[%s4241_s2 + $0x188] sm:$0xff] }
  0x45   :  { %v2952_v5 = vcombine.high %v175_v62, %v177_v63  ;;  %v2951_v16 = vcombine.low %v175_v62, %v177_v63  ;;  %v108_v62 = vld [vmem:[%s4240_s0 + $0xb0] sm:$0xff]  ;;  %v109_v63 = vld [vmem:[%s4240_s0 + $0xb8] sm:$0xff] }
  0x48   :  { %2237 = vperm.xlu1 %3471, %v2047_v61   ;;  %2232 = vperm.xlu0 %3470, %v2046_v0   ;;  %v2064_v0 = vld [vmem:[%s4241_s2 + $0x180] sm:$0xff] }
  0x4a   :  { %1284 = vmatmul.mubr.bf16.gmra.mrb[4].mxu1 %v2929_v9  ;;  %1573 = vmatmul.mubr.bf16.gmra.mrb[4].mxu0 %v2931_v10  ;;  %v178_v9 = vunpack.c.l.s8.bf16 %v100_v6  ;;  %v180_v10 = vunpack.c.l.s8.bf16 %v101_v7  ;;  %v2066_v6 = vld [vmem:[%s4241_s2 + $0x190] sm:$0xff] }
  0x4b   :  { %1291 = vmatprep.mubr.bf16.mxu1 %v2934_v11  ;;  %1580 = vmatprep.mubr.bf16.mxu0 %v2936_v13  ;;  %v2051_v11 = vld [vmem:[%s4241_s2 + $0x118] sm:$0xff]  ;;  %v181_v13 = vunpack.c.h.s8.bf16 %v101_v7 }
  0x4c   :  { %2247 = vperm.xlu1 %3471, %v2049_v4   ;;  %2242 = vperm.xlu0 %3470, %v2048_v8   ;;  %v2954_v17 = vcombine.high %v178_v9, %v180_v10  ;;  %v2953_v29 = vcombine.low %v178_v9, %v180_v10  ;;  %v195_v4 = vunpack.c.h.s8.bf16 %v108_v62  ;;  %v2069_v10 = vld [vmem:[%s4241_s2 + $0x1a8] sm:$0xff] }
  0x4d   :  { %v2956_v19 = vcombine.high %v179_v12, %v181_v13  ;;  %v2955_v30 = vcombine.low %v179_v12, %v181_v13  ;;  %v110_v12 = vld [vmem:[%s4240_s0 + $0xc0] sm:$0xff]  ;;  %v111_v13 = vld [vmem:[%s4240_s0 + $0xc8] sm:$0xff] }
  0x50   :  { %2257 = vperm.xlu1 %3471, %v2051_v11   ;;  %2252 = vperm.xlu0 %3470, %v2050_v14   ;;  %v2068_v14 = vld [vmem:[%s4241_s2 + $0x1a0] sm:$0xff] }
  0x52   :  { %1292 = vmatmul.mubr.bf16.gmra.mrb[8].mxu1 %v2933_v23  ;;  %1581 = vmatmul.mubr.bf16.gmra.mrb[8].mxu0 %v2935_v24  ;;  %v182_v23 = vunpack.c.l.s8.bf16 %v102_v20  ;;  %v184_v24 = vunpack.c.l.s8.bf16 %v103_v21  ;;  %v2070_v20 = vld [vmem:[%s4241_s2 + $0x1b0] sm:$0xff] }
  0x53   :  { %1299 = vmatprep.mubr.bf16.mxu1 %v2938_v25  ;;  %1588 = vmatprep.mubr.bf16.mxu0 %v2940_v27  ;;  %v2055_v25 = vld [vmem:[%s4241_s2 + $0x138] sm:$0xff]  ;;  %v185_v27 = vunpack.c.h.s8.bf16 %v103_v21 }
  0x54   :  { %2267 = vperm.xlu1 %3471, %v2053_v18   ;;  %2262 = vperm.xlu0 %3470, %v2052_v22   ;;  %v2958_v31 = vcombine.high %v182_v23, %v184_v24  ;;  %v2957_v43 = vcombine.low %v182_v23, %v184_v24  ;;  %v199_v18 = vunpack.c.h.s8.bf16 %v110_v12  ;;  %v2073_v24 = vld [vmem:[%s4241_s2 + $0x1c8] sm:$0xff] }
  0x55   :  { %v2960_v33 = vcombine.high %v183_v26, %v185_v27  ;;  %v2959_v44 = vcombine.low %v183_v26, %v185_v27  ;;  %v112_v26 = vld [vmem:[%s4240_s0 + $0xd0] sm:$0xff]  ;;  %v113_v27 = vld [vmem:[%s4240_s0 + $0xd8] sm:$0xff] }
  0x58   :  { %2277 = vperm.xlu1 %3471, %v2055_v25   ;;  %2272 = vperm.xlu0 %3470, %v2054_v28   ;;  %v2072_v28 = vld [vmem:[%s4241_s2 + $0x1c0] sm:$0xff] }
  0x5a   :  { %1300 = vmatmul.mubr.bf16.gmra.mrb[12].mxu1 %v2937_v37  ;;  %1589 = vmatmul.mubr.bf16.gmra.mrb[12].mxu0 %v2939_v38  ;;  %v186_v37 = vunpack.c.l.s8.bf16 %v104_v34  ;;  %v188_v38 = vunpack.c.l.s8.bf16 %v105_v35  ;;  %v2074_v34 = vld [vmem:[%s4241_s2 + $0x1d0] sm:$0xff] }
  0x5b   :  { %1307 = vmatprep.mubr.bf16.mxu1 %v2942_v39  ;;  %1596 = vmatprep.mubr.bf16.mxu0 %v2944_v41  ;;  %v2059_v39 = vld [vmem:[%s4241_s2 + $0x158] sm:$0xff]  ;;  %v189_v41 = vunpack.c.h.s8.bf16 %v105_v35 }
  0x5c   :  { %2287 = vperm.xlu1 %3471, %v2057_v32   ;;  %2282 = vperm.xlu0 %3470, %v2056_v36   ;;  %v2962_v45 = vcombine.high %v186_v37, %v188_v38  ;;  %v2961_v57 = vcombine.low %v186_v37, %v188_v38  ;;  %v203_v32 = vunpack.c.h.s8.bf16 %v112_v26  ;;  %v2077_v38 = vld [vmem:[%s4241_s2 + $0x1e8] sm:$0xff] }
  0x5d   :  { %v2964_v47 = vcombine.high %v187_v40, %v189_v41  ;;  %v2963_v58 = vcombine.low %v187_v40, %v189_v41  ;;  %v114_v40 = vld [vmem:[%s4240_s0 + $0xe0] sm:$0xff]  ;;  %v115_v41 = vld [vmem:[%s4240_s0 + $0xe8] sm:$0xff] }
  0x60   :  { %2297 = vperm.xlu1 %3471, %v2059_v39   ;;  %2292 = vperm.xlu0 %3470, %v2058_v42   ;;  %v2076_v42 = vld [vmem:[%s4241_s2 + $0x1e0] sm:$0xff] }
  0x62   :  { %1308 = vmatmul.mubr.bf16.gmra.mrb[16].mxu1 %v2941_v51  ;;  %1597 = vmatmul.mubr.bf16.gmra.mrb[16].mxu0 %v2943_v52  ;;  %v190_v51 = vunpack.c.l.s8.bf16 %v106_v48  ;;  %v192_v52 = vunpack.c.l.s8.bf16 %v107_v49  ;;  %v2078_v48 = vld [vmem:[%s4241_s2 + $0x1f0] sm:$0xff] }
  0x63   :  { %1315 = vmatprep.mubr.bf16.mxu1 %v2946_v53  ;;  %1604 = vmatprep.mubr.bf16.mxu0 %v2948_v55  ;;  %v2063_v53 = vld [vmem:[%s4241_s2 + $0x178] sm:$0xff]  ;;  %v193_v55 = vunpack.c.h.s8.bf16 %v107_v49 }
  0x64   :  { %2307 = vperm.xlu1 %3471, %v2061_v46   ;;  %2302 = vperm.xlu0 %3470, %v2060_v50   ;;  %v2966_v59 = vcombine.high %v190_v51, %v192_v52  ;;  %v2965_v7 = vcombine.low %v190_v51, %v192_v52  ;;  %v207_v46 = vunpack.c.h.s8.bf16 %v114_v40 }
  0x65   :  { %v2968_v61 = vcombine.high %v191_v54, %v193_v55  ;;  %v2967_v8 = vcombine.low %v191_v54, %v193_v55  ;;  %v117_v54 = vld [vmem:[%s4240_s0 + $0xf8] sm:$0xff] }
  0x68   :  { %2317 = vperm.xlu1 %3471, %v2063_v53   ;;  %2312 = vperm.xlu0 %3470, %v2062_v56   ;;  %v116_v53 = vld [vmem:[%s4240_s0 + $0xf0] sm:$0xff]  ;;  %v212_v56 = vunpack.c.l.s8.bf16 %v117_v54 }
  0x69   :  { %v210_v55 = vunpack.c.l.s8.bf16 %v116_v53 }
  0x6a   :  { %1316 = vmatmul.mubr.bf16.gmra.mrb[20].mxu1 %v2945_v1  ;;  %1605 = vmatmul.mubr.bf16.gmra.mrb[20].mxu0 %v2947_v2  ;;  %v194_v1 = vunpack.c.l.s8.bf16 %v108_v62  ;;  %v196_v2 = vunpack.c.l.s8.bf16 %v109_v63 }
  0x6b   :  { %1323 = vmatprep.mubr.bf16.mxu1 %v2950_v3  ;;  %1612 = vmatprep.mubr.bf16.mxu0 %v2952_v5  ;;  %v2067_v3 = vld [vmem:[%s4241_s2 + $0x198] sm:$0xff]  ;;  %v197_v5 = vunpack.c.h.s8.bf16 %v109_v63  ;;  %v118_v63 = vld [vmem:[%s4240_s0 + $0x100] sm:$0xff] }
  0x6c   :  { %2327 = vperm.xlu1 %3471, %v2065_v60   ;;  %2322 = vperm.xlu0 %3470, %v2064_v0   ;;  %v2970_v9 = vcombine.high %v194_v1, %v196_v2  ;;  %v2969_v21 = vcombine.low %v194_v1, %v196_v2  ;;  %v119_v0 = vld [vmem:[%s4240_s0 + $0x108] sm:$0xff]  ;;  %v214_v1 = vunpack.c.l.s8.bf16 %v118_v63 }
  0x6d   :  { %v2972_v11 = vcombine.high %v195_v4, %v197_v5  ;;  %v2971_v22 = vcombine.low %v195_v4, %v197_v5  ;;  %v216_v2 = vunpack.c.l.s8.bf16 %v119_v0  ;;  %v217_v4 = vunpack.c.h.s8.bf16 %v119_v0 }
  0x6e   :  { %v2985_v5 = vcombine.low %v210_v55, %v212_v56 }
  0x70   :  { %2337 = vperm.xlu1 %3471, %v2067_v3   ;;  %2332 = vperm.xlu0 %3470, %v2066_v6   ;;  %v215_v3 = vunpack.c.h.s8.bf16 %v118_v63 }
  0x72   :  { %1324 = vmatmul.mubr.bf16.gmra.mrb[24].mxu1 %v2949_v15  ;;  %1613 = vmatmul.mubr.bf16.gmra.mrb[24].mxu0 %v2951_v16  ;;  %v198_v15 = vunpack.c.l.s8.bf16 %v110_v12  ;;  %v200_v16 = vunpack.c.l.s8.bf16 %v111_v13 }
  0x73   :  { %1331 = vmatprep.mubr.bf16.mxu1 %v2954_v17  ;;  %1620 = vmatprep.mubr.bf16.mxu0 %v2956_v19  ;;  %v2071_v17 = vld [vmem:[%s4241_s2 + $0x1b8] sm:$0xff]  ;;  %v201_v19 = vunpack.c.h.s8.bf16 %v111_v13 }
  0x74   :  { %2347 = vperm.xlu1 %3471, %v2069_v10   ;;  %2342 = vperm.xlu0 %3470, %v2068_v14   ;;  %v2974_v23 = vcombine.high %v198_v15, %v200_v16  ;;  %v2973_v35 = vcombine.low %v198_v15, %v200_v16  ;;  %v121_v10 = vld [vmem:[%s4240_s0 + $0x118] sm:$0xff]  ;;  %v2989_v15 = vcombine.low %v214_v1, %v216_v2 }
  0x75   :  { %v2976_v25 = vcombine.high %v199_v18, %v201_v19  ;;  %v2975_v36 = vcombine.low %v199_v18, %v201_v19  ;;  %v220_v12 = vunpack.c.l.s8.bf16 %v121_v10  ;;  %v221_v14 = vunpack.c.h.s8.bf16 %v121_v10  ;;  %v122_v19 = vld [vmem:[%s4240_s0 + $0x120] sm:$0xff] }
  0x76   :  { %v2991_v16 = vcombine.low %v215_v3, %v217_v4 }
  0x78   :  { %2357 = vperm.xlu1 %3471, %v2071_v17   ;;  %2352 = vperm.xlu0 %3470, %v2070_v20   ;;  %v123_v20 = vld [vmem:[%s4240_s0 + $0x128] sm:$0xff] }
  0x7a   :  { %1332 = vmatmul.mubr.bf16.gmra.mrb[28].mxu1 %v2953_v29  ;;  %1621 = vmatmul.mubr.bf16.gmra.mrb[28].mxu0 %v2955_v30  ;;  %v202_v29 = vunpack.c.l.s8.bf16 %v112_v26  ;;  %v204_v30 = vunpack.c.l.s8.bf16 %v113_v27 }
  0x7b   :  { %1339 = vmatprep.mubr.bf16.mxu1 %v2958_v31  ;;  %1628 = vmatprep.mubr.bf16.mxu0 %v2960_v33  ;;  %v2075_v31 = vld [vmem:[%s4241_s2 + $0x1d8] sm:$0xff]  ;;  %v205_v33 = vunpack.c.h.s8.bf16 %v113_v27 }
  0x7c   :  { %2367 = vperm.xlu1 %3471, %v2073_v24   ;;  %2362 = vperm.xlu0 %3470, %v2072_v28   ;;  %v2978_v37 = vcombine.high %v202_v29, %v204_v30  ;;  %v2977_v49 = vcombine.low %v202_v29, %v204_v30  ;;  %v225_v24 = vunpack.c.h.s8.bf16 %v123_v20  ;;  %v124_v29 = vld [vmem:[%s4240_s0 + $0x130] sm:$0xff]  ;;  %v125_v30 = vld [vmem:[%s4240_s0 + $0x138] sm:$0xff] }
  0x7d   :  { %v2980_v39 = vcombine.high %v203_v32, %v205_v33  ;;  %v2979_v50 = vcombine.low %v203_v32, %v205_v33  ;;  %v228_v32 = vunpack.c.l.s8.bf16 %v125_v30  ;;  %v227_v33 = vunpack.c.h.s8.bf16 %v124_v29 }
  0x80   :  { %2377 = vperm.xlu1 %3471, %v2075_v31   ;;  %2372 = vperm.xlu0 %3470, %v2074_v34   ;;  %v226_v31 = vunpack.c.l.s8.bf16 %v124_v29  ;;  %v229_v34 = vunpack.c.h.s8.bf16 %v125_v30 }
  0x82   :  { %1340 = vmatmul.mubr.bf16.gmra.mrb[32].mxu1 %v2957_v43  ;;  %1629 = vmatmul.mubr.bf16.gmra.mrb[32].mxu0 %v2959_v44  ;;  %v206_v43 = vunpack.c.l.s8.bf16 %v114_v40  ;;  %v208_v44 = vunpack.c.l.s8.bf16 %v115_v41  ;;  %v127_v40 = vld [vmem:[%s4240_s0 + $0x148] sm:$0xff] }
  0x83   :  { %1347 = vmatprep.mubr.bf16.mxu1 %v2962_v45  ;;  %1636 = vmatprep.mubr.bf16.mxu0 %v2964_v47  ;;  %v2079_v45 = vld [vmem:[%s4241_s2 + $0x1f8] sm:$0xff]  ;;  %v209_v47 = vunpack.c.h.s8.bf16 %v115_v41 }
  0x84   :  { %2387 = vperm.xlu1 %3471, %v2077_v38   ;;  %2382 = vperm.xlu0 %3470, %v2076_v42   ;;  %v2982_v51 = vcombine.high %v206_v43, %v208_v44  ;;  %v3004_v38 = vcombine.high %v227_v33, %v229_v34  ;;  %v232_v42 = vunpack.c.l.s8.bf16 %v127_v40 }
  0x85   :  { %v2984_v52 = vcombine.high %v207_v46, %v209_v47  ;;  %v2983_v60 = vcombine.low %v207_v46, %v209_v47  ;;  %v3003_v46 = vcombine.low %v227_v33, %v229_v34 }
  0x88   :  { %2397 = vperm.xlu1 %3471, %v2079_v45   ;;  %2392 = vperm.xlu0 %3470, %v2078_v48   ;;  %v3001_v45 = vcombine.low %v226_v31, %v228_v32 }
  0x8a   :  { %1348 = vmatmul.mubr.bf16.gmra.mrb[36].mxu1 %v2961_v57  ;;  %1637 = vmatmul.mubr.bf16.gmra.mrb[36].mxu0 %v2963_v58  ;;  %v211_v57 = vunpack.c.h.s8.bf16 %v116_v53  ;;  %v213_v58 = vunpack.c.h.s8.bf16 %v117_v54 }
  0x8b   :  { %1355 = vmatprep.mubr.bf16.mxu1 %v2966_v59  ;;  %1644 = vmatprep.mubr.bf16.mxu0 %v2968_v61  ;;  %v2981_v59 = vcombine.low %v206_v43, %v208_v44  ;;  %v2986_v61 = vcombine.high %v210_v55, %v212_v56  ;;  %v233_v44 = vunpack.c.h.s8.bf16 %v127_v40 }
  0x8c   :  { %v2988_v62 = vcombine.high %v211_v57, %v213_v58  ;;  %v2987_v6 = vcombine.low %v211_v57, %v213_v58 }
  0x92   :  { %1356 = vmatmul.mubr.bf16.gmra.mrb[40].mxu1 %v2965_v7  ;;  %1645 = vmatmul.mubr.bf16.gmra.mrb[40].mxu0 %v2967_v8  ;;  %v2990_v7 = vcombine.high %v214_v1, %v216_v2  ;;  %v2992_v8 = vcombine.high %v215_v3, %v217_v4 }
  0x93   :  { %1363 = vmatprep.mubr.bf16.mxu1 %v2970_v9  ;;  %1652 = vmatprep.mubr.bf16.mxu0 %v2972_v11  ;;  %v120_v9 = vld [vmem:[%s4240_s0 + $0x110] sm:$0xff] }
  0x94   :  { %v218_v11 = vunpack.c.l.s8.bf16 %v120_v9  ;;  %v219_v13 = vunpack.c.h.s8.bf16 %v120_v9 }
  0x96   :  { %v2994_v17 = vcombine.high %v218_v11, %v220_v12  ;;  %v2996_v18 = vcombine.high %v219_v13, %v221_v14  ;;  %v2995_v26 = vcombine.low %v219_v13, %v221_v14 }
  0x9a   :  { %1364 = vmatmul.mubr.bf16.gmra.mrb[44].mxu1 %v2969_v21  ;;  %1653 = vmatmul.mubr.bf16.gmra.mrb[44].mxu0 %v2971_v22  ;;  %v222_v21 = vunpack.c.l.s8.bf16 %v122_v19  ;;  %v224_v22 = vunpack.c.l.s8.bf16 %v123_v20 }
  0x9b   :  { %1371 = vmatprep.mubr.bf16.mxu1 %v2974_v23  ;;  %1660 = vmatprep.mubr.bf16.mxu0 %v2976_v25  ;;  %v223_v23 = vunpack.c.h.s8.bf16 %v122_v19  ;;  %v2993_v25 = vcombine.low %v218_v11, %v220_v12 }
  0x9c   :  { %v2998_v27 = vcombine.high %v222_v21, %v224_v22 }
  0x9d   :  { %v3000_v28 = vcombine.high %v223_v23, %v225_v24 }
  0xa2   :  { %1372 = vmatmul.mubr.bf16.gmra.mrb[48].mxu1 %v2973_v35  ;;  %1661 = vmatmul.mubr.bf16.gmra.mrb[48].mxu0 %v2975_v36  ;;  %v2997_v35 = vcombine.low %v222_v21, %v224_v22  ;;  %v2999_v36 = vcombine.low %v223_v23, %v225_v24 }
  0xa3   :  { %1379 = vmatprep.mubr.bf16.mxu1 %v2978_v37  ;;  %1668 = vmatprep.mubr.bf16.mxu0 %v2980_v39  ;;  %v3002_v37 = vcombine.high %v226_v31, %v228_v32  ;;  %v126_v39 = vld [vmem:[%s4240_s0 + $0x140] sm:$0xff] }
  0xa4   :  { %v230_v41 = vunpack.c.l.s8.bf16 %v126_v39  ;;  %v231_v43 = vunpack.c.h.s8.bf16 %v126_v39 }
  0xa6   :  { %v3006_v47 = vcombine.high %v230_v41, %v232_v42  ;;  %v3008_v48 = vcombine.high %v231_v43, %v233_v44  ;;  %v3005_v55 = vcombine.low %v230_v41, %v232_v42  ;;  %v3007_v56 = vcombine.low %v231_v43, %v233_v44 }
  0xaa   :  { %1380 = vmatmul.mubr.bf16.gmra.mrb[52].mxu1 %v2977_v49  ;;  %1669 = vmatmul.mubr.bf16.gmra.mrb[52].mxu0 %v2979_v50  ;;  %v128_v49 = vld [vmem:[%s4240_s0 + $0x150] sm:$0xff]  ;;  %v129_v50 = vld [vmem:[%s4240_s0 + $0x158] sm:$0xff] }
  0xab   :  { %1387 = vmatprep.mubr.bf16.mxu1 %v2982_v51  ;;  %1676 = vmatprep.mubr.bf16.mxu0 %v2984_v52  ;;  %v234_v51 = vunpack.c.l.s8.bf16 %v128_v49  ;;  %v236_v52 = vunpack.c.l.s8.bf16 %v129_v50  ;;  %v235_v53 = vunpack.c.h.s8.bf16 %v128_v49  ;;  %v237_v54 = vunpack.c.h.s8.bf16 %v129_v50 }
  0xad   :  { %v3010_v57 = vcombine.high %v234_v51, %v236_v52  ;;  %v3012_v58 = vcombine.high %v235_v53, %v237_v54  ;;  %v3009_v1 = vcombine.low %v234_v51, %v236_v52  ;;  %v3011_v2 = vcombine.low %v235_v53, %v237_v54  ;;  %v2083_v53 = vpop.permute.xlu0 %2082 }
  0xb2   :  { %1388 = vmatmul.mubr.bf16.gmra.mrb[56].mxu1 %v2981_v59  ;;  %1677 = vmatmul.mubr.bf16.gmra.mrb[56].mxu0 %v2983_v60  ;;  %v130_v59 = vld [vmem:[%s4240_s0 + $0x160] sm:$0xff]  ;;  %v131_v60 = vld [vmem:[%s4240_s0 + $0x168] sm:$0xff] }
  0xb3   :  { %1395 = vmatprep.mubr.bf16.mxu1 %v2986_v61  ;;  %1684 = vmatprep.mubr.bf16.mxu0 %v2988_v62  ;;  %v238_v61 = vunpack.c.l.s8.bf16 %v130_v59  ;;  %v240_v62 = vunpack.c.l.s8.bf16 %v131_v60  ;;  %v239_v63 = vunpack.c.h.s8.bf16 %v130_v59  ;;  %v241_v0 = vunpack.c.h.s8.bf16 %v131_v60 }
  0xb5   :  { %v3014_v3 = vcombine.high %v238_v61, %v240_v62  ;;  %v3016_v4 = vcombine.high %v239_v63, %v241_v0  ;;  %v3013_v11 = vcombine.low %v238_v61, %v240_v62  ;;  %v3015_v12 = vcombine.low %v239_v63, %v241_v0  ;;  %v2088_v63 = vpop.permute.xlu0 %2087 }
  0xba   :  { %1396 = vmatmul.mubr.bf16.gmra.mrb[60].mxu1 %v2985_v5  ;;  %1685 = vmatmul.mubr.bf16.gmra.mrb[60].mxu0 %v2987_v6  ;;  %v132_v5 = vld [vmem:[%s4240_s0 + $0x170] sm:$0xff]  ;;  %v133_v6 = vld [vmem:[%s4240_s0 + $0x178] sm:$0xff] }
  0xbb   :  { %1403 = vmatprep.mubr.bf16.mxu1 %v2990_v7  ;;  %1692 = vmatprep.mubr.bf16.mxu0 %v2992_v8  ;;  %v242_v7 = vunpack.c.l.s8.bf16 %v132_v5  ;;  %v244_v8 = vunpack.c.l.s8.bf16 %v133_v6  ;;  %v243_v9 = vunpack.c.h.s8.bf16 %v132_v5  ;;  %v245_v10 = vunpack.c.h.s8.bf16 %v133_v6 }
  0xbd   :  { %v3018_v13 = vcombine.high %v242_v7, %v244_v8  ;;  %v3020_v14 = vcombine.high %v243_v9, %v245_v10  ;;  %v3017_v21 = vcombine.low %v242_v7, %v244_v8  ;;  %v3019_v22 = vcombine.low %v243_v9, %v245_v10  ;;  %v4054_v8 = vld [vmem:[%s4242_s3] ss:$0 sm:$0xff] }
  0xc2   :  { %1404 = vmatmul.mubr.bf16.gmra.mrb[64].mxu1 %v2989_v15  ;;  %1693 = vmatmul.mubr.bf16.gmra.mrb[64].mxu0 %v2991_v16  ;;  %v134_v15 = vld [vmem:[%s4240_s0 + $0x180] sm:$0xff]  ;;  %v135_v16 = vld [vmem:[%s4240_s0 + $0x188] sm:$0xff] }
  0xc3   :  { %1411 = vmatprep.mubr.bf16.mxu1 %v2994_v17  ;;  %1700 = vmatprep.mubr.bf16.mxu0 %v2996_v18  ;;  %v246_v17 = vunpack.c.l.s8.bf16 %v134_v15  ;;  %v248_v18 = vunpack.c.l.s8.bf16 %v135_v16  ;;  %v247_v19 = vunpack.c.h.s8.bf16 %v134_v15  ;;  %v249_v20 = vunpack.c.h.s8.bf16 %v135_v16 }
  0xc5   :  { %v3022_v23 = vcombine.high %v246_v17, %v248_v18  ;;  %v3024_v24 = vcombine.high %v247_v19, %v249_v20  ;;  %v3021_v31 = vcombine.low %v246_v17, %v248_v18  ;;  %v3023_v32 = vcombine.low %v247_v19, %v249_v20 }
  0xca   :  { %1412 = vmatmul.mubr.bf16.gmra.mrb[68].mxu1 %v2993_v25  ;;  %1701 = vmatmul.mubr.bf16.gmra.mrb[68].mxu0 %v2995_v26  ;;  %v136_v25 = vld [vmem:[%s4240_s0 + $0x190] sm:$0xff]  ;;  %v137_v26 = vld [vmem:[%s4240_s0 + $0x198] sm:$0xff] }
  0xcb   :  { %1419 = vmatprep.mubr.bf16.mxu1 %v2998_v27  ;;  %1708 = vmatprep.mubr.bf16.mxu0 %v3000_v28  ;;  %v250_v27 = vunpack.c.l.s8.bf16 %v136_v25  ;;  %v252_v28 = vunpack.c.l.s8.bf16 %v137_v26  ;;  %v251_v29 = vunpack.c.h.s8.bf16 %v136_v25  ;;  %v253_v30 = vunpack.c.h.s8.bf16 %v137_v26 }
  0xcd   :  { %v3026_v33 = vcombine.high %v250_v27, %v252_v28  ;;  %v3028_v34 = vcombine.high %v251_v29, %v253_v30  ;;  %v3025_v41 = vcombine.low %v250_v27, %v252_v28  ;;  %v3027_v42 = vcombine.low %v251_v29, %v253_v30 }
  0xd2   :  { %1420 = vmatmul.mubr.bf16.gmra.mrb[72].mxu1 %v2997_v35  ;;  %1709 = vmatmul.mubr.bf16.gmra.mrb[72].mxu0 %v2999_v36  ;;  %v138_v35 = vld [vmem:[%s4240_s0 + $0x1a0] sm:$0xff]  ;;  %v139_v36 = vld [vmem:[%s4240_s0 + $0x1a8] sm:$0xff] }
  0xd3   :  { %1427 = vmatprep.mubr.bf16.mxu1 %v3002_v37  ;;  %1716 = vmatprep.mubr.bf16.mxu0 %v3004_v38  ;;  %v254_v37 = vunpack.c.l.s8.bf16 %v138_v35  ;;  %v256_v38 = vunpack.c.l.s8.bf16 %v139_v36  ;;  %v255_v39 = vunpack.c.h.s8.bf16 %v138_v35  ;;  %v257_v40 = vunpack.c.h.s8.bf16 %v139_v36 }
  0xd5   :  { %v3030_v43 = vcombine.high %v254_v37, %v256_v38  ;;  %v3032_v44 = vcombine.high %v255_v39, %v257_v40  ;;  %v3029_v51 = vcombine.low %v254_v37, %v256_v38  ;;  %v3031_v52 = vcombine.low %v255_v39, %v257_v40  ;;  %v146_v39 = vld [vmem:[%s4240_s0 + $0x1e0] sm:$0xff]  ;;  %v147_v40 = vld [vmem:[%s4240_s0 + $0x1e8] sm:$0xff] }
  0xda   :  { %1428 = vmatmul.mubr.bf16.gmra.mrb[76].mxu1 %v3001_v45  ;;  %1717 = vmatmul.mubr.bf16.gmra.mrb[76].mxu0 %v3003_v46  ;;  %v140_v45 = vld [vmem:[%s4240_s0 + $0x1b0] sm:$0xff]  ;;  %v141_v46 = vld [vmem:[%s4240_s0 + $0x1b8] sm:$0xff] }
  0xdb   :  { %1435 = vmatprep.mubr.bf16.mxu1 %v3006_v47  ;;  %1724 = vmatprep.mubr.bf16.mxu0 %v3008_v48  ;;  %v258_v47 = vunpack.c.l.s8.bf16 %v140_v45  ;;  %v260_v48 = vunpack.c.l.s8.bf16 %v141_v46  ;;  %v259_v49 = vunpack.c.h.s8.bf16 %v140_v45  ;;  %v261_v50 = vunpack.c.h.s8.bf16 %v141_v46 }
  0xdd   :  { %v3034_v54 = vcombine.high %v258_v47, %v260_v48  ;;  %v3035_v6 = vcombine.low %v259_v49, %v261_v50 }
  0xe2   :  { %1436 = vmatmul.mubr.bf16.gmra.mrb[80].mxu1 %v3005_v55  ;;  %1725 = vmatmul.mubr.bf16.gmra.mrb[80].mxu0 %v3007_v56  ;;  %v3036_v55 = vcombine.high %v259_v49, %v261_v50  ;;  %v142_v56 = vld [vmem:[%s4240_s0 + $0x1c0] sm:$0xff]  ;;  %v272_v49 = vunpack.c.l.s8.bf16 %v147_v40  ;;  %v271_v50 = vunpack.c.h.s8.bf16 %v146_v39 }
  0xe3   :  { %1443 = vmatprep.mubr.bf16.mxu1 %v3010_v57  ;;  %1732 = vmatprep.mubr.bf16.mxu0 %v3012_v58  ;;  %v143_v57 = vld [vmem:[%s4240_s0 + $0x1c8] sm:$0xff]  ;;  %v262_v58 = vunpack.c.l.s8.bf16 %v142_v56  ;;  %v263_v60 = vunpack.c.h.s8.bf16 %v142_v56 }
  0xe4   :  { %v264_v59 = vunpack.c.l.s8.bf16 %v143_v57  ;;  %v265_v61 = vunpack.c.h.s8.bf16 %v143_v57 }
  0xe6   :  { %v3038_v7 = vcombine.high %v262_v58, %v264_v59  ;;  %v3037_v28 = vcombine.low %v262_v58, %v264_v59  ;;  %v3039_v29 = vcombine.low %v263_v60, %v265_v61 }
  0xea   :  { %1444 = vmatmul.mubr.bf16.gmra.mrb[84].mxu1 %v3009_v1  ;;  %1733 = vmatmul.mubr.bf16.gmra.mrb[84].mxu0 %v3011_v2  ;;  %v3033_v2 = vcombine.low %v258_v47, %v260_v48  ;;  %v270_v48 = vunpack.c.l.s8.bf16 %v146_v39 }
  0xeb   :  { %1451 = vmatprep.mubr.bf16.mxu1 %v3014_v3  ;;  %1740 = vmatprep.mubr.bf16.mxu0 %v3016_v4 }
  0xf2   :  { %1452 = vmatmul.mubr.bf16.gmra.mrb[88].mxu1 %v3013_v11  ;;  %1741 = vmatmul.mubr.bf16.gmra.mrb[88].mxu0 %v3015_v12  ;;  %v3040_v11 = vcombine.high %v263_v60, %v265_v61  ;;  %v144_v12 = vld [vmem:[%s4240_s0 + $0x1d0] sm:$0xff] }
  0xf3   :  { %1459 = vmatprep.mubr.bf16.mxu1 %v3018_v13  ;;  %1748 = vmatprep.mubr.bf16.mxu0 %v3020_v14  ;;  %v145_v13 = vld [vmem:[%s4240_s0 + $0x1d8] sm:$0xff]  ;;  %v266_v19 = vunpack.c.l.s8.bf16 %v144_v12 }
  0xf4   :  { %v268_v20 = vunpack.c.l.s8.bf16 %v145_v13 }
  0xf6   :  { %v3042_v35 = vcombine.high %v266_v19, %v268_v20  ;;  %v3041_v57 = vcombine.low %v266_v19, %v268_v20 }
  0xfa   :  { %1460 = vmatmul.mubr.bf16.gmra.mrb[92].mxu1 %v3017_v21  ;;  %1749 = vmatmul.mubr.bf16.gmra.mrb[92].mxu0 %v3019_v22  ;;  %v2093_v21 = vpop.permute.xlu1 %2092  ;;  %v267_v22 = vunpack.c.h.s8.bf16 %v144_v12 }
  0xfb   :  { %1467 = vmatprep.mubr.bf16.mxu1 %v3022_v23  ;;  %1756 = vmatprep.mubr.bf16.mxu0 %v3024_v24  ;;  %v269_v23 = vunpack.c.h.s8.bf16 %v145_v13 }
  0xfd   :  { %v3044_v38 = vcombine.high %v267_v22, %v269_v23  ;;  %v3043_v58 = vcombine.low %v267_v22, %v269_v23  ;;  %v3045_v23 = vcombine.low %v270_v48, %v272_v49 }
  0xfe   :  { %v2098_v45 = vpop.permute.xlu1 %2097 }
 0x102   :  { %1468 = vmatmul.mubr.bf16.gmra.mrb[96].mxu1 %v3021_v31  ;;  %1757 = vmatmul.mubr.bf16.gmra.mrb[96].mxu0 %v3023_v32 }
 0x103   :  { %1475 = vmatprep.mubr.bf16.mxu1 %v3026_v33  ;;  %1764 = vmatprep.mubr.bf16.mxu0 %v3028_v34 }
 0x10a   :  { %1476 = vmatmul.mubr.bf16.gmra.mrb[100].mxu1 %v3025_v41  ;;  %1765 = vmatmul.mubr.bf16.gmra.mrb[100].mxu0 %v3027_v42 }
 0x10b   :  { %1483 = vmatprep.mubr.bf16.mxu1 %v3030_v43  ;;  %1772 = vmatprep.mubr.bf16.mxu0 %v3032_v44 }
 0x112   :  { %1484 = vmatmul.mubr.bf16.gmra.mrb[104].mxu1 %v3029_v51  ;;  %1773 = vmatmul.mubr.bf16.gmra.mrb[104].mxu0 %v3031_v52  ;;  %v273_v51 = vunpack.c.h.s8.bf16 %v147_v40 }
 0x113   :  { %1491 = vmatprep.mubr.bf16.mxu1 %v3034_v54  ;;  %1780 = vmatprep.mubr.bf16.mxu0 %v3036_v55 }
 0x115   :  { %v1277_v62 = vpop.f32.mrb[0].mxu1  ;;  %v1566_v0 = vpop.f32.mrb[0].mxu0 }
 0x116   :  { %v1279_v1 = vpop.f32.mrb[1].mxu1  ;;  %v1567_v3 = vadd.f32 %v1566_v0, %v1277_v62  ;;  %v1568_v4 = vpop.f32.mrb[1].mxu0  ;;  %v3046_v0 = vcombine.high %v270_v48, %v272_v49 }
 0x117   :  { %v1280_v5 = vpop.f32.mrb[2].mxu1  ;;  %v1569_v9 = vpop.f32.mrb[2].mxu0  ;;  %v148_v4 = vld [vmem:[%s4240_s0 + $0x1f0] sm:$0xff] }
 0x118   :  { %v1282_v10 = vpop.f32.mrb[3].mxu1  ;;  %v2400_v14 = vmul.f32 %v2083_v53, %v1567_v3  ;;  %v1570_v15 = vadd.f32 %v1569_v9, %v1280_v5  ;;  %v1571_v16 = vpop.f32.mrb[3].mxu0  ;;  %v3048_v3 = vcombine.high %v271_v50, %v273_v51  ;;  %v149_v5 = vld [vmem:[%s4240_s0 + $0x1f8] sm:$0xff] }
 0x119   :  { %v2103_v53 = vpop.permute.xlu0 %2102  ;;  %v275_v16 = vunpack.c.h.s8.bf16 %v148_v4 }
 0x11a   :  { %1492 = vmatmul.mubr.bf16.gmra.mrb[108].mxu1 %v3033_v2  ;;  %v2471_v17 = vadd.f32 %v4054_v8, %v2400_v14  ;;  %v2401_v18 = vmul.f32 %v2088_v63, %v1570_v15  ;;  %1781 = vmatmul.mubr.bf16.gmra.mrb[108].mxu0 %v3035_v6  ;;  %v274_v14 = vunpack.c.l.s8.bf16 %v148_v4  ;;  %v276_v15 = vunpack.c.l.s8.bf16 %v149_v5 }
 0x11b   :  { %1499 = vmatprep.mubr.bf16.mxu1 %v3038_v7  ;;  %1788 = vmatprep.mubr.bf16.mxu0 %v3040_v11  ;;  %v2108_v11 = vpop.permute.xlu1 %2107 }
 0x11c   :  { %v2472_v24 = vadd.f32 %v4054_v8, %v2401_v18  ;;  %v2535_v30 = vmax.f32 %v2471_v17, 0.0  ;;  %v277_v17 = vunpack.c.h.s8.bf16 %v149_v5 }
 0x11d   :  { %v1285_v25 = vpop.f32.mrb[4].mxu1  ;;  %v1574_v26 = vpop.f32.mrb[4].mxu0 }
 0x11e   :  { %v1287_v27 = vpop.f32.mrb[5].mxu1  ;;  %v2536_v31 = vmax.f32 %v2472_v24, 0.0  ;;  %v1575_v32 = vadd.f32 %v1574_v26, %v1285_v25  ;;  %v1576_v33 = vpop.f32.mrb[5].mxu0  ;;  %v3047_v24 = vcombine.low %v271_v50, %v273_v51 }
 0x11f   :  { %v1288_v34 = vpop.f32.mrb[6].mxu1  ;;  %v1577_v36 = vpop.f32.mrb[6].mxu0  ;;  %v3052_v33 = vcombine.high %v275_v16, %v277_v17 }
 0x120   :  { %v1290_v37 = vpop.f32.mrb[7].mxu1  ;;  %v3217_v41 = vpack.c.bf16 %v2536_v31, %v2535_v30  ;;  %v2402_v42 = vmul.f32 %v2093_v21, %v1575_v32  ;;  %v1578_v43 = vadd.f32 %v1577_v36, %v1288_v34  ;;  %v1579_v44 = vpop.f32.mrb[7].mxu0  ;;  %v3050_v30 = vcombine.high %v274_v14, %v276_v15 }
 0x121   :  { %v2113_v18 = vpop.permute.xlu0 %2112 }
 0x122   :  { %1500 = vmatmul.mubr.bf16.gmra.mrb[112].mxu1 %v3037_v28  ;;  %3218 = vst [vmem:[%s4243_s4] sm:$0xff] %v3217_v41   ;;  %v2473_v46 = vadd.f32 %v4054_v8, %v2402_v42  ;;  %v2403_v47 = vmul.f32 %v2098_v45, %v1578_v43  ;;  %1789 = vmatmul.mubr.bf16.gmra.mrb[112].mxu0 %v3039_v29 }
 0x123   :  { %1507 = vmatprep.mubr.bf16.mxu1 %v3042_v35  ;;  %1796 = vmatprep.mubr.bf16.mxu0 %v3044_v38  ;;  %v2118_v38 = vpop.permute.xlu1 %2117 }
 0x124   :  { %v2474_v52 = vadd.f32 %v4054_v8, %v2403_v47  ;;  %v2537_v59 = vmax.f32 %v2473_v46, 0.0  ;;  %v3049_v46 = vcombine.low %v274_v14, %v276_v15 }
 0x125   :  { %v1293_v54 = vpop.f32.mrb[8].mxu1  ;;  %v1582_v55 = vpop.f32.mrb[8].mxu0 }
 0x126   :  { %v1295_v56 = vpop.f32.mrb[9].mxu1  ;;  %v2538_v60 = vmax.f32 %v2474_v52, 0.0  ;;  %v1583_v61 = vadd.f32 %v1582_v55, %v1293_v54  ;;  %v1584_v62 = vpop.f32.mrb[9].mxu0  ;;  %v3051_v52 = vcombine.low %v275_v16, %v277_v17 }
 0x127   :  { %v1296_v63 = vpop.f32.mrb[10].mxu1  ;;  %v1585_v1 = vpop.f32.mrb[10].mxu0 }
 0x128   :  { %v1298_v2 = vpop.f32.mrb[11].mxu1  ;;  %v3222_v6 = vpack.c.bf16 %v2538_v60, %v2537_v59  ;;  %v2404_v7 = vmul.f32 %v2103_v53, %v1583_v61  ;;  %v1586_v9 = vadd.f32 %v1585_v1, %v1296_v63  ;;  %v1587_v10 = vpop.f32.mrb[11].mxu0 }
 0x129   :  { %v2123_v41 = vpop.permute.xlu0 %2122  ;;  %v2128_v59 = vpop.permute.xlu1 %2127 }
 0x12a   :  { %1508 = vmatmul.mubr.bf16.gmra.mrb[116].mxu1 %v3041_v57  ;;  %3374 = vst [vmem:[%s4243_s4 + $0x8] sm:$0xff] %v3222_v6   ;;  %v2475_v12 = vadd.f32 %v4054_v8, %v2404_v7  ;;  %v2405_v13 = vmul.f32 %v2108_v11, %v1586_v9  ;;  %1797 = vmatmul.mubr.bf16.gmra.mrb[116].mxu0 %v3043_v58 }
 0x12b   :  { %1515 = vmatprep.mubr.bf16.mxu1 %v3046_v0  ;;  %1804 = vmatprep.mubr.bf16.mxu0 %v3048_v3 }
 0x12c   :  { %v2476_v19 = vadd.f32 %v4054_v8, %v2405_v13  ;;  %v2539_v25 = vmax.f32 %v2475_v12, 0.0 }
 0x12d   :  { %v1301_v20 = vpop.f32.mrb[12].mxu1  ;;  %v1590_v21 = vpop.f32.mrb[12].mxu0 }
 0x12e   :  { %v1303_v22 = vpop.f32.mrb[13].mxu1  ;;  %v2540_v26 = vmax.f32 %v2476_v19, 0.0  ;;  %v1591_v27 = vadd.f32 %v1590_v21, %v1301_v20  ;;  %v1592_v28 = vpop.f32.mrb[13].mxu0 }
 0x12f   :  { %v1304_v29 = vpop.f32.mrb[14].mxu1  ;;  %v1593_v31 = vpop.f32.mrb[14].mxu0 }
 0x130   :  { %v1306_v32 = vpop.f32.mrb[15].mxu1  ;;  %v3227_v34 = vpack.c.bf16 %v2540_v26, %v2539_v25  ;;  %v2406_v35 = vmul.f32 %v2113_v18, %v1591_v27  ;;  %v1594_v36 = vadd.f32 %v1593_v31, %v1304_v29  ;;  %v1595_v37 = vpop.f32.mrb[15].mxu0 }
 0x131   :  { %v2133_v62 = vpop.permute.xlu0 %2132  ;;  %v2138_v15 = vpop.permute.xlu1 %2137 }
 0x132   :  { %1516 = vmatmul.mubr.bf16.gmra.mrb[120].mxu1 %v3045_v23  ;;  %3375 = vst [vmem:[%s4243_s4 + $0x10] sm:$0xff] %v3227_v34   ;;  %v2477_v39 = vadd.f32 %v4054_v8, %v2406_v35  ;;  %v2407_v40 = vmul.f32 %v2118_v38, %v1594_v36  ;;  %1805 = vmatmul.mubr.bf16.gmra.mrb[120].mxu0 %v3047_v24 }
 0x133   :  { %1523 = vmatprep.mubr.bf16.mxu1 %v3050_v30  ;;  %1812 = vmatprep.mubr.bf16.mxu0 %v3052_v33 }
 0x134   :  { %v2478_v42 = vadd.f32 %v4054_v8, %v2407_v40  ;;  %v2541_v47 = vmax.f32 %v2477_v39, 0.0 }
 0x135   :  { %v1309_v43 = vpop.f32.mrb[16].mxu1  ;;  %v1598_v44 = vpop.f32.mrb[16].mxu0 }
 0x136   :  { %v1311_v45 = vpop.f32.mrb[17].mxu1  ;;  %v2542_v48 = vmax.f32 %v2478_v42, 0.0  ;;  %v1599_v49 = vadd.f32 %v1598_v44, %v1309_v43  ;;  %v1600_v50 = vpop.f32.mrb[17].mxu0 }
 0x137   :  { %v1312_v51 = vpop.f32.mrb[18].mxu1  ;;  %v1601_v53 = vpop.f32.mrb[18].mxu0 }
 0x138   :  { %v1314_v54 = vpop.f32.mrb[19].mxu1  ;;  %v3232_v55 = vpack.c.bf16 %v2542_v48, %v2541_v47  ;;  %v2408_v56 = vmul.f32 %v2123_v41, %v1599_v49  ;;  %v1602_v57 = vadd.f32 %v1601_v53, %v1312_v51  ;;  %v1603_v58 = vpop.f32.mrb[19].mxu0 }
 0x139   :  { %v2143_v18 = vpop.permute.xlu0 %2142  ;;  %v2148_v34 = vpop.permute.xlu1 %2147 }
 0x13a   :  { %1524 = vmatmul.mubr.bf16.gmra.mrb[124].mxu1 %v3049_v46  ;;  %3376 = vst [vmem:[%s4243_s4 + $0x18] sm:$0xff] %v3232_v55   ;;  %v2479_v60 = vadd.f32 %v4054_v8, %v2408_v56  ;;  %v2409_v61 = vmul.f32 %v2128_v59, %v1602_v57  ;;  %1813 = vmatmul.mubr.bf16.gmra.mrb[124].mxu0 %v3051_v52 }
 0x13c   :  { %v2480_v63 = vadd.f32 %v4054_v8, %v2409_v61  ;;  %v2543_v3 = vmax.f32 %v2479_v60, 0.0 }
 0x13d   :  { %v1317_v0 = vpop.f32.mrb[20].mxu1  ;;  %v1606_v1 = vpop.f32.mrb[20].mxu0 }
 0x13e   :  { %v1319_v2 = vpop.f32.mrb[21].mxu1  ;;  %v2544_v4 = vmax.f32 %v2480_v63, 0.0  ;;  %v1607_v5 = vadd.f32 %v1606_v1, %v1317_v0  ;;  %v1608_v6 = vpop.f32.mrb[21].mxu0 }
 0x13f   :  { %v1320_v7 = vpop.f32.mrb[22].mxu1  ;;  %v1609_v9 = vpop.f32.mrb[22].mxu0 }
 0x140   :  { %v1322_v10 = vpop.f32.mrb[23].mxu1  ;;  %v3237_v11 = vpack.c.bf16 %v2544_v4, %v2543_v3  ;;  %v2410_v12 = vmul.f32 %v2133_v62, %v1607_v5  ;;  %v1610_v13 = vadd.f32 %v1609_v9, %v1320_v7  ;;  %v1611_v14 = vpop.f32.mrb[23].mxu0 }
 0x141   :  { %v2153_v37 = vpop.permute.xlu0 %2152  ;;  %v2158_v53 = vpop.permute.xlu1 %2157 }
 0x142   :  { %3377 = vst [vmem:[%s4243_s4 + $0x20] sm:$0xff] %v3237_v11   ;;  %v2481_v16 = vadd.f32 %v4054_v8, %v2410_v12  ;;  %v2411_v17 = vmul.f32 %v2138_v15, %v1610_v13 }
 0x144   :  { %v2482_v19 = vadd.f32 %v4054_v8, %v2411_v17  ;;  %v2545_v23 = vmax.f32 %v2481_v16, 0.0 }
 0x145   :  { %v1325_v20 = vpop.f32.mrb[24].mxu1  ;;  %v1614_v21 = vpop.f32.mrb[24].mxu0 }
 0x146   :  { %v1327_v22 = vpop.f32.mrb[25].mxu1  ;;  %v2546_v24 = vmax.f32 %v2482_v19, 0.0  ;;  %v1615_v25 = vadd.f32 %v1614_v21, %v1325_v20  ;;  %v1616_v26 = vpop.f32.mrb[25].mxu0 }
 0x147   :  { %v1328_v27 = vpop.f32.mrb[26].mxu1  ;;  %v1617_v28 = vpop.f32.mrb[26].mxu0 }
 0x148   :  { %v1330_v29 = vpop.f32.mrb[27].mxu1  ;;  %v3242_v30 = vpack.c.bf16 %v2546_v24, %v2545_v23  ;;  %v2412_v31 = vmul.f32 %v2143_v18, %v1615_v25  ;;  %v1618_v32 = vadd.f32 %v1617_v28, %v1328_v27  ;;  %v1619_v33 = vpop.f32.mrb[27].mxu0 }
 0x149   :  { %v2163_v56 = vpop.permute.xlu0 %2162  ;;  %v2168_v9 = vpop.permute.xlu1 %2167 }
 0x14a   :  { %3378 = vst [vmem:[%s4243_s4 + $0x28] sm:$0xff] %v3242_v30   ;;  %v2483_v35 = vadd.f32 %v4054_v8, %v2412_v31  ;;  %v2413_v36 = vmul.f32 %v2148_v34, %v1618_v32 }
 0x14c   :  { %v2484_v38 = vadd.f32 %v4054_v8, %v2413_v36  ;;  %v2547_v42 = vmax.f32 %v2483_v35, 0.0 }
 0x14d   :  { %v1333_v39 = vpop.f32.mrb[28].mxu1  ;;  %v1622_v40 = vpop.f32.mrb[28].mxu0 }
 0x14e   :  { %v1335_v41 = vpop.f32.mrb[29].mxu1  ;;  %v2548_v43 = vmax.f32 %v2484_v38, 0.0  ;;  %v1623_v44 = vadd.f32 %v1622_v40, %v1333_v39  ;;  %v1624_v45 = vpop.f32.mrb[29].mxu0 }
 0x14f   :  { %v1336_v46 = vpop.f32.mrb[30].mxu1  ;;  %v1625_v47 = vpop.f32.mrb[30].mxu0 }
 0x150   :  { %v1338_v48 = vpop.f32.mrb[31].mxu1  ;;  %v3247_v49 = vpack.c.bf16 %v2548_v43, %v2547_v42  ;;  %v2414_v50 = vmul.f32 %v2153_v37, %v1623_v44  ;;  %v1626_v51 = vadd.f32 %v1625_v47, %v1336_v46  ;;  %v1627_v52 = vpop.f32.mrb[31].mxu0 }
 0x151   :  { %v2173_v12 = vpop.permute.xlu0 %2172  ;;  %v2178_v28 = vpop.permute.xlu1 %2177 }
 0x152   :  { %3379 = vst [vmem:[%s4243_s4 + $0x30] sm:$0xff] %v3247_v49   ;;  %v2485_v54 = vadd.f32 %v4054_v8, %v2414_v50  ;;  %v2415_v55 = vmul.f32 %v2158_v53, %v1626_v51 }
 0x154   :  { %v2486_v57 = vadd.f32 %v4054_v8, %v2415_v55  ;;  %v2549_v61 = vmax.f32 %v2485_v54, 0.0 }
 0x155   :  { %v1341_v58 = vpop.f32.mrb[32].mxu1  ;;  %v1630_v59 = vpop.f32.mrb[32].mxu0 }
 0x156   :  { %v1343_v60 = vpop.f32.mrb[33].mxu1  ;;  %v2550_v62 = vmax.f32 %v2486_v57, 0.0  ;;  %v1631_v63 = vadd.f32 %v1630_v59, %v1341_v58  ;;  %v1632_v0 = vpop.f32.mrb[33].mxu0 }
 0x157   :  { %v1344_v1 = vpop.f32.mrb[34].mxu1  ;;  %v1633_v2 = vpop.f32.mrb[34].mxu0 }
 0x158   :  { %v1346_v3 = vpop.f32.mrb[35].mxu1  ;;  %v3252_v4 = vpack.c.bf16 %v2550_v62, %v2549_v61  ;;  %v2416_v5 = vmul.f32 %v2163_v56, %v1631_v63  ;;  %v1634_v6 = vadd.f32 %v1633_v2, %v1344_v1  ;;  %v1635_v7 = vpop.f32.mrb[35].mxu0 }
 0x159   :  { %v2183_v31 = vpop.permute.xlu0 %2182  ;;  %v2188_v47 = vpop.permute.xlu1 %2187 }
 0x15a   :  { %3380 = vst [vmem:[%s4243_s4 + $0x38] sm:$0xff] %v3252_v4   ;;  %v2487_v10 = vadd.f32 %v4054_v8, %v2416_v5  ;;  %v2417_v11 = vmul.f32 %v2168_v9, %v1634_v6 }
 0x15c   :  { %v2488_v13 = vadd.f32 %v4054_v8, %v2417_v11  ;;  %v2551_v17 = vmax.f32 %v2487_v10, 0.0 }
 0x15d   :  { %v1349_v14 = vpop.f32.mrb[36].mxu1  ;;  %v1638_v15 = vpop.f32.mrb[36].mxu0 }
 0x15e   :  { %v1351_v16 = vpop.f32.mrb[37].mxu1  ;;  %v2552_v18 = vmax.f32 %v2488_v13, 0.0  ;;  %v1639_v19 = vadd.f32 %v1638_v15, %v1349_v14  ;;  %v1640_v20 = vpop.f32.mrb[37].mxu0 }
 0x15f   :  { %v1352_v21 = vpop.f32.mrb[38].mxu1  ;;  %v1641_v22 = vpop.f32.mrb[38].mxu0 }
 0x160   :  { %v1354_v23 = vpop.f32.mrb[39].mxu1  ;;  %v3257_v24 = vpack.c.bf16 %v2552_v18, %v2551_v17  ;;  %v2418_v25 = vmul.f32 %v2173_v12, %v1639_v19  ;;  %v1642_v26 = vadd.f32 %v1641_v22, %v1352_v21  ;;  %v1643_v27 = vpop.f32.mrb[39].mxu0 }
 0x161   :  { %v2193_v50 = vpop.permute.xlu0 %2192  ;;  %v2198_v2 = vpop.permute.xlu1 %2197 }
 0x162   :  { %3381 = vst [vmem:[%s4243_s4 + $0x40] sm:$0xff] %v3257_v24   ;;  %v2489_v29 = vadd.f32 %v4054_v8, %v2418_v25  ;;  %v2419_v30 = vmul.f32 %v2178_v28, %v1642_v26 }
 0x164   :  { %v2490_v32 = vadd.f32 %v4054_v8, %v2419_v30  ;;  %v2553_v36 = vmax.f32 %v2489_v29, 0.0 }
 0x165   :  { %v1357_v33 = vpop.f32.mrb[40].mxu1  ;;  %v1646_v34 = vpop.f32.mrb[40].mxu0 }
 0x166   :  { %v1359_v35 = vpop.f32.mrb[41].mxu1  ;;  %v2554_v37 = vmax.f32 %v2490_v32, 0.0  ;;  %v1647_v38 = vadd.f32 %v1646_v34, %v1357_v33  ;;  %v1648_v39 = vpop.f32.mrb[41].mxu0 }
 0x167   :  { %v1360_v40 = vpop.f32.mrb[42].mxu1  ;;  %v1649_v41 = vpop.f32.mrb[42].mxu0 }
 0x168   :  { %v1362_v42 = vpop.f32.mrb[43].mxu1  ;;  %v3262_v43 = vpack.c.bf16 %v2554_v37, %v2553_v36  ;;  %v2420_v44 = vmul.f32 %v2183_v31, %v1647_v38  ;;  %v1650_v45 = vadd.f32 %v1649_v41, %v1360_v40  ;;  %v1651_v46 = vpop.f32.mrb[43].mxu0 }
 0x169   :  { %v2203_v5 = vpop.permute.xlu0 %2202  ;;  %v2208_v22 = vpop.permute.xlu1 %2207 }
 0x16a   :  { %3382 = vst [vmem:[%s4243_s4 + $0x48] sm:$0xff] %v3262_v43   ;;  %v2491_v48 = vadd.f32 %v4054_v8, %v2420_v44  ;;  %v2421_v49 = vmul.f32 %v2188_v47, %v1650_v45 }
 0x16c   :  { %v2492_v51 = vadd.f32 %v4054_v8, %v2421_v49  ;;  %v2555_v55 = vmax.f32 %v2491_v48, 0.0 }
 0x16d   :  { %v1365_v52 = vpop.f32.mrb[44].mxu1  ;;  %v1654_v53 = vpop.f32.mrb[44].mxu0 }
 0x16e   :  { %v1367_v54 = vpop.f32.mrb[45].mxu1  ;;  %v2556_v56 = vmax.f32 %v2492_v51, 0.0  ;;  %v1655_v57 = vadd.f32 %v1654_v53, %v1365_v52  ;;  %v1656_v58 = vpop.f32.mrb[45].mxu0 }
 0x16f   :  { %v1368_v59 = vpop.f32.mrb[46].mxu1  ;;  %v1657_v60 = vpop.f32.mrb[46].mxu0 }
 0x170   :  { %v1370_v61 = vpop.f32.mrb[47].mxu1  ;;  %v3267_v62 = vpack.c.bf16 %v2556_v56, %v2555_v55  ;;  %v2422_v63 = vmul.f32 %v2193_v50, %v1655_v57  ;;  %v1658_v0 = vadd.f32 %v1657_v60, %v1368_v59  ;;  %v1659_v1 = vpop.f32.mrb[47].mxu0 }
 0x171   :  { %v2213_v25 = vpop.permute.xlu0 %2212  ;;  %v2218_v41 = vpop.permute.xlu1 %2217 }
 0x172   :  { %3383 = vst [vmem:[%s4243_s4 + $0x50] sm:$0xff] %v3267_v62   ;;  %v2493_v3 = vadd.f32 %v4054_v8, %v2422_v63  ;;  %v2423_v4 = vmul.f32 %v2198_v2, %v1658_v0 }
 0x174   :  { %v2494_v6 = vadd.f32 %v4054_v8, %v2423_v4  ;;  %v2557_v11 = vmax.f32 %v2493_v3, 0.0 }
 0x175   :  { %v1373_v7 = vpop.f32.mrb[48].mxu1  ;;  %v1662_v9 = vpop.f32.mrb[48].mxu0 }
 0x176   :  { %v1375_v10 = vpop.f32.mrb[49].mxu1  ;;  %v2558_v12 = vmax.f32 %v2494_v6, 0.0  ;;  %v1663_v13 = vadd.f32 %v1662_v9, %v1373_v7  ;;  %v1664_v14 = vpop.f32.mrb[49].mxu0 }
 0x177   :  { %v1376_v15 = vpop.f32.mrb[50].mxu1  ;;  %v1665_v16 = vpop.f32.mrb[50].mxu0 }
 0x178   :  { %v1378_v17 = vpop.f32.mrb[51].mxu1  ;;  %v3272_v18 = vpack.c.bf16 %v2558_v12, %v2557_v11  ;;  %v2424_v19 = vmul.f32 %v2203_v5, %v1663_v13  ;;  %v1666_v20 = vadd.f32 %v1665_v16, %v1376_v15  ;;  %v1667_v21 = vpop.f32.mrb[51].mxu0 }
 0x179   :  { %v2223_v44 = vpop.permute.xlu0 %2222  ;;  %v2228_v60 = vpop.permute.xlu1 %2227 }
 0x17a   :  { %3384 = vst [vmem:[%s4243_s4 + $0x58] sm:$0xff] %v3272_v18   ;;  %v2495_v23 = vadd.f32 %v4054_v8, %v2424_v19  ;;  %v2425_v24 = vmul.f32 %v2208_v22, %v1666_v20 }
 0x17c   :  { %v2496_v26 = vadd.f32 %v4054_v8, %v2425_v24  ;;  %v2559_v30 = vmax.f32 %v2495_v23, 0.0 }
 0x17d   :  { %v1381_v27 = vpop.f32.mrb[52].mxu1  ;;  %v1670_v28 = vpop.f32.mrb[52].mxu0 }
 0x17e   :  { %v1383_v29 = vpop.f32.mrb[53].mxu1  ;;  %v2560_v31 = vmax.f32 %v2496_v26, 0.0  ;;  %v1671_v32 = vadd.f32 %v1670_v28, %v1381_v27  ;;  %v1672_v33 = vpop.f32.mrb[53].mxu0 }
 0x17f   :  { %v1384_v34 = vpop.f32.mrb[54].mxu1  ;;  %v1673_v35 = vpop.f32.mrb[54].mxu0 }
 0x180   :  { %v1386_v36 = vpop.f32.mrb[55].mxu1  ;;  %v3277_v37 = vpack.c.bf16 %v2560_v31, %v2559_v30  ;;  %v2426_v38 = vmul.f32 %v2213_v25, %v1671_v32  ;;  %v1674_v39 = vadd.f32 %v1673_v35, %v1384_v34  ;;  %v1675_v40 = vpop.f32.mrb[55].mxu0 }
 0x181   :  { %v2233_v63 = vpop.permute.xlu0 %2232  ;;  %v2238_v16 = vpop.permute.xlu1 %2237 }
 0x182   :  { %3385 = vst [vmem:[%s4243_s4 + $0x60] sm:$0xff] %v3277_v37   ;;  %v2497_v42 = vadd.f32 %v4054_v8, %v2426_v38  ;;  %v2427_v43 = vmul.f32 %v2218_v41, %v1674_v39 }
 0x184   :  { %v2498_v45 = vadd.f32 %v4054_v8, %v2427_v43  ;;  %v2561_v49 = vmax.f32 %v2497_v42, 0.0 }
 0x185   :  { %v1389_v46 = vpop.f32.mrb[56].mxu1  ;;  %v1678_v47 = vpop.f32.mrb[56].mxu0 }
 0x186   :  { %v1391_v48 = vpop.f32.mrb[57].mxu1  ;;  %v2562_v50 = vmax.f32 %v2498_v45, 0.0  ;;  %v1679_v51 = vadd.f32 %v1678_v47, %v1389_v46  ;;  %v1680_v52 = vpop.f32.mrb[57].mxu0 }
 0x187   :  { %v1392_v53 = vpop.f32.mrb[58].mxu1  ;;  %v1681_v54 = vpop.f32.mrb[58].mxu0 }
 0x188   :  { %v1394_v55 = vpop.f32.mrb[59].mxu1  ;;  %v3282_v56 = vpack.c.bf16 %v2562_v50, %v2561_v49  ;;  %v2428_v57 = vmul.f32 %v2223_v44, %v1679_v51  ;;  %v1682_v58 = vadd.f32 %v1681_v54, %v1392_v53  ;;  %v1683_v59 = vpop.f32.mrb[59].mxu0 }
 0x189   :  { %v2243_v19 = vpop.permute.xlu0 %2242  ;;  %v2248_v35 = vpop.permute.xlu1 %2247 }
 0x18a   :  { %3386 = vst [vmem:[%s4243_s4 + $0x68] sm:$0xff] %v3282_v56   ;;  %v2499_v61 = vadd.f32 %v4054_v8, %v2428_v57  ;;  %v2429_v62 = vmul.f32 %v2228_v60, %v1682_v58 }
 0x18c   :  { %v2500_v0 = vadd.f32 %v4054_v8, %v2429_v62  ;;  %v2563_v4 = vmax.f32 %v2499_v61, 0.0 }
 0x18d   :  { %v1397_v1 = vpop.f32.mrb[60].mxu1  ;;  %v1686_v2 = vpop.f32.mrb[60].mxu0 }
 0x18e   :  { %v1399_v3 = vpop.f32.mrb[61].mxu1  ;;  %v2564_v5 = vmax.f32 %v2500_v0, 0.0  ;;  %v1687_v6 = vadd.f32 %v1686_v2, %v1397_v1  ;;  %v1688_v7 = vpop.f32.mrb[61].mxu0 }
 0x18f   :  { %v1400_v9 = vpop.f32.mrb[62].mxu1  ;;  %v1689_v10 = vpop.f32.mrb[62].mxu0 }
 0x190   :  { %v1402_v11 = vpop.f32.mrb[63].mxu1  ;;  %v3287_v12 = vpack.c.bf16 %v2564_v5, %v2563_v4  ;;  %v2430_v13 = vmul.f32 %v2233_v63, %v1687_v6  ;;  %v1690_v14 = vadd.f32 %v1689_v10, %v1400_v9  ;;  %v1691_v15 = vpop.f32.mrb[63].mxu0 }
 0x191   :  { %v2253_v38 = vpop.permute.xlu0 %2252  ;;  %v2258_v54 = vpop.permute.xlu1 %2257 }
 0x192   :  { %3387 = vst [vmem:[%s4243_s4 + $0x70] sm:$0xff] %v3287_v12   ;;  %v2501_v17 = vadd.f32 %v4054_v8, %v2430_v13  ;;  %v2431_v18 = vmul.f32 %v2238_v16, %v1690_v14 }
 0x194   :  { %v2502_v20 = vadd.f32 %v4054_v8, %v2431_v18  ;;  %v2565_v24 = vmax.f32 %v2501_v17, 0.0 }
 0x195   :  { %v1405_v21 = vpop.f32.mrb[64].mxu1  ;;  %v1694_v22 = vpop.f32.mrb[64].mxu0 }
 0x196   :  { %v1407_v23 = vpop.f32.mrb[65].mxu1  ;;  %v2566_v25 = vmax.f32 %v2502_v20, 0.0  ;;  %v1695_v26 = vadd.f32 %v1694_v22, %v1405_v21  ;;  %v1696_v27 = vpop.f32.mrb[65].mxu0 }
 0x197   :  { %v1408_v28 = vpop.f32.mrb[66].mxu1  ;;  %v1697_v29 = vpop.f32.mrb[66].mxu0 }
 0x198   :  { %v1410_v30 = vpop.f32.mrb[67].mxu1  ;;  %v3292_v31 = vpack.c.bf16 %v2566_v25, %v2565_v24  ;;  %v2432_v32 = vmul.f32 %v2243_v19, %v1695_v26  ;;  %v1698_v33 = vadd.f32 %v1697_v29, %v1408_v28  ;;  %v1699_v34 = vpop.f32.mrb[67].mxu0 }
 0x199   :  { %v2263_v57 = vpop.permute.xlu0 %2262  ;;  %v2268_v10 = vpop.permute.xlu1 %2267 }
 0x19a   :  { %3388 = vst [vmem:[%s4243_s4 + $0x78] sm:$0xff] %v3292_v31   ;;  %v2503_v36 = vadd.f32 %v4054_v8, %v2432_v32  ;;  %v2433_v37 = vmul.f32 %v2248_v35, %v1698_v33 }
 0x19c   :  { %v2504_v39 = vadd.f32 %v4054_v8, %v2433_v37  ;;  %v2567_v43 = vmax.f32 %v2503_v36, 0.0 }
 0x19d   :  { %v1413_v40 = vpop.f32.mrb[68].mxu1  ;;  %v1702_v41 = vpop.f32.mrb[68].mxu0 }
 0x19e   :  { %v1415_v42 = vpop.f32.mrb[69].mxu1  ;;  %v2568_v44 = vmax.f32 %v2504_v39, 0.0  ;;  %v1703_v45 = vadd.f32 %v1702_v41, %v1413_v40  ;;  %v1704_v46 = vpop.f32.mrb[69].mxu0 }
 0x19f   :  { %v1416_v47 = vpop.f32.mrb[70].mxu1  ;;  %v1705_v48 = vpop.f32.mrb[70].mxu0 }
 0x1a0   :  { %v1418_v49 = vpop.f32.mrb[71].mxu1  ;;  %v3297_v50 = vpack.c.bf16 %v2568_v44, %v2567_v43  ;;  %v2434_v51 = vmul.f32 %v2253_v38, %v1703_v45  ;;  %v1706_v52 = vadd.f32 %v1705_v48, %v1416_v47  ;;  %v1707_v53 = vpop.f32.mrb[71].mxu0 }
 0x1a1   :  { %v2273_v13 = vpop.permute.xlu0 %2272  ;;  %v2278_v29 = vpop.permute.xlu1 %2277 }
 0x1a2   :  { %3389 = vst [vmem:[%s4243_s4 + $0x80] sm:$0xff] %v3297_v50   ;;  %v2505_v55 = vadd.f32 %v4054_v8, %v2434_v51  ;;  %v2435_v56 = vmul.f32 %v2258_v54, %v1706_v52 }
 0x1a4   :  { %v2506_v58 = vadd.f32 %v4054_v8, %v2435_v56  ;;  %v2569_v62 = vmax.f32 %v2505_v55, 0.0 }
 0x1a5   :  { %v1421_v59 = vpop.f32.mrb[72].mxu1  ;;  %v1710_v60 = vpop.f32.mrb[72].mxu0 }
 0x1a6   :  { %v1423_v61 = vpop.f32.mrb[73].mxu1  ;;  %v2570_v63 = vmax.f32 %v2506_v58, 0.0  ;;  %v1711_v0 = vadd.f32 %v1710_v60, %v1421_v59  ;;  %v1712_v1 = vpop.f32.mrb[73].mxu0 }
 0x1a7   :  { %v1424_v2 = vpop.f32.mrb[74].mxu1  ;;  %v1713_v3 = vpop.f32.mrb[74].mxu0 }
 0x1a8   :  { %v1426_v4 = vpop.f32.mrb[75].mxu1  ;;  %v3302_v5 = vpack.c.bf16 %v2570_v63, %v2569_v62  ;;  %v2436_v6 = vmul.f32 %v2263_v57, %v1711_v0  ;;  %v1714_v7 = vadd.f32 %v1713_v3, %v1424_v2  ;;  %v1715_v9 = vpop.f32.mrb[75].mxu0 }
 0x1a9   :  { %v2283_v32 = vpop.permute.xlu0 %2282  ;;  %v2288_v48 = vpop.permute.xlu1 %2287 }
 0x1aa   :  { %3390 = vst [vmem:[%s4243_s4 + $0x88] sm:$0xff] %v3302_v5   ;;  %v2507_v11 = vadd.f32 %v4054_v8, %v2436_v6  ;;  %v2437_v12 = vmul.f32 %v2268_v10, %v1714_v7 }
 0x1ac   :  { %v2508_v14 = vadd.f32 %v4054_v8, %v2437_v12  ;;  %v2571_v18 = vmax.f32 %v2507_v11, 0.0 }
 0x1ad   :  { %v1429_v15 = vpop.f32.mrb[76].mxu1  ;;  %v1718_v16 = vpop.f32.mrb[76].mxu0 }
 0x1ae   :  { %v1431_v17 = vpop.f32.mrb[77].mxu1  ;;  %v2572_v19 = vmax.f32 %v2508_v14, 0.0  ;;  %v1719_v20 = vadd.f32 %v1718_v16, %v1429_v15  ;;  %v1720_v21 = vpop.f32.mrb[77].mxu0 }
 0x1af   :  { %v1432_v22 = vpop.f32.mrb[78].mxu1  ;;  %v1721_v23 = vpop.f32.mrb[78].mxu0 }
 0x1b0   :  { %v1434_v24 = vpop.f32.mrb[79].mxu1  ;;  %v3307_v25 = vpack.c.bf16 %v2572_v19, %v2571_v18  ;;  %v2438_v26 = vmul.f32 %v2273_v13, %v1719_v20  ;;  %v1722_v27 = vadd.f32 %v1721_v23, %v1432_v22  ;;  %v1723_v28 = vpop.f32.mrb[79].mxu0 }
 0x1b1   :  { %v2293_v51 = vpop.permute.xlu0 %2292  ;;  %v2298_v3 = vpop.permute.xlu1 %2297 }
 0x1b2   :  { %3391 = vst [vmem:[%s4243_s4 + $0x90] sm:$0xff] %v3307_v25   ;;  %v2509_v30 = vadd.f32 %v4054_v8, %v2438_v26  ;;  %v2439_v31 = vmul.f32 %v2278_v29, %v1722_v27 }
 0x1b4   :  { %v2510_v33 = vadd.f32 %v4054_v8, %v2439_v31  ;;  %v2573_v37 = vmax.f32 %v2509_v30, 0.0 }
 0x1b5   :  { %v1437_v34 = vpop.f32.mrb[80].mxu1  ;;  %v1726_v35 = vpop.f32.mrb[80].mxu0 }
 0x1b6   :  { %v1439_v36 = vpop.f32.mrb[81].mxu1  ;;  %v2574_v38 = vmax.f32 %v2510_v33, 0.0  ;;  %v1727_v39 = vadd.f32 %v1726_v35, %v1437_v34  ;;  %v1728_v40 = vpop.f32.mrb[81].mxu0 }
 0x1b7   :  { %v1440_v41 = vpop.f32.mrb[82].mxu1  ;;  %v1729_v42 = vpop.f32.mrb[82].mxu0 }
 0x1b8   :  { %v1442_v43 = vpop.f32.mrb[83].mxu1  ;;  %v3312_v44 = vpack.c.bf16 %v2574_v38, %v2573_v37  ;;  %v2440_v45 = vmul.f32 %v2283_v32, %v1727_v39  ;;  %v1730_v46 = vadd.f32 %v1729_v42, %v1440_v41  ;;  %v1731_v47 = vpop.f32.mrb[83].mxu0 }
 0x1b9   :  { %v2303_v6 = vpop.permute.xlu0 %2302  ;;  %v2308_v23 = vpop.permute.xlu1 %2307 }
 0x1ba   :  { %3392 = vst [vmem:[%s4243_s4 + $0x98] sm:$0xff] %v3312_v44   ;;  %v2511_v49 = vadd.f32 %v4054_v8, %v2440_v45  ;;  %v2441_v50 = vmul.f32 %v2288_v48, %v1730_v46 }
 0x1bc   :  { %v2512_v52 = vadd.f32 %v4054_v8, %v2441_v50  ;;  %v2575_v56 = vmax.f32 %v2511_v49, 0.0 }
 0x1bd   :  { %v1445_v53 = vpop.f32.mrb[84].mxu1  ;;  %v1734_v54 = vpop.f32.mrb[84].mxu0 }
 0x1be   :  { %v1447_v55 = vpop.f32.mrb[85].mxu1  ;;  %v2576_v57 = vmax.f32 %v2512_v52, 0.0  ;;  %v1735_v58 = vadd.f32 %v1734_v54, %v1445_v53  ;;  %v1736_v59 = vpop.f32.mrb[85].mxu0 }
 0x1bf   :  { %v1448_v60 = vpop.f32.mrb[86].mxu1  ;;  %v1737_v61 = vpop.f32.mrb[86].mxu0 }
 0x1c0   :  { %v1450_v62 = vpop.f32.mrb[87].mxu1  ;;  %v3317_v63 = vpack.c.bf16 %v2576_v57, %v2575_v56  ;;  %v2442_v0 = vmul.f32 %v2293_v51, %v1735_v58  ;;  %v1738_v1 = vadd.f32 %v1737_v61, %v1448_v60  ;;  %v1739_v2 = vpop.f32.mrb[87].mxu0 }
 0x1c1   :  { %v2313_v26 = vpop.permute.xlu0 %2312  ;;  %v2318_v42 = vpop.permute.xlu1 %2317 }
 0x1c2   :  { %3393 = vst [vmem:[%s4243_s4 + $0xa0] sm:$0xff] %v3317_v63   ;;  %v2513_v4 = vadd.f32 %v4054_v8, %v2442_v0  ;;  %v2443_v5 = vmul.f32 %v2298_v3, %v1738_v1 }
 0x1c4   :  { %v2514_v7 = vadd.f32 %v4054_v8, %v2443_v5  ;;  %v2577_v12 = vmax.f32 %v2513_v4, 0.0 }
 0x1c5   :  { %v1453_v9 = vpop.f32.mrb[88].mxu1  ;;  %v1742_v10 = vpop.f32.mrb[88].mxu0 }
 0x1c6   :  { %v1455_v11 = vpop.f32.mrb[89].mxu1  ;;  %v2578_v13 = vmax.f32 %v2514_v7, 0.0  ;;  %v1743_v14 = vadd.f32 %v1742_v10, %v1453_v9  ;;  %v1744_v15 = vpop.f32.mrb[89].mxu0 }
 0x1c7   :  { %v1456_v16 = vpop.f32.mrb[90].mxu1  ;;  %v1745_v17 = vpop.f32.mrb[90].mxu0 }
 0x1c8   :  { %v1458_v18 = vpop.f32.mrb[91].mxu1  ;;  %v3322_v19 = vpack.c.bf16 %v2578_v13, %v2577_v12  ;;  %v2444_v20 = vmul.f32 %v2303_v6, %v1743_v14  ;;  %v1746_v21 = vadd.f32 %v1745_v17, %v1456_v16  ;;  %v1747_v22 = vpop.f32.mrb[91].mxu0 }
 0x1c9   :  { %v2323_v45 = vpop.permute.xlu0 %2322  ;;  %v2328_v61 = vpop.permute.xlu1 %2327 }
 0x1ca   :  { %3394 = vst [vmem:[%s4243_s4 + $0xa8] sm:$0xff] %v3322_v19   ;;  %v2515_v24 = vadd.f32 %v4054_v8, %v2444_v20  ;;  %v2445_v25 = vmul.f32 %v2308_v23, %v1746_v21 }
 0x1cc   :  { %v2516_v27 = vadd.f32 %v4054_v8, %v2445_v25  ;;  %v2579_v31 = vmax.f32 %v2515_v24, 0.0  ;;  %v4192_v8 = vld [vmem:[%s4242_s3] ss:$0 sm:$0xff] }
 0x1cd   :  { %v1461_v28 = vpop.f32.mrb[92].mxu1  ;;  %v1750_v29 = vpop.f32.mrb[92].mxu0 }
 0x1ce   :  { %v1463_v30 = vpop.f32.mrb[93].mxu1  ;;  %v2580_v32 = vmax.f32 %v2516_v27, 0.0  ;;  %v1751_v33 = vadd.f32 %v1750_v29, %v1461_v28  ;;  %v1752_v34 = vpop.f32.mrb[93].mxu0 }
 0x1cf   :  { %v1464_v35 = vpop.f32.mrb[94].mxu1  ;;  %v1753_v36 = vpop.f32.mrb[94].mxu0 }
 0x1d0   :  { %v1466_v37 = vpop.f32.mrb[95].mxu1  ;;  %v3327_v38 = vpack.c.bf16 %v2580_v32, %v2579_v31  ;;  %v2446_v39 = vmul.f32 %v2313_v26, %v1751_v33  ;;  %v1754_v40 = vadd.f32 %v1753_v36, %v1464_v35  ;;  %v1755_v41 = vpop.f32.mrb[95].mxu0 }
 0x1d1   :  { %v2333_v0 = vpop.permute.xlu0 %2332  ;;  %v2338_v17 = vpop.permute.xlu1 %2337 }
 0x1d2   :  { %3395 = vst [vmem:[%s4243_s4 + $0xb0] sm:$0xff] %v3327_v38   ;;  %v2517_v43 = vadd.f32 %v4192_v8, %v2446_v39  ;;  %v2447_v44 = vmul.f32 %v2318_v42, %v1754_v40 }
 0x1d4   :  { %v2518_v46 = vadd.f32 %v4192_v8, %v2447_v44  ;;  %v2581_v50 = vmax.f32 %v2517_v43, 0.0 }
 0x1d5   :  { %v1469_v47 = vpop.f32.mrb[96].mxu1  ;;  %v1758_v48 = vpop.f32.mrb[96].mxu0 }
 0x1d6   :  { %v1471_v49 = vpop.f32.mrb[97].mxu1  ;;  %v2582_v51 = vmax.f32 %v2518_v46, 0.0  ;;  %v1759_v52 = vadd.f32 %v1758_v48, %v1469_v47  ;;  %v1760_v53 = vpop.f32.mrb[97].mxu0 }
 0x1d7   :  { %v1472_v54 = vpop.f32.mrb[98].mxu1  ;;  %v1761_v55 = vpop.f32.mrb[98].mxu0 }
 0x1d8   :  { %v1474_v56 = vpop.f32.mrb[99].mxu1  ;;  %v3332_v57 = vpack.c.bf16 %v2582_v51, %v2581_v50  ;;  %v2448_v58 = vmul.f32 %v2323_v45, %v1759_v52  ;;  %v1762_v59 = vadd.f32 %v1761_v55, %v1472_v54  ;;  %v1763_v60 = vpop.f32.mrb[99].mxu0 }
 0x1d9   :  { %v2343_v20 = vpop.permute.xlu0 %2342  ;;  %v2348_v36 = vpop.permute.xlu1 %2347 }
 0x1da   :  { %3396 = vst [vmem:[%s4243_s4 + $0xb8] sm:$0xff] %v3332_v57   ;;  %v2519_v62 = vadd.f32 %v4192_v8, %v2448_v58  ;;  %v2449_v63 = vmul.f32 %v2328_v61, %v1762_v59 }
 0x1dc   :  { %v2520_v1 = vadd.f32 %v4192_v8, %v2449_v63  ;;  %v2583_v5 = vmax.f32 %v2519_v62, 0.0 }
 0x1dd   :  { %v1477_v2 = vpop.f32.mrb[100].mxu1  ;;  %v1766_v3 = vpop.f32.mrb[100].mxu0 }
 0x1de   :  { %v1479_v4 = vpop.f32.mrb[101].mxu1  ;;  %v2584_v6 = vmax.f32 %v2520_v1, 0.0  ;;  %v1767_v7 = vadd.f32 %v1766_v3, %v1477_v2  ;;  %v1768_v9 = vpop.f32.mrb[101].mxu0 }
 0x1df   :  { %v1480_v10 = vpop.f32.mrb[102].mxu1  ;;  %v1769_v11 = vpop.f32.mrb[102].mxu0 }
 0x1e0   :  { %v1482_v12 = vpop.f32.mrb[103].mxu1  ;;  %v3337_v13 = vpack.c.bf16 %v2584_v6, %v2583_v5  ;;  %v2450_v14 = vmul.f32 %v2333_v0, %v1767_v7  ;;  %v1770_v15 = vadd.f32 %v1769_v11, %v1480_v10  ;;  %v1771_v16 = vpop.f32.mrb[103].mxu0 }
 0x1e1   :  { %v2353_v39 = vpop.permute.xlu0 %2352  ;;  %v2358_v55 = vpop.permute.xlu1 %2357 }
 0x1e2   :  { %3397 = vst [vmem:[%s4243_s4 + $0xc0] sm:$0xff] %v3337_v13   ;;  %v2521_v18 = vadd.f32 %v4192_v8, %v2450_v14  ;;  %v2451_v19 = vmul.f32 %v2338_v17, %v1770_v15 }
 0x1e4   :  { %v2522_v21 = vadd.f32 %v4192_v8, %v2451_v19  ;;  %v2585_v25 = vmax.f32 %v2521_v18, 0.0 }
 0x1e5   :  { %v1485_v22 = vpop.f32.mrb[104].mxu1  ;;  %v1774_v23 = vpop.f32.mrb[104].mxu0 }
 0x1e6   :  { %v1487_v24 = vpop.f32.mrb[105].mxu1  ;;  %v2586_v26 = vmax.f32 %v2522_v21, 0.0  ;;  %v1775_v27 = vadd.f32 %v1774_v23, %v1485_v22  ;;  %v1776_v28 = vpop.f32.mrb[105].mxu0 }
 0x1e7   :  { %v1488_v29 = vpop.f32.mrb[106].mxu1  ;;  %v1777_v30 = vpop.f32.mrb[106].mxu0 }
 0x1e8   :  { %v1490_v31 = vpop.f32.mrb[107].mxu1  ;;  %v3342_v32 = vpack.c.bf16 %v2586_v26, %v2585_v25  ;;  %v2452_v33 = vmul.f32 %v2343_v20, %v1775_v27  ;;  %v1778_v34 = vadd.f32 %v1777_v30, %v1488_v29  ;;  %v1779_v35 = vpop.f32.mrb[107].mxu0 }
 0x1e9   :  { %v2363_v58 = vpop.permute.xlu0 %2362  ;;  %v2368_v11 = vpop.permute.xlu1 %2367 }
 0x1ea   :  { %3398 = vst [vmem:[%s4243_s4 + $0xc8] sm:$0xff] %v3342_v32   ;;  %v2523_v37 = vadd.f32 %v4192_v8, %v2452_v33  ;;  %v2453_v38 = vmul.f32 %v2348_v36, %v1778_v34 }
 0x1ec   :  { %v2524_v40 = vadd.f32 %v4192_v8, %v2453_v38  ;;  %v2587_v44 = vmax.f32 %v2523_v37, 0.0 }
 0x1ed   :  { %v1493_v41 = vpop.f32.mrb[108].mxu1  ;;  %v1782_v42 = vpop.f32.mrb[108].mxu0 }
 0x1ee   :  { %v1495_v43 = vpop.f32.mrb[109].mxu1  ;;  %v2588_v45 = vmax.f32 %v2524_v40, 0.0  ;;  %v1783_v46 = vadd.f32 %v1782_v42, %v1493_v41  ;;  %v1784_v47 = vpop.f32.mrb[109].mxu0 }
 0x1ef   :  { %v1496_v48 = vpop.f32.mrb[110].mxu1  ;;  %v1785_v49 = vpop.f32.mrb[110].mxu0 }
 0x1f0   :  { %v1498_v50 = vpop.f32.mrb[111].mxu1  ;;  %v3347_v51 = vpack.c.bf16 %v2588_v45, %v2587_v44  ;;  %v2454_v52 = vmul.f32 %v2353_v39, %v1783_v46  ;;  %v1786_v53 = vadd.f32 %v1785_v49, %v1496_v48  ;;  %v1787_v54 = vpop.f32.mrb[111].mxu0 }
 0x1f1   :  { %v2373_v14 = vpop.permute.xlu0 %2372  ;;  %v2378_v30 = vpop.permute.xlu1 %2377 }
 0x1f2   :  { %3399 = vst [vmem:[%s4243_s4 + $0xd0] sm:$0xff] %v3347_v51   ;;  %v2525_v56 = vadd.f32 %v4192_v8, %v2454_v52  ;;  %v2455_v57 = vmul.f32 %v2358_v55, %v1786_v53 }
 0x1f4   :  { %v2526_v59 = vadd.f32 %v4192_v8, %v2455_v57  ;;  %v2589_v63 = vmax.f32 %v2525_v56, 0.0 }
 0x1f5   :  { %v1501_v60 = vpop.f32.mrb[112].mxu1  ;;  %v1790_v61 = vpop.f32.mrb[112].mxu0 }
 0x1f6   :  { %v1503_v62 = vpop.f32.mrb[113].mxu1  ;;  %v2590_v0 = vmax.f32 %v2526_v59, 0.0  ;;  %v1791_v1 = vadd.f32 %v1790_v61, %v1501_v60  ;;  %v1792_v2 = vpop.f32.mrb[113].mxu0 }
 0x1f7   :  { %v1504_v3 = vpop.f32.mrb[114].mxu1  ;;  %v1793_v4 = vpop.f32.mrb[114].mxu0 }
 0x1f8   :  { %v1506_v5 = vpop.f32.mrb[115].mxu1  ;;  %v3352_v6 = vpack.c.bf16 %v2590_v0, %v2589_v63  ;;  %v2456_v7 = vmul.f32 %v2363_v58, %v1791_v1  ;;  %v1794_v9 = vadd.f32 %v1793_v4, %v1504_v3  ;;  %v1795_v10 = vpop.f32.mrb[115].mxu0 }
 0x1f9   :  { %v2383_v33 = vpop.permute.xlu0 %2382  ;;  %v2388_v49 = vpop.permute.xlu1 %2387 }
 0x1fa   :  { %3400 = vst [vmem:[%s4243_s4 + $0xd8] sm:$0xff] %v3352_v6   ;;  %v2527_v12 = vadd.f32 %v4192_v8, %v2456_v7  ;;  %v2457_v13 = vmul.f32 %v2368_v11, %v1794_v9 }
 0x1fc   :  { %v2528_v15 = vadd.f32 %v4192_v8, %v2457_v13  ;;  %v2591_v19 = vmax.f32 %v2527_v12, 0.0 }
 0x1fd   :  { %v1509_v16 = vpop.f32.mrb[116].mxu1  ;;  %v1798_v17 = vpop.f32.mrb[116].mxu0 }
 0x1fe   :  { %v1511_v18 = vpop.f32.mrb[117].mxu1  ;;  %v2592_v20 = vmax.f32 %v2528_v15, 0.0  ;;  %v1799_v21 = vadd.f32 %v1798_v17, %v1509_v16  ;;  %v1800_v22 = vpop.f32.mrb[117].mxu0 }
 0x1ff   :  { %v1512_v23 = vpop.f32.mrb[118].mxu1  ;;  %v1801_v24 = vpop.f32.mrb[118].mxu0 }
 0x200   :  { %v1514_v25 = vpop.f32.mrb[119].mxu1  ;;  %v3357_v26 = vpack.c.bf16 %v2592_v20, %v2591_v19  ;;  %v2458_v27 = vmul.f32 %v2373_v14, %v1799_v21  ;;  %v1802_v28 = vadd.f32 %v1801_v24, %v1512_v23  ;;  %v1803_v29 = vpop.f32.mrb[119].mxu0 }
 0x201   :  { %v2393_v52 = vpop.permute.xlu0 %2392  ;;  %v2398_v4 = vpop.permute.xlu1 %2397 }
 0x202   :  { %3401 = vst [vmem:[%s4243_s4 + $0xe0] sm:$0xff] %v3357_v26   ;;  %v2529_v31 = vadd.f32 %v4192_v8, %v2458_v27  ;;  %v2459_v32 = vmul.f32 %v2378_v30, %v1802_v28 }
 0x204   :  { %v2530_v34 = vadd.f32 %v4192_v8, %v2459_v32  ;;  %v2593_v38 = vmax.f32 %v2529_v31, 0.0 }
 0x205   :  { %v1517_v35 = vpop.f32.mrb[120].mxu1  ;;  %v1806_v36 = vpop.f32.mrb[120].mxu0 }
 0x206   :  { %v1519_v37 = vpop.f32.mrb[121].mxu1  ;;  %v2594_v39 = vmax.f32 %v2530_v34, 0.0  ;;  %v1807_v40 = vadd.f32 %v1806_v36, %v1517_v35  ;;  %v1808_v41 = vpop.f32.mrb[121].mxu0 }
 0x207   :  { %v1520_v42 = vpop.f32.mrb[122].mxu1  ;;  %v1809_v43 = vpop.f32.mrb[122].mxu0 }
 0x208   :  { %v1522_v44 = vpop.f32.mrb[123].mxu1  ;;  %v3362_v45 = vpack.c.bf16 %v2594_v39, %v2593_v38  ;;  %v2460_v46 = vmul.f32 %v2383_v33, %v1807_v40  ;;  %v1810_v47 = vadd.f32 %v1809_v43, %v1520_v42  ;;  %v1811_v48 = vpop.f32.mrb[123].mxu0 }
 0x20a   :  { %3402 = vst [vmem:[%s4243_s4 + $0xe8] sm:$0xff] %v3362_v45   ;;  %v2531_v50 = vadd.f32 %v4192_v8, %v2460_v46  ;;  %v2461_v51 = vmul.f32 %v2388_v49, %v1810_v47 }
 0x20c   :  { %v2532_v53 = vadd.f32 %v4192_v8, %v2461_v51  ;;  %v2595_v57 = vmax.f32 %v2531_v50, 0.0 }
 0x20d   :  { %v1525_v54 = vpop.f32.mrb[124].mxu1  ;;  %v1814_v55 = vpop.f32.mrb[124].mxu0 }
 0x20e   :  { %v1527_v56 = vpop.f32.mrb[125].mxu1  ;;  %v2596_v58 = vmax.f32 %v2532_v53, 0.0  ;;  %v1815_v59 = vadd.f32 %v1814_v55, %v1525_v54  ;;  %v1816_v60 = vpop.f32.mrb[125].mxu0 }
 0x20f   :  { %v1528_v61 = vpop.f32.mrb[126].mxu1  ;;  %v1817_v62 = vpop.f32.mrb[126].mxu0 }
 0x210   :  { %v1530_v63 = vpop.f32.mrb[127].mxu1  ;;  %v3367_v0 = vpack.c.bf16 %v2596_v58, %v2595_v57  ;;  %v2462_v1 = vmul.f32 %v2393_v52, %v1815_v59  ;;  %v1818_v2 = vadd.f32 %v1817_v62, %v1528_v61  ;;  %v1819_v3 = vpop.f32.mrb[127].mxu0 }
 0x212   :  { %3403 = vst [vmem:[%s4243_s4 + $0xf0] sm:$0xff] %v3367_v0   ;;  %v2533_v5 = vadd.f32 %v4192_v8, %v2462_v1  ;;  %v2463_v6 = vmul.f32 %v2398_v4, %v1818_v2 }
 0x214   :  { %v2534_v7 = vadd.f32 %v4192_v8, %v2463_v6  ;;  %v2597_v9 = vmax.f32 %v2533_v5, 0.0 }
 0x216   :  { %v2598_v10 = vmax.f32 %v2534_v7, 0.0 }
 0x218   :  { %v3372_v11 = vpack.c.bf16 %v2598_v10, %v2597_v9 }
 0x21a   :  { %3404 = vst [vmem:[%s4243_s4 + $0xf8] sm:$0xff] %v3372_v11  }

// kernel: gcn_forward.7
= control target key start
LH: loop header
LB: loop body
LE: loop exit
PB: predicated region body
PF: predicated region fallthrough
CT: control target
= control target key end

     0   :  { %v2866_v0 = vmov 0   ;;  %s3696_s1 = inlined_call_operand.vmem [shape: bf16[512,128], index: 1, kind: input, shape index: {}]   ;;  %s3697_s0 = inlined_call_operand.vmem [shape: s8[512,512], index: 0, kind: input, shape index: {}]   ;;  %s3698_s2 = inlined_call_operand.vmem [shape: f32[512,1], index: 2, kind: input, shape index: {}]   ;;  %s3699_s3 = inlined_call_operand.vmem [shape: f32[1,128], index: 3, kind: input, shape index: {}]   ;;  %s3700_s4 = inlined_call_operand.vmem [shape: f32[512,128], index: 4, kind: output, shape index: {}]  }
   0x1   :  { %1243 = vmatprep.subr.bf16.mxu1 %v2866_v0  ;;  %1532 = vmatprep.subr.bf16.mxu0 %v2866_v0  ;;  %v2833_v1 = vld [vmem:[%s3696_s1] sm:$0xff]   ;;  %v2835_v3 = vld [vmem:[%s3696_s1 + $0x8] sm:$0xff]   ;;  %v2837_v5 = vld [vmem:[%s3696_s1 + $0x10] sm:$0xff]  }
   0x2   :  { %v2834_v2 = vld [vmem:[%s3696_s1 + $0x80] sm:$0xff]   ;;  %2831 = vset.pattern.permute.xlu0 %v2866_v0  ;;  %2832 = vset.pattern.permute.xlu1 %v2866_v0  ;;  %v2836_v4 = vld [vmem:[%s3696_s1 + $0x88] sm:$0xff]   ;;  %v2838_v6 = vld [vmem:[%s3696_s1 + $0x90] sm:$0xff]  }
   0x3   :  { %1244 = vmatpush1.bf16.msra.mxu1 %v2833_v1  ;;  %1533 = vmatpush1.bf16.msra.mxu0 %v2834_v2  ;;  %v2839_v7 = vld [vmem:[%s3696_s1 + $0x18] sm:$0xff]   ;;  %v2841_v9 = vld [vmem:[%s3696_s1 + $0x20] sm:$0xff]   ;;  %v2843_v11 = vld [vmem:[%s3696_s1 + $0x28] sm:$0xff]  }
   0x4   :  { %1245 = vmatprep.subr.bf16.mxu1 %v2866_v0  ;;  %1534 = vmatprep.subr.bf16.mxu0 %v2866_v0  ;;  %v2840_v8 = vld [vmem:[%s3696_s1 + $0x98] sm:$0xff]   ;;  %v2842_v10 = vld [vmem:[%s3696_s1 + $0xa0] sm:$0xff]   ;;  %v2844_v12 = vld [vmem:[%s3696_s1 + $0xa8] sm:$0xff]  }
   0x5   :  { %v2845_v13 = vld [vmem:[%s3696_s1 + $0x30] sm:$0xff]   ;;  %v2847_v15 = vld [vmem:[%s3696_s1 + $0x38] sm:$0xff]   ;;  %v2849_v17 = vld [vmem:[%s3696_s1 + $0x40] sm:$0xff]  }
   0x6   :  { %v2846_v14 = vld [vmem:[%s3696_s1 + $0xb0] sm:$0xff]   ;;  %v2848_v16 = vld [vmem:[%s3696_s1 + $0xb8] sm:$0xff]   ;;  %v2850_v18 = vld [vmem:[%s3696_s1 + $0xc0] sm:$0xff]  }
   0x7   :  { %1246 = vmatpush1.bf16.msra.mxu1 %v2835_v3  ;;  %1535 = vmatpush1.bf16.msra.mxu0 %v2836_v4  ;;  %v2969_v19 = vld [vmem:[%s3697_s0] sm:$0xff]  ;;  %v2974_v20 = vld [vmem:[%s3697_s0 + $0x8] sm:$0xff]  ;;  %v2853_v29 = vld [vmem:[%s3696_s1 + $0x50] sm:$0xff]  }
   0x8   :  { %1247 = vmatprep.subr.bf16.mxu1 %v2866_v0  ;;  %1536 = vmatprep.subr.bf16.mxu0 %v2866_v0  ;;  %v150_v21 = vunpack.c.l.s8.bf16 %v2969_v19  ;;  %v152_v22 = vunpack.c.l.s8.bf16 %v2974_v20  ;;  %v151_v23 = vunpack.c.h.s8.bf16 %v2969_v19  ;;  %v153_v24 = vunpack.c.h.s8.bf16 %v2974_v20  ;;  %v2851_v25 = vld [vmem:[%s3696_s1 + $0x48] sm:$0xff]   ;;  %v2854_v30 = vld [vmem:[%s3696_s1 + $0xd0] sm:$0xff]   ;;  %v2016_v31 = vld [vmem:[%s3698_s2] sm:$0xff] }
   0x9   :  { %v2852_v26 = vld [vmem:[%s3696_s1 + $0xc8] sm:$0xff]   ;;  %v2018_v32 = vld [vmem:[%s3698_s2 + $0x10] sm:$0xff]  ;;  %2082 = vperm.xlu0 %2831, %v2016_v31   ;;  %v2855_v33 = vld [vmem:[%s3696_s1 + $0x58] sm:$0xff]  }
   0xa   :  { %v2606_v27 = vcombine.high %v150_v21, %v152_v22  ;;  %v2608_v28 = vcombine.high %v151_v23, %v153_v24  ;;  %2092 = vperm.xlu1 %2832, %v2018_v32   ;;  %v2017_v34 = vld [vmem:[%s3698_s2 + $0x8] sm:$0xff]  ;;  %v2019_v35 = vld [vmem:[%s3698_s2 + $0x18] sm:$0xff]  ;;  %v2857_v37 = vld [vmem:[%s3696_s1 + $0x60] sm:$0xff]   ;;  %v2605_v59 = vcombine.low %v150_v21, %v152_v22  ;;  %v2607_v60 = vcombine.low %v151_v23, %v153_v24 }
   0xb   :  { %1248 = vmatpush1.bf16.msra.mxu1 %v2837_v5  ;;  %1537 = vmatpush1.bf16.msra.mxu0 %v2838_v6  ;;  %v2856_v36 = vld [vmem:[%s3696_s1 + $0xd8] sm:$0xff]   ;;  %v2021_v38 = vld [vmem:[%s3698_s2 + $0x28] sm:$0xff]  ;;  %v2020_v39 = vld [vmem:[%s3698_s2 + $0x20] sm:$0xff] }
   0xc   :  { %1249 = vmatprep.subr.bf16.mxu1 %v2866_v0  ;;  %1538 = vmatprep.subr.bf16.mxu0 %v2866_v0  ;;  %v2858_v40 = vld [vmem:[%s3696_s1 + $0xe0] sm:$0xff]   ;;  %v2859_v41 = vld [vmem:[%s3696_s1 + $0x68] sm:$0xff]   ;;  %v2023_v42 = vld [vmem:[%s3698_s2 + $0x38] sm:$0xff] }
   0xd   :  { %1275 = vmatprep.mubr.bf16.mxu1 %v2606_v27  ;;  %1564 = vmatprep.mubr.bf16.mxu0 %v2608_v28  ;;  %v2022_v43 = vld [vmem:[%s3698_s2 + $0x30] sm:$0xff]  ;;  %v2860_v44 = vld [vmem:[%s3696_s1 + $0xe8] sm:$0xff]   ;;  %v2024_v47 = vld [vmem:[%s3698_s2 + $0x40] sm:$0xff] }
   0xe   :  { %2087 = vperm.xlu0 %2831, %v2017_v34   ;;  %2097 = vperm.xlu1 %2832, %v2019_v35   ;;  %v2861_v45 = vld [vmem:[%s3696_s1 + $0x70] sm:$0xff]   ;;  %v2025_v46 = vld [vmem:[%s3698_s2 + $0x48] sm:$0xff]  ;;  %v89_v50 = vld [vmem:[%s3697_s0 + $0x18] sm:$0xff] }
   0xf   :  { %1250 = vmatpush1.bf16.msra.mxu1 %v2839_v7  ;;  %1539 = vmatpush1.bf16.msra.mxu0 %v2840_v8  ;;  %v2862_v48 = vld [vmem:[%s3696_s1 + $0xf0] sm:$0xff]   ;;  %v2863_v51 = vld [vmem:[%s3696_s1 + $0x78] sm:$0xff]   ;;  %v156_v53 = vunpack.c.l.s8.bf16 %v89_v50  ;;  %v157_v58 = vunpack.c.h.s8.bf16 %v89_v50  ;;  %v2029_v62 = vld [vmem:[%s3698_s2 + $0x68] sm:$0xff] }
  0x10   :  { %1251 = vmatprep.subr.bf16.mxu1 %v2866_v0  ;;  %1540 = vmatprep.subr.bf16.mxu0 %v2866_v0  ;;  %v88_v49 = vld [vmem:[%s3697_s0 + $0x10] sm:$0xff]  ;;  %v2027_v54 = vld [vmem:[%s3698_s2 + $0x58] sm:$0xff]  ;;  %v91_v1 = vld [vmem:[%s3697_s0 + $0x28] sm:$0xff] }
  0x11   :  { %v154_v52 = vunpack.c.l.s8.bf16 %v88_v49  ;;  %v2026_v55 = vld [vmem:[%s3698_s2 + $0x50] sm:$0xff]  ;;  %v2864_v56 = vld [vmem:[%s3696_s1 + $0xf8] sm:$0xff]   ;;  %v155_v57 = vunpack.c.h.s8.bf16 %v88_v49  ;;  %v2028_v2 = vld [vmem:[%s3698_s2 + $0x60] sm:$0xff]  ;;  %v160_v4 = vunpack.c.l.s8.bf16 %v91_v1  ;;  %v161_v7 = vunpack.c.h.s8.bf16 %v91_v1 }
  0x12   :  { %2107 = vperm.xlu1 %2832, %v2021_v38   ;;  %2102 = vperm.xlu0 %2831, %v2020_v39   ;;  %v2031_v5 = vld [vmem:[%s3698_s2 + $0x78] sm:$0xff]  ;;  %v2030_v8 = vld [vmem:[%s3698_s2 + $0x70] sm:$0xff]  ;;  %v94_v28 = vld [vmem:[%s3697_s0 + $0x40] sm:$0xff] }
  0x13   :  { %1252 = vmatpush1.bf16.msra.mxu1 %v2841_v9  ;;  %1541 = vmatpush1.bf16.msra.mxu0 %v2842_v10  ;;  %v2610_v61 = vcombine.high %v154_v52, %v156_v53  ;;  %v2612_v63 = vcombine.high %v155_v57, %v157_v58  ;;  %v2609_v9 = vcombine.low %v154_v52, %v156_v53  ;;  %v2035_v19 = vld [vmem:[%s3698_s2 + $0x98] sm:$0xff]  ;;  %v2034_v22 = vld [vmem:[%s3698_s2 + $0x90] sm:$0xff]  ;;  %v166_v31 = vunpack.c.l.s8.bf16 %v94_v28 }
  0x14   :  { %1253 = vmatprep.subr.bf16.mxu1 %v2866_v0  ;;  %1542 = vmatprep.subr.bf16.mxu0 %v2866_v0  ;;  %v2611_v10 = vcombine.low %v155_v57, %v157_v58  ;;  %v167_v34 = vunpack.c.h.s8.bf16 %v94_v28  ;;  %v2042_v50 = vld [vmem:[%s3698_s2 + $0xd0] sm:$0xff]  ;;  %v99_v57 = vld [vmem:[%s3697_s0 + $0x68] sm:$0xff]  ;;  %v2044_v58 = vld [vmem:[%s3698_s2 + $0xe0] sm:$0xff] }
  0x15   :  { %v2054_v28 = vld [vmem:[%s3698_s2 + $0x130] sm:$0xff] }
  0x16   :  { %2117 = vperm.xlu1 %2832, %v2023_v42   ;;  %2112 = vperm.xlu0 %2831, %v2022_v43   ;;  %v96_v42 = vld [vmem:[%s3697_s0 + $0x50] sm:$0xff]  ;;  %v97_v43 = vld [vmem:[%s3697_s0 + $0x58] sm:$0xff] }
  0x17   :  { %1254 = vmatpush1.bf16.msra.mxu1 %v2843_v11  ;;  %1543 = vmatpush1.bf16.msra.mxu0 %v2844_v12  ;;  %v2033_v12 = vld [vmem:[%s3698_s2 + $0x88] sm:$0xff]  ;;  %v173_v49 = vunpack.c.h.s8.bf16 %v97_v43 }
  0x18   :  { %1255 = vmatprep.subr.bf16.mxu1 %v2866_v0  ;;  %1544 = vmatprep.subr.bf16.mxu0 %v2866_v0 }
  0x1a   :  { %2127 = vperm.xlu1 %2832, %v2025_v46   ;;  %2122 = vperm.xlu0 %2831, %v2024_v47   ;;  %v172_v46 = vunpack.c.l.s8.bf16 %v97_v43  ;;  %v2043_v47 = vld [vmem:[%s3698_s2 + $0xd8] sm:$0xff] }
  0x1b   :  { %1256 = vmatpush1.bf16.msra.mxu1 %v2845_v13  ;;  %1545 = vmatpush1.bf16.msra.mxu0 %v2846_v14  ;;  %v92_v14 = vld [vmem:[%s3697_s0 + $0x30] sm:$0xff] }
  0x1c   :  { %1257 = vmatprep.subr.bf16.mxu1 %v2866_v0  ;;  %1546 = vmatprep.subr.bf16.mxu0 %v2866_v0  ;;  %v163_v20 = vunpack.c.h.s8.bf16 %v92_v14 }
  0x1e   :  { %2137 = vperm.xlu1 %2832, %v2027_v54   ;;  %2132 = vperm.xlu0 %2831, %v2026_v55   ;;  %v2045_v54 = vld [vmem:[%s3698_s2 + $0xe8] sm:$0xff] }
  0x1f   :  { %1258 = vmatpush1.bf16.msra.mxu1 %v2847_v15  ;;  %1547 = vmatpush1.bf16.msra.mxu0 %v2848_v16  ;;  %v93_v15 = vld [vmem:[%s3697_s0 + $0x38] sm:$0xff]  ;;  %v2032_v16 = vld [vmem:[%s3698_s2 + $0x80] sm:$0xff] }
  0x20   :  { %1259 = vmatprep.subr.bf16.mxu1 %v2866_v0  ;;  %1548 = vmatprep.subr.bf16.mxu0 %v2866_v0  ;;  %v165_v21 = vunpack.c.h.s8.bf16 %v93_v15 }
  0x22   :  { %2147 = vperm.xlu1 %2832, %v2029_v62   ;;  %2142 = vperm.xlu0 %2831, %v2028_v2   ;;  %v2620_v27 = vcombine.high %v163_v20, %v165_v21  ;;  %v2619_v38 = vcombine.low %v163_v20, %v165_v21  ;;  %v102_v20 = vld [vmem:[%s3697_s0 + $0x80] sm:$0xff]  ;;  %v103_v21 = vld [vmem:[%s3697_s0 + $0x88] sm:$0xff] }
  0x23   :  { %1260 = vmatpush1.bf16.msra.mxu1 %v2849_v17  ;;  %1549 = vmatpush1.bf16.msra.mxu0 %v2850_v18  ;;  %v162_v17 = vunpack.c.l.s8.bf16 %v92_v14  ;;  %v164_v18 = vunpack.c.l.s8.bf16 %v93_v15  ;;  %v2050_v14 = vld [vmem:[%s3698_s2 + $0x110] sm:$0xff] }
  0x24   :  { %1261 = vmatprep.subr.bf16.mxu1 %v2866_v0  ;;  %1550 = vmatprep.subr.bf16.mxu0 %v2866_v0 }
  0x26   :  { %2157 = vperm.xlu1 %2832, %v2031_v5   ;;  %2152 = vperm.xlu0 %2831, %v2030_v8   ;;  %v2048_v8 = vld [vmem:[%s3698_s2 + $0x100] sm:$0xff] }
  0x27   :  { %1262 = vmatpush1.bf16.msra.mxu1 %v2851_v25  ;;  %1551 = vmatpush1.bf16.msra.mxu0 %v2852_v26  ;;  %v2618_v25 = vcombine.high %v162_v17, %v164_v18  ;;  %v2037_v26 = vld [vmem:[%s3698_s2 + $0xa8] sm:$0xff] }
  0x28   :  { %1263 = vmatprep.subr.bf16.mxu1 %v2866_v0  ;;  %1552 = vmatprep.subr.bf16.mxu0 %v2866_v0 }
  0x2a   :  { %2167 = vperm.xlu1 %2832, %v2033_v12   ;;  %2162 = vperm.xlu0 %2831, %v2032_v16  }
  0x2b   :  { %1264 = vmatpush1.bf16.msra.mxu1 %v2853_v29  ;;  %1553 = vmatpush1.bf16.msra.mxu0 %v2854_v30  ;;  %v95_v29 = vld [vmem:[%s3697_s0 + $0x48] sm:$0xff]  ;;  %v2036_v30 = vld [vmem:[%s3698_s2 + $0xa0] sm:$0xff] }
  0x2c   :  { %1265 = vmatprep.subr.bf16.mxu1 %v2866_v0  ;;  %1554 = vmatprep.subr.bf16.mxu0 %v2866_v0  ;;  %v168_v32 = vunpack.c.l.s8.bf16 %v95_v29  ;;  %v169_v35 = vunpack.c.h.s8.bf16 %v95_v29 }
  0x2e   :  { %2177 = vperm.xlu1 %2832, %v2035_v19   ;;  %2172 = vperm.xlu0 %2831, %v2034_v22   ;;  %v2622_v39 = vcombine.high %v166_v31, %v168_v32  ;;  %v2623_v52 = vcombine.low %v167_v34, %v169_v35  ;;  %v2052_v22 = vld [vmem:[%s3698_s2 + $0x120] sm:$0xff] }
  0x2f   :  { %1266 = vmatpush1.bf16.msra.mxu1 %v2855_v33  ;;  %1555 = vmatpush1.bf16.msra.mxu0 %v2856_v36  ;;  %v2039_v33 = vld [vmem:[%s3698_s2 + $0xb8] sm:$0xff]  ;;  %v2038_v36 = vld [vmem:[%s3698_s2 + $0xb0] sm:$0xff] }
  0x30   :  { %1267 = vmatprep.subr.bf16.mxu1 %v2866_v0  ;;  %1556 = vmatprep.subr.bf16.mxu0 %v2866_v0 }
  0x32   :  { %2187 = vperm.xlu1 %2832, %v2037_v26   ;;  %2182 = vperm.xlu0 %2831, %v2036_v30   ;;  %v183_v26 = vunpack.c.h.s8.bf16 %v102_v20 }
  0x33   :  { %1268 = vmatpush1.bf16.msra.mxu1 %v2857_v37  ;;  %1557 = vmatpush1.bf16.msra.mxu0 %v2858_v40  ;;  %v2617_v37 = vcombine.low %v162_v17, %v164_v18  ;;  %v2041_v40 = vld [vmem:[%s3698_s2 + $0xc8] sm:$0xff] }
  0x34   :  { %1269 = vmatprep.subr.bf16.mxu1 %v2866_v0  ;;  %1558 = vmatprep.subr.bf16.mxu0 %v2866_v0  ;;  %v2053_v18 = vld [vmem:[%s3698_s2 + $0x128] sm:$0xff] }
  0x36   :  { %2197 = vperm.xlu1 %2832, %v2039_v33   ;;  %2192 = vperm.xlu0 %2831, %v2038_v36   ;;  %v2056_v36 = vld [vmem:[%s3698_s2 + $0x140] sm:$0xff] }
  0x37   :  { %1270 = vmatpush1.bf16.msra.mxu1 %v2859_v41  ;;  %1559 = vmatpush1.bf16.msra.mxu0 %v2860_v44  ;;  %v2624_v41 = vcombine.high %v167_v34, %v169_v35  ;;  %v2040_v44 = vld [vmem:[%s3698_s2 + $0xc0] sm:$0xff]  ;;  %v104_v34 = vld [vmem:[%s3697_s0 + $0x90] sm:$0xff]  ;;  %v105_v35 = vld [vmem:[%s3697_s0 + $0x98] sm:$0xff] }
  0x38   :  { %1271 = vmatprep.subr.bf16.mxu1 %v2866_v0  ;;  %1560 = vmatprep.subr.bf16.mxu0 %v2866_v0 }
  0x3a   :  { %2207 = vperm.xlu1 %2832, %v2041_v40   ;;  %2202 = vperm.xlu0 %2831, %v2040_v44   ;;  %v187_v40 = vunpack.c.h.s8.bf16 %v104_v34 }
  0x3b   :  { %1272 = vmatpush1.bf16.msra.mxu1 %v2861_v45  ;;  %1561 = vmatpush1.bf16.msra.mxu0 %v2862_v48  ;;  %v170_v45 = vunpack.c.l.s8.bf16 %v96_v42  ;;  %v171_v48 = vunpack.c.h.s8.bf16 %v96_v42  ;;  %v2058_v42 = vld [vmem:[%s3698_s2 + $0x150] sm:$0xff] }
  0x3c   :  { %1273 = vmatprep.subr.bf16.mxu1 %v2866_v0  ;;  %1562 = vmatprep.subr.bf16.mxu0 %v2866_v0  ;;  %v90_v0 = vld [vmem:[%s3697_s0 + $0x20] sm:$0xff] }
  0x3d   :  { %v158_v3 = vunpack.c.l.s8.bf16 %v90_v0  ;;  %v159_v6 = vunpack.c.h.s8.bf16 %v90_v0  ;;  %v2626_v53 = vcombine.high %v170_v45, %v172_v46  ;;  %v2628_v55 = vcombine.high %v171_v48, %v173_v49  ;;  %v2046_v0 = vld [vmem:[%s3698_s2 + $0xf0] sm:$0xff] }
  0x3e   :  { %2217 = vperm.xlu1 %2832, %v2043_v47   ;;  %2212 = vperm.xlu0 %2831, %v2042_v50   ;;  %v2625_v1 = vcombine.low %v170_v45, %v172_v46  ;;  %v2627_v2 = vcombine.low %v171_v48, %v173_v49  ;;  %v2061_v46 = vld [vmem:[%s3698_s2 + $0x168] sm:$0xff]  ;;  %v106_v48 = vld [vmem:[%s3697_s0 + $0xa0] sm:$0xff] }
  0x3f   :  { %1274 = vmatpush1.bf16.msra.mxu1 %v2863_v51  ;;  %1563 = vmatpush1.bf16.msra.mxu0 %v2864_v56  ;;  %v2614_v11 = vcombine.high %v158_v3, %v160_v4  ;;  %v2616_v13 = vcombine.high %v159_v6, %v161_v7  ;;  %v2613_v23 = vcombine.low %v158_v3, %v160_v4  ;;  %v98_v56 = vld [vmem:[%s3697_s0 + $0x60] sm:$0xff]  ;;  %v2049_v4 = vld [vmem:[%s3698_s2 + $0x108] sm:$0xff] }
  0x40   :  { %v2615_v24 = vcombine.low %v159_v6, %v161_v7  ;;  %v2621_v51 = vcombine.low %v166_v31, %v168_v32  ;;  %v175_v62 = vunpack.c.h.s8.bf16 %v98_v56  ;;  %v100_v6 = vld [vmem:[%s3697_s0 + $0x70] sm:$0xff]  ;;  %v101_v7 = vld [vmem:[%s3697_s0 + $0x78] sm:$0xff]  ;;  %v2057_v32 = vld [vmem:[%s3698_s2 + $0x148] sm:$0xff] }
  0x41   :  { %v179_v12 = vunpack.c.h.s8.bf16 %v100_v6  ;;  %v107_v49 = vld [vmem:[%s3697_s0 + $0xa8] sm:$0xff]  ;;  %v2060_v50 = vld [vmem:[%s3698_s2 + $0x160] sm:$0xff] }
  0x42   :  { %1276 = vmatmul.mubr.bf16.vlgmr.msra.gmra.mrb[0].mxu1 %v2605_v59  ;;  %1565 = vmatmul.mubr.bf16.vlgmr.msra.gmra.mrb[0].mxu0 %v2607_v60  ;;  %v174_v59 = vunpack.c.l.s8.bf16 %v98_v56  ;;  %v176_v60 = vunpack.c.l.s8.bf16 %v99_v57  ;;  %v2062_v56 = vld [vmem:[%s3698_s2 + $0x170] sm:$0xff] }
  0x43   :  { %1283 = vmatprep.mubr.bf16.mxu1 %v2610_v61  ;;  %1572 = vmatprep.mubr.bf16.mxu0 %v2612_v63  ;;  %v2047_v61 = vld [vmem:[%s3698_s2 + $0xf8] sm:$0xff]  ;;  %v177_v63 = vunpack.c.h.s8.bf16 %v99_v57 }
  0x44   :  { %2227 = vperm.xlu1 %2832, %v2045_v54   ;;  %2222 = vperm.xlu0 %2831, %v2044_v58   ;;  %v2630_v3 = vcombine.high %v174_v59, %v176_v60  ;;  %v2629_v15 = vcombine.low %v174_v59, %v176_v60  ;;  %v191_v54 = vunpack.c.h.s8.bf16 %v106_v48  ;;  %v2065_v60 = vld [vmem:[%s3698_s2 + $0x188] sm:$0xff] }
  0x45   :  { %v2632_v5 = vcombine.high %v175_v62, %v177_v63  ;;  %v2631_v16 = vcombine.low %v175_v62, %v177_v63  ;;  %v108_v62 = vld [vmem:[%s3697_s0 + $0xb0] sm:$0xff]  ;;  %v109_v63 = vld [vmem:[%s3697_s0 + $0xb8] sm:$0xff] }
  0x48   :  { %2237 = vperm.xlu1 %2832, %v2047_v61   ;;  %2232 = vperm.xlu0 %2831, %v2046_v0   ;;  %v2064_v0 = vld [vmem:[%s3698_s2 + $0x180] sm:$0xff] }
  0x4a   :  { %1284 = vmatmul.mubr.bf16.gmra.mrb[4].mxu1 %v2609_v9  ;;  %1573 = vmatmul.mubr.bf16.gmra.mrb[4].mxu0 %v2611_v10  ;;  %v178_v9 = vunpack.c.l.s8.bf16 %v100_v6  ;;  %v180_v10 = vunpack.c.l.s8.bf16 %v101_v7  ;;  %v2066_v6 = vld [vmem:[%s3698_s2 + $0x190] sm:$0xff] }
  0x4b   :  { %1291 = vmatprep.mubr.bf16.mxu1 %v2614_v11  ;;  %1580 = vmatprep.mubr.bf16.mxu0 %v2616_v13  ;;  %v2051_v11 = vld [vmem:[%s3698_s2 + $0x118] sm:$0xff]  ;;  %v181_v13 = vunpack.c.h.s8.bf16 %v101_v7 }
  0x4c   :  { %2247 = vperm.xlu1 %2832, %v2049_v4   ;;  %2242 = vperm.xlu0 %2831, %v2048_v8   ;;  %v2634_v17 = vcombine.high %v178_v9, %v180_v10  ;;  %v2633_v29 = vcombine.low %v178_v9, %v180_v10  ;;  %v195_v4 = vunpack.c.h.s8.bf16 %v108_v62  ;;  %v2069_v10 = vld [vmem:[%s3698_s2 + $0x1a8] sm:$0xff] }
  0x4d   :  { %v2636_v19 = vcombine.high %v179_v12, %v181_v13  ;;  %v2635_v30 = vcombine.low %v179_v12, %v181_v13  ;;  %v110_v12 = vld [vmem:[%s3697_s0 + $0xc0] sm:$0xff]  ;;  %v111_v13 = vld [vmem:[%s3697_s0 + $0xc8] sm:$0xff] }
  0x50   :  { %2257 = vperm.xlu1 %2832, %v2051_v11   ;;  %2252 = vperm.xlu0 %2831, %v2050_v14   ;;  %v2068_v14 = vld [vmem:[%s3698_s2 + $0x1a0] sm:$0xff] }
  0x52   :  { %1292 = vmatmul.mubr.bf16.gmra.mrb[8].mxu1 %v2613_v23  ;;  %1581 = vmatmul.mubr.bf16.gmra.mrb[8].mxu0 %v2615_v24  ;;  %v182_v23 = vunpack.c.l.s8.bf16 %v102_v20  ;;  %v184_v24 = vunpack.c.l.s8.bf16 %v103_v21  ;;  %v2070_v20 = vld [vmem:[%s3698_s2 + $0x1b0] sm:$0xff] }
  0x53   :  { %1299 = vmatprep.mubr.bf16.mxu1 %v2618_v25  ;;  %1588 = vmatprep.mubr.bf16.mxu0 %v2620_v27  ;;  %v2055_v25 = vld [vmem:[%s3698_s2 + $0x138] sm:$0xff]  ;;  %v185_v27 = vunpack.c.h.s8.bf16 %v103_v21 }
  0x54   :  { %2267 = vperm.xlu1 %2832, %v2053_v18   ;;  %2262 = vperm.xlu0 %2831, %v2052_v22   ;;  %v2638_v31 = vcombine.high %v182_v23, %v184_v24  ;;  %v2637_v43 = vcombine.low %v182_v23, %v184_v24  ;;  %v199_v18 = vunpack.c.h.s8.bf16 %v110_v12  ;;  %v2073_v24 = vld [vmem:[%s3698_s2 + $0x1c8] sm:$0xff] }
  0x55   :  { %v2640_v33 = vcombine.high %v183_v26, %v185_v27  ;;  %v2639_v44 = vcombine.low %v183_v26, %v185_v27  ;;  %v112_v26 = vld [vmem:[%s3697_s0 + $0xd0] sm:$0xff]  ;;  %v113_v27 = vld [vmem:[%s3697_s0 + $0xd8] sm:$0xff] }
  0x58   :  { %2277 = vperm.xlu1 %2832, %v2055_v25   ;;  %2272 = vperm.xlu0 %2831, %v2054_v28   ;;  %v2072_v28 = vld [vmem:[%s3698_s2 + $0x1c0] sm:$0xff] }
  0x5a   :  { %1300 = vmatmul.mubr.bf16.gmra.mrb[12].mxu1 %v2617_v37  ;;  %1589 = vmatmul.mubr.bf16.gmra.mrb[12].mxu0 %v2619_v38  ;;  %v186_v37 = vunpack.c.l.s8.bf16 %v104_v34  ;;  %v188_v38 = vunpack.c.l.s8.bf16 %v105_v35  ;;  %v2074_v34 = vld [vmem:[%s3698_s2 + $0x1d0] sm:$0xff] }
  0x5b   :  { %1307 = vmatprep.mubr.bf16.mxu1 %v2622_v39  ;;  %1596 = vmatprep.mubr.bf16.mxu0 %v2624_v41  ;;  %v2059_v39 = vld [vmem:[%s3698_s2 + $0x158] sm:$0xff]  ;;  %v189_v41 = vunpack.c.h.s8.bf16 %v105_v35 }
  0x5c   :  { %2287 = vperm.xlu1 %2832, %v2057_v32   ;;  %2282 = vperm.xlu0 %2831, %v2056_v36   ;;  %v2642_v45 = vcombine.high %v186_v37, %v188_v38  ;;  %v2641_v57 = vcombine.low %v186_v37, %v188_v38  ;;  %v203_v32 = vunpack.c.h.s8.bf16 %v112_v26  ;;  %v2077_v38 = vld [vmem:[%s3698_s2 + $0x1e8] sm:$0xff] }
  0x5d   :  { %v2644_v47 = vcombine.high %v187_v40, %v189_v41  ;;  %v2643_v58 = vcombine.low %v187_v40, %v189_v41  ;;  %v114_v40 = vld [vmem:[%s3697_s0 + $0xe0] sm:$0xff]  ;;  %v115_v41 = vld [vmem:[%s3697_s0 + $0xe8] sm:$0xff] }
  0x60   :  { %2297 = vperm.xlu1 %2832, %v2059_v39   ;;  %2292 = vperm.xlu0 %2831, %v2058_v42   ;;  %v2076_v42 = vld [vmem:[%s3698_s2 + $0x1e0] sm:$0xff] }
  0x62   :  { %1308 = vmatmul.mubr.bf16.gmra.mrb[16].mxu1 %v2621_v51  ;;  %1597 = vmatmul.mubr.bf16.gmra.mrb[16].mxu0 %v2623_v52  ;;  %v190_v51 = vunpack.c.l.s8.bf16 %v106_v48  ;;  %v192_v52 = vunpack.c.l.s8.bf16 %v107_v49  ;;  %v2078_v48 = vld [vmem:[%s3698_s2 + $0x1f0] sm:$0xff] }
  0x63   :  { %1315 = vmatprep.mubr.bf16.mxu1 %v2626_v53  ;;  %1604 = vmatprep.mubr.bf16.mxu0 %v2628_v55  ;;  %v2063_v53 = vld [vmem:[%s3698_s2 + $0x178] sm:$0xff]  ;;  %v193_v55 = vunpack.c.h.s8.bf16 %v107_v49 }
  0x64   :  { %2307 = vperm.xlu1 %2832, %v2061_v46   ;;  %2302 = vperm.xlu0 %2831, %v2060_v50   ;;  %v2646_v59 = vcombine.high %v190_v51, %v192_v52  ;;  %v2645_v7 = vcombine.low %v190_v51, %v192_v52  ;;  %v207_v46 = vunpack.c.h.s8.bf16 %v114_v40 }
  0x65   :  { %v2648_v61 = vcombine.high %v191_v54, %v193_v55  ;;  %v2647_v8 = vcombine.low %v191_v54, %v193_v55  ;;  %v117_v54 = vld [vmem:[%s3697_s0 + $0xf8] sm:$0xff] }
  0x68   :  { %2317 = vperm.xlu1 %2832, %v2063_v53   ;;  %2312 = vperm.xlu0 %2831, %v2062_v56   ;;  %v116_v53 = vld [vmem:[%s3697_s0 + $0xf0] sm:$0xff]  ;;  %v212_v56 = vunpack.c.l.s8.bf16 %v117_v54 }
  0x69   :  { %v210_v55 = vunpack.c.l.s8.bf16 %v116_v53 }
  0x6a   :  { %1316 = vmatmul.mubr.bf16.gmra.mrb[20].mxu1 %v2625_v1  ;;  %1605 = vmatmul.mubr.bf16.gmra.mrb[20].mxu0 %v2627_v2  ;;  %v194_v1 = vunpack.c.l.s8.bf16 %v108_v62  ;;  %v196_v2 = vunpack.c.l.s8.bf16 %v109_v63 }
  0x6b   :  { %1323 = vmatprep.mubr.bf16.mxu1 %v2630_v3  ;;  %1612 = vmatprep.mubr.bf16.mxu0 %v2632_v5  ;;  %v2067_v3 = vld [vmem:[%s3698_s2 + $0x198] sm:$0xff]  ;;  %v197_v5 = vunpack.c.h.s8.bf16 %v109_v63  ;;  %v118_v63 = vld [vmem:[%s3697_s0 + $0x100] sm:$0xff] }
  0x6c   :  { %2327 = vperm.xlu1 %2832, %v2065_v60   ;;  %2322 = vperm.xlu0 %2831, %v2064_v0   ;;  %v2650_v9 = vcombine.high %v194_v1, %v196_v2  ;;  %v2649_v21 = vcombine.low %v194_v1, %v196_v2  ;;  %v119_v0 = vld [vmem:[%s3697_s0 + $0x108] sm:$0xff]  ;;  %v214_v1 = vunpack.c.l.s8.bf16 %v118_v63 }
  0x6d   :  { %v2652_v11 = vcombine.high %v195_v4, %v197_v5  ;;  %v2651_v22 = vcombine.low %v195_v4, %v197_v5  ;;  %v216_v2 = vunpack.c.l.s8.bf16 %v119_v0  ;;  %v217_v4 = vunpack.c.h.s8.bf16 %v119_v0 }
  0x6e   :  { %v2665_v5 = vcombine.low %v210_v55, %v212_v56 }
  0x70   :  { %2337 = vperm.xlu1 %2832, %v2067_v3   ;;  %2332 = vperm.xlu0 %2831, %v2066_v6   ;;  %v215_v3 = vunpack.c.h.s8.bf16 %v118_v63 }
  0x72   :  { %1324 = vmatmul.mubr.bf16.gmra.mrb[24].mxu1 %v2629_v15  ;;  %1613 = vmatmul.mubr.bf16.gmra.mrb[24].mxu0 %v2631_v16  ;;  %v198_v15 = vunpack.c.l.s8.bf16 %v110_v12  ;;  %v200_v16 = vunpack.c.l.s8.bf16 %v111_v13 }
  0x73   :  { %1331 = vmatprep.mubr.bf16.mxu1 %v2634_v17  ;;  %1620 = vmatprep.mubr.bf16.mxu0 %v2636_v19  ;;  %v2071_v17 = vld [vmem:[%s3698_s2 + $0x1b8] sm:$0xff]  ;;  %v201_v19 = vunpack.c.h.s8.bf16 %v111_v13 }
  0x74   :  { %2347 = vperm.xlu1 %2832, %v2069_v10   ;;  %2342 = vperm.xlu0 %2831, %v2068_v14   ;;  %v2654_v23 = vcombine.high %v198_v15, %v200_v16  ;;  %v2653_v35 = vcombine.low %v198_v15, %v200_v16  ;;  %v121_v10 = vld [vmem:[%s3697_s0 + $0x118] sm:$0xff]  ;;  %v2669_v15 = vcombine.low %v214_v1, %v216_v2 }
  0x75   :  { %v2656_v25 = vcombine.high %v199_v18, %v201_v19  ;;  %v2655_v36 = vcombine.low %v199_v18, %v201_v19  ;;  %v220_v12 = vunpack.c.l.s8.bf16 %v121_v10  ;;  %v221_v14 = vunpack.c.h.s8.bf16 %v121_v10  ;;  %v122_v19 = vld [vmem:[%s3697_s0 + $0x120] sm:$0xff] }
  0x76   :  { %v2671_v16 = vcombine.low %v215_v3, %v217_v4 }
  0x78   :  { %2357 = vperm.xlu1 %2832, %v2071_v17   ;;  %2352 = vperm.xlu0 %2831, %v2070_v20   ;;  %v123_v20 = vld [vmem:[%s3697_s0 + $0x128] sm:$0xff] }
  0x7a   :  { %1332 = vmatmul.mubr.bf16.gmra.mrb[28].mxu1 %v2633_v29  ;;  %1621 = vmatmul.mubr.bf16.gmra.mrb[28].mxu0 %v2635_v30  ;;  %v202_v29 = vunpack.c.l.s8.bf16 %v112_v26  ;;  %v204_v30 = vunpack.c.l.s8.bf16 %v113_v27 }
  0x7b   :  { %1339 = vmatprep.mubr.bf16.mxu1 %v2638_v31  ;;  %1628 = vmatprep.mubr.bf16.mxu0 %v2640_v33  ;;  %v2075_v31 = vld [vmem:[%s3698_s2 + $0x1d8] sm:$0xff]  ;;  %v205_v33 = vunpack.c.h.s8.bf16 %v113_v27 }
  0x7c   :  { %2367 = vperm.xlu1 %2832, %v2073_v24   ;;  %2362 = vperm.xlu0 %2831, %v2072_v28   ;;  %v2658_v37 = vcombine.high %v202_v29, %v204_v30  ;;  %v2657_v49 = vcombine.low %v202_v29, %v204_v30  ;;  %v225_v24 = vunpack.c.h.s8.bf16 %v123_v20  ;;  %v124_v29 = vld [vmem:[%s3697_s0 + $0x130] sm:$0xff]  ;;  %v125_v30 = vld [vmem:[%s3697_s0 + $0x138] sm:$0xff] }
  0x7d   :  { %v2660_v39 = vcombine.high %v203_v32, %v205_v33  ;;  %v2659_v50 = vcombine.low %v203_v32, %v205_v33  ;;  %v228_v32 = vunpack.c.l.s8.bf16 %v125_v30  ;;  %v227_v33 = vunpack.c.h.s8.bf16 %v124_v29 }
  0x80   :  { %2377 = vperm.xlu1 %2832, %v2075_v31   ;;  %2372 = vperm.xlu0 %2831, %v2074_v34   ;;  %v226_v31 = vunpack.c.l.s8.bf16 %v124_v29  ;;  %v229_v34 = vunpack.c.h.s8.bf16 %v125_v30 }
  0x82   :  { %1340 = vmatmul.mubr.bf16.gmra.mrb[32].mxu1 %v2637_v43  ;;  %1629 = vmatmul.mubr.bf16.gmra.mrb[32].mxu0 %v2639_v44  ;;  %v206_v43 = vunpack.c.l.s8.bf16 %v114_v40  ;;  %v208_v44 = vunpack.c.l.s8.bf16 %v115_v41  ;;  %v127_v40 = vld [vmem:[%s3697_s0 + $0x148] sm:$0xff] }
  0x83   :  { %1347 = vmatprep.mubr.bf16.mxu1 %v2642_v45  ;;  %1636 = vmatprep.mubr.bf16.mxu0 %v2644_v47  ;;  %v2079_v45 = vld [vmem:[%s3698_s2 + $0x1f8] sm:$0xff]  ;;  %v209_v47 = vunpack.c.h.s8.bf16 %v115_v41 }
  0x84   :  { %2387 = vperm.xlu1 %2832, %v2077_v38   ;;  %2382 = vperm.xlu0 %2831, %v2076_v42   ;;  %v2662_v51 = vcombine.high %v206_v43, %v208_v44  ;;  %v2684_v38 = vcombine.high %v227_v33, %v229_v34  ;;  %v232_v42 = vunpack.c.l.s8.bf16 %v127_v40 }
  0x85   :  { %v2664_v52 = vcombine.high %v207_v46, %v209_v47  ;;  %v2663_v60 = vcombine.low %v207_v46, %v209_v47  ;;  %v2683_v46 = vcombine.low %v227_v33, %v229_v34 }
  0x88   :  { %2397 = vperm.xlu1 %2832, %v2079_v45   ;;  %2392 = vperm.xlu0 %2831, %v2078_v48   ;;  %v2681_v45 = vcombine.low %v226_v31, %v228_v32 }
  0x8a   :  { %1348 = vmatmul.mubr.bf16.gmra.mrb[36].mxu1 %v2641_v57  ;;  %1637 = vmatmul.mubr.bf16.gmra.mrb[36].mxu0 %v2643_v58  ;;  %v211_v57 = vunpack.c.h.s8.bf16 %v116_v53  ;;  %v213_v58 = vunpack.c.h.s8.bf16 %v117_v54 }
  0x8b   :  { %1355 = vmatprep.mubr.bf16.mxu1 %v2646_v59  ;;  %1644 = vmatprep.mubr.bf16.mxu0 %v2648_v61  ;;  %v2661_v59 = vcombine.low %v206_v43, %v208_v44  ;;  %v2666_v61 = vcombine.high %v210_v55, %v212_v56  ;;  %v233_v44 = vunpack.c.h.s8.bf16 %v127_v40 }
  0x8c   :  { %v2668_v62 = vcombine.high %v211_v57, %v213_v58  ;;  %v2667_v6 = vcombine.low %v211_v57, %v213_v58 }
  0x92   :  { %1356 = vmatmul.mubr.bf16.gmra.mrb[40].mxu1 %v2645_v7  ;;  %1645 = vmatmul.mubr.bf16.gmra.mrb[40].mxu0 %v2647_v8  ;;  %v2670_v7 = vcombine.high %v214_v1, %v216_v2  ;;  %v2672_v8 = vcombine.high %v215_v3, %v217_v4 }
  0x93   :  { %1363 = vmatprep.mubr.bf16.mxu1 %v2650_v9  ;;  %1652 = vmatprep.mubr.bf16.mxu0 %v2652_v11  ;;  %v120_v9 = vld [vmem:[%s3697_s0 + $0x110] sm:$0xff] }
  0x94   :  { %v218_v11 = vunpack.c.l.s8.bf16 %v120_v9  ;;  %v219_v13 = vunpack.c.h.s8.bf16 %v120_v9 }
  0x96   :  { %v2674_v17 = vcombine.high %v218_v11, %v220_v12  ;;  %v2676_v18 = vcombine.high %v219_v13, %v221_v14  ;;  %v2675_v26 = vcombine.low %v219_v13, %v221_v14 }
  0x9a   :  { %1364 = vmatmul.mubr.bf16.gmra.mrb[44].mxu1 %v2649_v21  ;;  %1653 = vmatmul.mubr.bf16.gmra.mrb[44].mxu0 %v2651_v22  ;;  %v222_v21 = vunpack.c.l.s8.bf16 %v122_v19  ;;  %v224_v22 = vunpack.c.l.s8.bf16 %v123_v20 }
  0x9b   :  { %1371 = vmatprep.mubr.bf16.mxu1 %v2654_v23  ;;  %1660 = vmatprep.mubr.bf16.mxu0 %v2656_v25  ;;  %v223_v23 = vunpack.c.h.s8.bf16 %v122_v19  ;;  %v2673_v25 = vcombine.low %v218_v11, %v220_v12 }
  0x9c   :  { %v2678_v27 = vcombine.high %v222_v21, %v224_v22 }
  0x9d   :  { %v2680_v28 = vcombine.high %v223_v23, %v225_v24 }
  0xa2   :  { %1372 = vmatmul.mubr.bf16.gmra.mrb[48].mxu1 %v2653_v35  ;;  %1661 = vmatmul.mubr.bf16.gmra.mrb[48].mxu0 %v2655_v36  ;;  %v2677_v35 = vcombine.low %v222_v21, %v224_v22  ;;  %v2679_v36 = vcombine.low %v223_v23, %v225_v24 }
  0xa3   :  { %1379 = vmatprep.mubr.bf16.mxu1 %v2658_v37  ;;  %1668 = vmatprep.mubr.bf16.mxu0 %v2660_v39  ;;  %v2682_v37 = vcombine.high %v226_v31, %v228_v32  ;;  %v126_v39 = vld [vmem:[%s3697_s0 + $0x140] sm:$0xff] }
  0xa4   :  { %v230_v41 = vunpack.c.l.s8.bf16 %v126_v39  ;;  %v231_v43 = vunpack.c.h.s8.bf16 %v126_v39 }
  0xa6   :  { %v2686_v47 = vcombine.high %v230_v41, %v232_v42  ;;  %v2688_v48 = vcombine.high %v231_v43, %v233_v44  ;;  %v2685_v55 = vcombine.low %v230_v41, %v232_v42  ;;  %v2687_v56 = vcombine.low %v231_v43, %v233_v44 }
  0xaa   :  { %1380 = vmatmul.mubr.bf16.gmra.mrb[52].mxu1 %v2657_v49  ;;  %1669 = vmatmul.mubr.bf16.gmra.mrb[52].mxu0 %v2659_v50  ;;  %v128_v49 = vld [vmem:[%s3697_s0 + $0x150] sm:$0xff]  ;;  %v129_v50 = vld [vmem:[%s3697_s0 + $0x158] sm:$0xff] }
  0xab   :  { %1387 = vmatprep.mubr.bf16.mxu1 %v2662_v51  ;;  %1676 = vmatprep.mubr.bf16.mxu0 %v2664_v52  ;;  %v234_v51 = vunpack.c.l.s8.bf16 %v128_v49  ;;  %v236_v52 = vunpack.c.l.s8.bf16 %v129_v50  ;;  %v235_v53 = vunpack.c.h.s8.bf16 %v128_v49  ;;  %v237_v54 = vunpack.c.h.s8.bf16 %v129_v50 }
  0xad   :  { %v2690_v57 = vcombine.high %v234_v51, %v236_v52  ;;  %v2692_v58 = vcombine.high %v235_v53, %v237_v54  ;;  %v2689_v1 = vcombine.low %v234_v51, %v236_v52  ;;  %v2691_v2 = vcombine.low %v235_v53, %v237_v54  ;;  %v2083_v53 = vpop.permute.xlu0 %2082 }
  0xb2   :  { %1388 = vmatmul.mubr.bf16.gmra.mrb[56].mxu1 %v2661_v59  ;;  %1677 = vmatmul.mubr.bf16.gmra.mrb[56].mxu0 %v2663_v60  ;;  %v130_v59 = vld [vmem:[%s3697_s0 + $0x160] sm:$0xff]  ;;  %v131_v60 = vld [vmem:[%s3697_s0 + $0x168] sm:$0xff] }
  0xb3   :  { %1395 = vmatprep.mubr.bf16.mxu1 %v2666_v61  ;;  %1684 = vmatprep.mubr.bf16.mxu0 %v2668_v62  ;;  %v238_v61 = vunpack.c.l.s8.bf16 %v130_v59  ;;  %v240_v62 = vunpack.c.l.s8.bf16 %v131_v60  ;;  %v239_v63 = vunpack.c.h.s8.bf16 %v130_v59  ;;  %v241_v0 = vunpack.c.h.s8.bf16 %v131_v60 }
  0xb5   :  { %v2694_v3 = vcombine.high %v238_v61, %v240_v62  ;;  %v2696_v4 = vcombine.high %v239_v63, %v241_v0  ;;  %v2693_v11 = vcombine.low %v238_v61, %v240_v62  ;;  %v2695_v12 = vcombine.low %v239_v63, %v241_v0  ;;  %v2088_v63 = vpop.permute.xlu0 %2087 }
  0xba   :  { %1396 = vmatmul.mubr.bf16.gmra.mrb[60].mxu1 %v2665_v5  ;;  %1685 = vmatmul.mubr.bf16.gmra.mrb[60].mxu0 %v2667_v6  ;;  %v132_v5 = vld [vmem:[%s3697_s0 + $0x170] sm:$0xff]  ;;  %v133_v6 = vld [vmem:[%s3697_s0 + $0x178] sm:$0xff] }
  0xbb   :  { %1403 = vmatprep.mubr.bf16.mxu1 %v2670_v7  ;;  %1692 = vmatprep.mubr.bf16.mxu0 %v2672_v8  ;;  %v242_v7 = vunpack.c.l.s8.bf16 %v132_v5  ;;  %v244_v8 = vunpack.c.l.s8.bf16 %v133_v6  ;;  %v243_v9 = vunpack.c.h.s8.bf16 %v132_v5  ;;  %v245_v10 = vunpack.c.h.s8.bf16 %v133_v6 }
  0xbd   :  { %v2698_v13 = vcombine.high %v242_v7, %v244_v8  ;;  %v2700_v14 = vcombine.high %v243_v9, %v245_v10  ;;  %v2697_v21 = vcombine.low %v242_v7, %v244_v8  ;;  %v2699_v22 = vcombine.low %v243_v9, %v245_v10  ;;  %v3415_v8 = vld [vmem:[%s3699_s3] ss:$0 sm:$0xff] }
  0xc2   :  { %1404 = vmatmul.mubr.bf16.gmra.mrb[64].mxu1 %v2669_v15  ;;  %1693 = vmatmul.mubr.bf16.gmra.mrb[64].mxu0 %v2671_v16  ;;  %v134_v15 = vld [vmem:[%s3697_s0 + $0x180] sm:$0xff]  ;;  %v135_v16 = vld [vmem:[%s3697_s0 + $0x188] sm:$0xff] }
  0xc3   :  { %1411 = vmatprep.mubr.bf16.mxu1 %v2674_v17  ;;  %1700 = vmatprep.mubr.bf16.mxu0 %v2676_v18  ;;  %v246_v17 = vunpack.c.l.s8.bf16 %v134_v15  ;;  %v248_v18 = vunpack.c.l.s8.bf16 %v135_v16  ;;  %v247_v19 = vunpack.c.h.s8.bf16 %v134_v15  ;;  %v249_v20 = vunpack.c.h.s8.bf16 %v135_v16 }
  0xc5   :  { %v2702_v23 = vcombine.high %v246_v17, %v248_v18  ;;  %v2704_v24 = vcombine.high %v247_v19, %v249_v20  ;;  %v2701_v31 = vcombine.low %v246_v17, %v248_v18  ;;  %v2703_v32 = vcombine.low %v247_v19, %v249_v20 }
  0xca   :  { %1412 = vmatmul.mubr.bf16.gmra.mrb[68].mxu1 %v2673_v25  ;;  %1701 = vmatmul.mubr.bf16.gmra.mrb[68].mxu0 %v2675_v26  ;;  %v136_v25 = vld [vmem:[%s3697_s0 + $0x190] sm:$0xff]  ;;  %v137_v26 = vld [vmem:[%s3697_s0 + $0x198] sm:$0xff] }
  0xcb   :  { %1419 = vmatprep.mubr.bf16.mxu1 %v2678_v27  ;;  %1708 = vmatprep.mubr.bf16.mxu0 %v2680_v28  ;;  %v250_v27 = vunpack.c.l.s8.bf16 %v136_v25  ;;  %v252_v28 = vunpack.c.l.s8.bf16 %v137_v26  ;;  %v251_v29 = vunpack.c.h.s8.bf16 %v136_v25  ;;  %v253_v30 = vunpack.c.h.s8.bf16 %v137_v26 }
  0xcd   :  { %v2706_v33 = vcombine.high %v250_v27, %v252_v28  ;;  %v2708_v34 = vcombine.high %v251_v29, %v253_v30  ;;  %v2705_v41 = vcombine.low %v250_v27, %v252_v28  ;;  %v2707_v42 = vcombine.low %v251_v29, %v253_v30 }
  0xd2   :  { %1420 = vmatmul.mubr.bf16.gmra.mrb[72].mxu1 %v2677_v35  ;;  %1709 = vmatmul.mubr.bf16.gmra.mrb[72].mxu0 %v2679_v36  ;;  %v138_v35 = vld [vmem:[%s3697_s0 + $0x1a0] sm:$0xff]  ;;  %v139_v36 = vld [vmem:[%s3697_s0 + $0x1a8] sm:$0xff] }
  0xd3   :  { %1427 = vmatprep.mubr.bf16.mxu1 %v2682_v37  ;;  %1716 = vmatprep.mubr.bf16.mxu0 %v2684_v38  ;;  %v254_v37 = vunpack.c.l.s8.bf16 %v138_v35  ;;  %v256_v38 = vunpack.c.l.s8.bf16 %v139_v36  ;;  %v255_v39 = vunpack.c.h.s8.bf16 %v138_v35  ;;  %v257_v40 = vunpack.c.h.s8.bf16 %v139_v36 }
  0xd5   :  { %v2710_v43 = vcombine.high %v254_v37, %v256_v38  ;;  %v2712_v44 = vcombine.high %v255_v39, %v257_v40  ;;  %v2709_v51 = vcombine.low %v254_v37, %v256_v38  ;;  %v2711_v52 = vcombine.low %v255_v39, %v257_v40  ;;  %v146_v37 = vld [vmem:[%s3697_s0 + $0x1e0] sm:$0xff]  ;;  %v147_v38 = vld [vmem:[%s3697_s0 + $0x1e8] sm:$0xff] }
  0xda   :  { %1428 = vmatmul.mubr.bf16.gmra.mrb[76].mxu1 %v2681_v45  ;;  %1717 = vmatmul.mubr.bf16.gmra.mrb[76].mxu0 %v2683_v46  ;;  %v140_v45 = vld [vmem:[%s3697_s0 + $0x1b0] sm:$0xff]  ;;  %v141_v46 = vld [vmem:[%s3697_s0 + $0x1b8] sm:$0xff] }
  0xdb   :  { %1435 = vmatprep.mubr.bf16.mxu1 %v2686_v47  ;;  %1724 = vmatprep.mubr.bf16.mxu0 %v2688_v48  ;;  %v258_v47 = vunpack.c.l.s8.bf16 %v140_v45  ;;  %v260_v48 = vunpack.c.l.s8.bf16 %v141_v46  ;;  %v259_v49 = vunpack.c.h.s8.bf16 %v140_v45  ;;  %v261_v50 = vunpack.c.h.s8.bf16 %v141_v46 }
  0xdc   :  { %v270_v45 = vunpack.c.l.s8.bf16 %v146_v37  ;;  %v272_v46 = vunpack.c.l.s8.bf16 %v147_v38 }
  0xdd   :  { %v2714_v54 = vcombine.high %v258_v47, %v260_v48  ;;  %v2715_v6 = vcombine.low %v259_v49, %v261_v50 }
  0xe2   :  { %1436 = vmatmul.mubr.bf16.gmra.mrb[80].mxu1 %v2685_v55  ;;  %1725 = vmatmul.mubr.bf16.gmra.mrb[80].mxu0 %v2687_v56  ;;  %v2716_v55 = vcombine.high %v259_v49, %v261_v50  ;;  %v142_v56 = vld [vmem:[%s3697_s0 + $0x1c0] sm:$0xff]  ;;  %v2103_v50 = vpop.permute.xlu0 %2102 }
  0xe3   :  { %1443 = vmatprep.mubr.bf16.mxu1 %v2690_v57  ;;  %1732 = vmatprep.mubr.bf16.mxu0 %v2692_v58  ;;  %v143_v57 = vld [vmem:[%s3697_s0 + $0x1c8] sm:$0xff]  ;;  %v262_v58 = vunpack.c.l.s8.bf16 %v142_v56  ;;  %v263_v60 = vunpack.c.h.s8.bf16 %v142_v56 }
  0xe4   :  { %v264_v59 = vunpack.c.l.s8.bf16 %v143_v57  ;;  %v265_v61 = vunpack.c.h.s8.bf16 %v143_v57 }
  0xe6   :  { %v2718_v7 = vcombine.high %v262_v58, %v264_v59  ;;  %v2717_v28 = vcombine.low %v262_v58, %v264_v59  ;;  %v2726_v59 = vcombine.high %v270_v45, %v272_v46 }
  0xea   :  { %1444 = vmatmul.mubr.bf16.gmra.mrb[84].mxu1 %v2689_v1  ;;  %1733 = vmatmul.mubr.bf16.gmra.mrb[84].mxu0 %v2691_v2  ;;  %v2713_v2 = vcombine.low %v258_v47, %v260_v48  ;;  %v271_v47 = vunpack.c.h.s8.bf16 %v146_v37  ;;  %v273_v48 = vunpack.c.h.s8.bf16 %v147_v38 }
  0xeb   :  { %1451 = vmatprep.mubr.bf16.mxu1 %v2694_v3  ;;  %1740 = vmatprep.mubr.bf16.mxu0 %v2696_v4 }
  0xf2   :  { %1452 = vmatmul.mubr.bf16.gmra.mrb[88].mxu1 %v2693_v11  ;;  %1741 = vmatmul.mubr.bf16.gmra.mrb[88].mxu0 %v2695_v12  ;;  %v2720_v11 = vcombine.high %v263_v60, %v265_v61  ;;  %v144_v12 = vld [vmem:[%s3697_s0 + $0x1d0] sm:$0xff] }
  0xf3   :  { %1459 = vmatprep.mubr.bf16.mxu1 %v2698_v13  ;;  %1748 = vmatprep.mubr.bf16.mxu0 %v2700_v14  ;;  %v145_v13 = vld [vmem:[%s3697_s0 + $0x1d8] sm:$0xff]  ;;  %v266_v19 = vunpack.c.l.s8.bf16 %v144_v12 }
  0xf4   :  { %v268_v20 = vunpack.c.l.s8.bf16 %v145_v13 }
  0xfa   :  { %1460 = vmatmul.mubr.bf16.gmra.mrb[92].mxu1 %v2697_v21  ;;  %1749 = vmatmul.mubr.bf16.gmra.mrb[92].mxu0 %v2699_v22  ;;  %v2093_v21 = vpop.permute.xlu1 %2092  ;;  %v267_v22 = vunpack.c.h.s8.bf16 %v144_v12  ;;  %v2113_v12 = vpop.permute.xlu0 %2112 }
  0xfb   :  { %1467 = vmatprep.mubr.bf16.mxu1 %v2702_v23  ;;  %1756 = vmatprep.mubr.bf16.mxu0 %v2704_v24  ;;  %v269_v23 = vunpack.c.h.s8.bf16 %v145_v13 }
  0xfd   :  { %v2724_v36 = vcombine.high %v267_v22, %v269_v23  ;;  %v2723_v58 = vcombine.low %v267_v22, %v269_v23 }
 0x102   :  { %1468 = vmatmul.mubr.bf16.gmra.mrb[96].mxu1 %v2701_v31  ;;  %1757 = vmatmul.mubr.bf16.gmra.mrb[96].mxu0 %v2703_v32  ;;  %v2719_v32 = vcombine.low %v263_v60, %v265_v61 }
 0x103   :  { %1475 = vmatprep.mubr.bf16.mxu1 %v2706_v33  ;;  %1764 = vmatprep.mubr.bf16.mxu0 %v2708_v34  ;;  %v2722_v33 = vcombine.high %v266_v19, %v268_v20 }
 0x10a   :  { %1476 = vmatmul.mubr.bf16.gmra.mrb[100].mxu1 %v2705_v41  ;;  %1765 = vmatmul.mubr.bf16.gmra.mrb[100].mxu0 %v2707_v42  ;;  %v2098_v42 = vpop.permute.xlu1 %2097 }
 0x10b   :  { %1483 = vmatprep.mubr.bf16.mxu1 %v2710_v43  ;;  %1772 = vmatprep.mubr.bf16.mxu0 %v2712_v44 }
 0x112   :  { %1484 = vmatmul.mubr.bf16.gmra.mrb[104].mxu1 %v2709_v51  ;;  %1773 = vmatmul.mubr.bf16.gmra.mrb[104].mxu0 %v2711_v52 }
 0x113   :  { %1491 = vmatprep.mubr.bf16.mxu1 %v2714_v54  ;;  %1780 = vmatprep.mubr.bf16.mxu0 %v2716_v55  ;;  %v2721_v54 = vcombine.low %v266_v19, %v268_v20 }
 0x115   :  { %v1277_v62 = vpop.f32.mrb[0].mxu1  ;;  %v1566_v0 = vpop.f32.mrb[0].mxu0 }
 0x116   :  { %v1279_v1 = vpop.f32.mrb[1].mxu1  ;;  %v1567_v3 = vadd.f32 %v1566_v0, %v1277_v62  ;;  %v1568_v4 = vpop.f32.mrb[1].mxu0  ;;  %v2728_v62 = vcombine.high %v271_v47, %v273_v48  ;;  %v149_v0 = vld [vmem:[%s3697_s0 + $0x1f8] sm:$0xff] }
 0x117   :  { %v1280_v5 = vpop.f32.mrb[2].mxu1  ;;  %v1569_v9 = vpop.f32.mrb[2].mxu0 }
 0x118   :  { %v1282_v10 = vpop.f32.mrb[3].mxu1  ;;  %v2400_v14 = vmul.f32 %v2083_v53, %v1567_v3  ;;  %v1570_v15 = vadd.f32 %v1569_v9, %v1280_v5  ;;  %v1571_v16 = vpop.f32.mrb[3].mxu0  ;;  %v276_v9 = vunpack.c.l.s8.bf16 %v149_v0 }
 0x119   :  { %v2108_v4 = vpop.permute.xlu1 %2107 }
 0x11a   :  { %1492 = vmatmul.mubr.bf16.gmra.mrb[108].mxu1 %v2713_v2  ;;  %v2471_v17 = vadd.f32 %v3415_v8, %v2400_v14  ;;  %v2401_v18 = vmul.f32 %v2088_v63, %v1570_v15  ;;  %1781 = vmatmul.mubr.bf16.gmra.mrb[108].mxu0 %v2715_v6  ;;  %v148_v63 = vld [vmem:[%s3697_s0 + $0x1f0] sm:$0xff] }
 0x11b   :  { %1499 = vmatprep.mubr.bf16.mxu1 %v2718_v7  ;;  %1788 = vmatprep.mubr.bf16.mxu0 %v2720_v11  ;;  %v274_v7 = vunpack.c.l.s8.bf16 %v148_v63  ;;  %v275_v10 = vunpack.c.h.s8.bf16 %v148_v63  ;;  %v277_v11 = vunpack.c.h.s8.bf16 %v149_v0 }
 0x11c   :  { %2535 = vst [vmem:[%s3700_s4] sm:$0xff] %v2471_v17  ;;  %v2472_v24 = vadd.f32 %v3415_v8, %v2401_v18  ;;  %v2725_v17 = vcombine.low %v270_v45, %v272_v46 }
 0x11d   :  { %v1285_v25 = vpop.f32.mrb[4].mxu1  ;;  %v1574_v26 = vpop.f32.mrb[4].mxu0  ;;  %v2730_v22 = vcombine.high %v274_v7, %v276_v9  ;;  %v2729_v37 = vcombine.low %v274_v7, %v276_v9 }
 0x11e   :  { %v1287_v27 = vpop.f32.mrb[5].mxu1  ;;  %2536 = vst [vmem:[%s3700_s4 + $0x8] sm:$0xff] %v2472_v24  ;;  %v1575_v29 = vadd.f32 %v1574_v26, %v1285_v25  ;;  %v1576_v30 = vpop.f32.mrb[5].mxu0  ;;  %v2732_v25 = vcombine.high %v275_v10, %v277_v11 }
 0x11f   :  { %v1288_v31 = vpop.f32.mrb[6].mxu1  ;;  %v1577_v34 = vpop.f32.mrb[6].mxu0 }
 0x120   :  { %v1290_v35 = vpop.f32.mrb[7].mxu1  ;;  %v2402_v39 = vmul.f32 %v2093_v21, %v1575_v29  ;;  %v1578_v40 = vadd.f32 %v1577_v34, %v1288_v31  ;;  %v1579_v41 = vpop.f32.mrb[7].mxu0  ;;  %v2727_v21 = vcombine.low %v271_v47, %v273_v48 }
 0x121   :  { %v2118_v29 = vpop.permute.xlu1 %2117  ;;  %v2731_v41 = vcombine.low %v275_v10, %v277_v11 }
 0x122   :  { %1500 = vmatmul.mubr.bf16.gmra.mrb[112].mxu1 %v2717_v28  ;;  %v2473_v43 = vadd.f32 %v3415_v8, %v2402_v39  ;;  %v2403_v44 = vmul.f32 %v2098_v42, %v1578_v40  ;;  %1789 = vmatmul.mubr.bf16.gmra.mrb[112].mxu0 %v2719_v32  ;;  %v2123_v32 = vpop.permute.xlu0 %2122 }
 0x123   :  { %1507 = vmatprep.mubr.bf16.mxu1 %v2722_v33  ;;  %1796 = vmatprep.mubr.bf16.mxu0 %v2724_v36 }
 0x124   :  { %2537 = vst [vmem:[%s3700_s4 + $0x10] sm:$0xff] %v2473_v43  ;;  %v2474_v49 = vadd.f32 %v3415_v8, %v2403_v44 }
 0x125   :  { %v1293_v51 = vpop.f32.mrb[8].mxu1  ;;  %v1582_v52 = vpop.f32.mrb[8].mxu0 }
 0x126   :  { %v1295_v53 = vpop.f32.mrb[9].mxu1  ;;  %2538 = vst [vmem:[%s3700_s4 + $0x18] sm:$0xff] %v2474_v49  ;;  %v1583_v55 = vadd.f32 %v1582_v52, %v1293_v51  ;;  %v1584_v56 = vpop.f32.mrb[9].mxu0 }
 0x127   :  { %v1296_v57 = vpop.f32.mrb[10].mxu1  ;;  %v1585_v60 = vpop.f32.mrb[10].mxu0 }
 0x128   :  { %v1298_v61 = vpop.f32.mrb[11].mxu1  ;;  %v2404_v1 = vmul.f32 %v2103_v50, %v1583_v55  ;;  %v1586_v2 = vadd.f32 %v1585_v60, %v1296_v57  ;;  %v1587_v3 = vpop.f32.mrb[11].mxu0 }
 0x129   :  { %v2128_v47 = vpop.permute.xlu1 %2127  ;;  %v2133_v50 = vpop.permute.xlu0 %2132 }
 0x12a   :  { %1508 = vmatmul.mubr.bf16.gmra.mrb[116].mxu1 %v2721_v54  ;;  %v2475_v5 = vadd.f32 %v3415_v8, %v2404_v1  ;;  %v2405_v6 = vmul.f32 %v2108_v4, %v1586_v2  ;;  %1797 = vmatmul.mubr.bf16.gmra.mrb[116].mxu0 %v2723_v58 }
 0x12b   :  { %1515 = vmatprep.mubr.bf16.mxu1 %v2726_v59  ;;  %1804 = vmatprep.mubr.bf16.mxu0 %v2728_v62 }
 0x12c   :  { %2539 = vst [vmem:[%s3700_s4 + $0x20] sm:$0xff] %v2475_v5  ;;  %v2476_v13 = vadd.f32 %v3415_v8, %v2405_v6 }
 0x12d   :  { %v1301_v14 = vpop.f32.mrb[12].mxu1  ;;  %v1590_v15 = vpop.f32.mrb[12].mxu0 }
 0x12e   :  { %v1303_v16 = vpop.f32.mrb[13].mxu1  ;;  %2540 = vst [vmem:[%s3700_s4 + $0x28] sm:$0xff] %v2476_v13  ;;  %v1591_v18 = vadd.f32 %v1590_v15, %v1301_v14  ;;  %v1592_v19 = vpop.f32.mrb[13].mxu0 }
 0x12f   :  { %v1304_v20 = vpop.f32.mrb[14].mxu1  ;;  %v1593_v23 = vpop.f32.mrb[14].mxu0 }
 0x130   :  { %v1306_v24 = vpop.f32.mrb[15].mxu1  ;;  %v2406_v26 = vmul.f32 %v2113_v12, %v1591_v18  ;;  %v1594_v27 = vadd.f32 %v1593_v23, %v1304_v20  ;;  %v1595_v28 = vpop.f32.mrb[15].mxu0 }
 0x131   :  { %v2138_v63 = vpop.permute.xlu1 %2137  ;;  %v2143_v2 = vpop.permute.xlu0 %2142 }
 0x132   :  { %1516 = vmatmul.mubr.bf16.gmra.mrb[120].mxu1 %v2725_v17  ;;  %v2477_v30 = vadd.f32 %v3415_v8, %v2406_v26  ;;  %v2407_v31 = vmul.f32 %v2118_v29, %v1594_v27  ;;  %1805 = vmatmul.mubr.bf16.gmra.mrb[120].mxu0 %v2727_v21 }
 0x133   :  { %1523 = vmatprep.mubr.bf16.mxu1 %v2730_v22  ;;  %1812 = vmatprep.mubr.bf16.mxu0 %v2732_v25 }
 0x134   :  { %2541 = vst [vmem:[%s3700_s4 + $0x30] sm:$0xff] %v2477_v30  ;;  %v2478_v33 = vadd.f32 %v3415_v8, %v2407_v31 }
 0x135   :  { %v1309_v34 = vpop.f32.mrb[16].mxu1  ;;  %v1598_v35 = vpop.f32.mrb[16].mxu0 }
 0x136   :  { %v1311_v36 = vpop.f32.mrb[17].mxu1  ;;  %2542 = vst [vmem:[%s3700_s4 + $0x38] sm:$0xff] %v2478_v33  ;;  %v1599_v38 = vadd.f32 %v1598_v35, %v1309_v34  ;;  %v1600_v39 = vpop.f32.mrb[17].mxu0 }
 0x137   :  { %v1312_v40 = vpop.f32.mrb[18].mxu1  ;;  %v1601_v42 = vpop.f32.mrb[18].mxu0 }
 0x138   :  { %v1314_v43 = vpop.f32.mrb[19].mxu1  ;;  %v2408_v44 = vmul.f32 %v2123_v32, %v1599_v38  ;;  %v1602_v45 = vadd.f32 %v1601_v42, %v1312_v40  ;;  %v1603_v46 = vpop.f32.mrb[19].mxu0 }
 0x139   :  { %v2148_v16 = vpop.permute.xlu1 %2147  ;;  %v2153_v19 = vpop.permute.xlu0 %2152 }
 0x13a   :  { %1524 = vmatmul.mubr.bf16.gmra.mrb[124].mxu1 %v2729_v37  ;;  %v2479_v48 = vadd.f32 %v3415_v8, %v2408_v44  ;;  %v2409_v49 = vmul.f32 %v2128_v47, %v1602_v45  ;;  %1813 = vmatmul.mubr.bf16.gmra.mrb[124].mxu0 %v2731_v41 }
 0x13c   :  { %2543 = vst [vmem:[%s3700_s4 + $0x40] sm:$0xff] %v2479_v48  ;;  %v2480_v51 = vadd.f32 %v3415_v8, %v2409_v49 }
 0x13d   :  { %v1317_v52 = vpop.f32.mrb[20].mxu1  ;;  %v1606_v53 = vpop.f32.mrb[20].mxu0 }
 0x13e   :  { %v1319_v54 = vpop.f32.mrb[21].mxu1  ;;  %2544 = vst [vmem:[%s3700_s4 + $0x48] sm:$0xff] %v2480_v51  ;;  %v1607_v55 = vadd.f32 %v1606_v53, %v1317_v52  ;;  %v1608_v56 = vpop.f32.mrb[21].mxu0 }
 0x13f   :  { %v1320_v57 = vpop.f32.mrb[22].mxu1  ;;  %v1609_v58 = vpop.f32.mrb[22].mxu0 }
 0x140   :  { %v1322_v59 = vpop.f32.mrb[23].mxu1  ;;  %v2410_v60 = vmul.f32 %v2133_v50, %v1607_v55  ;;  %v1610_v61 = vadd.f32 %v1609_v58, %v1320_v57  ;;  %v1611_v62 = vpop.f32.mrb[23].mxu0 }
 0x141   :  { %v2158_v32 = vpop.permute.xlu1 %2157  ;;  %v2163_v35 = vpop.permute.xlu0 %2162 }
 0x142   :  { %v2481_v0 = vadd.f32 %v3415_v8, %v2410_v60  ;;  %v2411_v1 = vmul.f32 %v2138_v63, %v1610_v61 }
 0x144   :  { %2545 = vst [vmem:[%s3700_s4 + $0x50] sm:$0xff] %v2481_v0  ;;  %v2482_v3 = vadd.f32 %v3415_v8, %v2411_v1 }
 0x145   :  { %v1325_v4 = vpop.f32.mrb[24].mxu1  ;;  %v1614_v5 = vpop.f32.mrb[24].mxu0 }
 0x146   :  { %v1327_v6 = vpop.f32.mrb[25].mxu1  ;;  %2546 = vst [vmem:[%s3700_s4 + $0x58] sm:$0xff] %v2482_v3  ;;  %v1615_v7 = vadd.f32 %v1614_v5, %v1325_v4  ;;  %v1616_v9 = vpop.f32.mrb[25].mxu0 }
 0x147   :  { %v1328_v10 = vpop.f32.mrb[26].mxu1  ;;  %v1617_v11 = vpop.f32.mrb[26].mxu0 }
 0x148   :  { %v1330_v12 = vpop.f32.mrb[27].mxu1  ;;  %v2412_v13 = vmul.f32 %v2143_v2, %v1615_v7  ;;  %v1618_v14 = vadd.f32 %v1617_v11, %v1328_v10  ;;  %v1619_v15 = vpop.f32.mrb[27].mxu0 }
 0x149   :  { %v2168_v48 = vpop.permute.xlu1 %2167  ;;  %v2173_v51 = vpop.permute.xlu0 %2172 }
 0x14a   :  { %v2483_v17 = vadd.f32 %v3415_v8, %v2412_v13  ;;  %v2413_v18 = vmul.f32 %v2148_v16, %v1618_v14 }
 0x14c   :  { %2547 = vst [vmem:[%s3700_s4 + $0x60] sm:$0xff] %v2483_v17  ;;  %v2484_v20 = vadd.f32 %v3415_v8, %v2413_v18 }
 0x14d   :  { %v1333_v21 = vpop.f32.mrb[28].mxu1  ;;  %v1622_v22 = vpop.f32.mrb[28].mxu0 }
 0x14e   :  { %v1335_v23 = vpop.f32.mrb[29].mxu1  ;;  %2548 = vst [vmem:[%s3700_s4 + $0x68] sm:$0xff] %v2484_v20  ;;  %v1623_v24 = vadd.f32 %v1622_v22, %v1333_v21  ;;  %v1624_v25 = vpop.f32.mrb[29].mxu0 }
 0x14f   :  { %v1336_v26 = vpop.f32.mrb[30].mxu1  ;;  %v1625_v27 = vpop.f32.mrb[30].mxu0 }
 0x150   :  { %v1338_v28 = vpop.f32.mrb[31].mxu1  ;;  %v2414_v29 = vmul.f32 %v2153_v19, %v1623_v24  ;;  %v1626_v30 = vadd.f32 %v1625_v27, %v1336_v26  ;;  %v1627_v31 = vpop.f32.mrb[31].mxu0 }
 0x151   :  { %v2178_v0 = vpop.permute.xlu1 %2177  ;;  %v2183_v3 = vpop.permute.xlu0 %2182 }
 0x152   :  { %v2485_v33 = vadd.f32 %v3415_v8, %v2414_v29  ;;  %v2415_v34 = vmul.f32 %v2158_v32, %v1626_v30 }
 0x154   :  { %2549 = vst [vmem:[%s3700_s4 + $0x70] sm:$0xff] %v2485_v33  ;;  %v2486_v36 = vadd.f32 %v3415_v8, %v2415_v34 }
 0x155   :  { %v1341_v37 = vpop.f32.mrb[32].mxu1  ;;  %v1630_v38 = vpop.f32.mrb[32].mxu0 }
 0x156   :  { %v1343_v39 = vpop.f32.mrb[33].mxu1  ;;  %2550 = vst [vmem:[%s3700_s4 + $0x78] sm:$0xff] %v2486_v36  ;;  %v1631_v40 = vadd.f32 %v1630_v38, %v1341_v37  ;;  %v1632_v41 = vpop.f32.mrb[33].mxu0 }
 0x157   :  { %v1344_v42 = vpop.f32.mrb[34].mxu1  ;;  %v1633_v43 = vpop.f32.mrb[34].mxu0 }
 0x158   :  { %v1346_v44 = vpop.f32.mrb[35].mxu1  ;;  %v2416_v45 = vmul.f32 %v2163_v35, %v1631_v40  ;;  %v1634_v46 = vadd.f32 %v1633_v43, %v1344_v42  ;;  %v1635_v47 = vpop.f32.mrb[35].mxu0 }
 0x159   :  { %v2188_v17 = vpop.permute.xlu1 %2187  ;;  %v2193_v20 = vpop.permute.xlu0 %2192 }
 0x15a   :  { %v2487_v49 = vadd.f32 %v3415_v8, %v2416_v45  ;;  %v2417_v50 = vmul.f32 %v2168_v48, %v1634_v46 }
 0x15c   :  { %2551 = vst [vmem:[%s3700_s4 + $0x80] sm:$0xff] %v2487_v49  ;;  %v2488_v52 = vadd.f32 %v3415_v8, %v2417_v50 }
 0x15d   :  { %v1349_v53 = vpop.f32.mrb[36].mxu1  ;;  %v1638_v54 = vpop.f32.mrb[36].mxu0 }
 0x15e   :  { %v1351_v55 = vpop.f32.mrb[37].mxu1  ;;  %2552 = vst [vmem:[%s3700_s4 + $0x88] sm:$0xff] %v2488_v52  ;;  %v1639_v56 = vadd.f32 %v1638_v54, %v1349_v53  ;;  %v1640_v57 = vpop.f32.mrb[37].mxu0 }
 0x15f   :  { %v1352_v58 = vpop.f32.mrb[38].mxu1  ;;  %v1641_v59 = vpop.f32.mrb[38].mxu0 }
 0x160   :  { %v1354_v60 = vpop.f32.mrb[39].mxu1  ;;  %v2418_v61 = vmul.f32 %v2173_v51, %v1639_v56  ;;  %v1642_v62 = vadd.f32 %v1641_v59, %v1352_v58  ;;  %v1643_v63 = vpop.f32.mrb[39].mxu0 }
 0x161   :  { %v2198_v33 = vpop.permute.xlu1 %2197  ;;  %v2203_v36 = vpop.permute.xlu0 %2202 }
 0x162   :  { %v2489_v1 = vadd.f32 %v3415_v8, %v2418_v61  ;;  %v2419_v2 = vmul.f32 %v2178_v0, %v1642_v62 }
 0x164   :  { %2553 = vst [vmem:[%s3700_s4 + $0x90] sm:$0xff] %v2489_v1  ;;  %v2490_v4 = vadd.f32 %v3415_v8, %v2419_v2 }
 0x165   :  { %v1357_v5 = vpop.f32.mrb[40].mxu1  ;;  %v1646_v6 = vpop.f32.mrb[40].mxu0 }
 0x166   :  { %v1359_v7 = vpop.f32.mrb[41].mxu1  ;;  %2554 = vst [vmem:[%s3700_s4 + $0x98] sm:$0xff] %v2490_v4  ;;  %v1647_v9 = vadd.f32 %v1646_v6, %v1357_v5  ;;  %v1648_v10 = vpop.f32.mrb[41].mxu0 }
 0x167   :  { %v1360_v11 = vpop.f32.mrb[42].mxu1  ;;  %v1649_v12 = vpop.f32.mrb[42].mxu0 }
 0x168   :  { %v1362_v13 = vpop.f32.mrb[43].mxu1  ;;  %v2420_v14 = vmul.f32 %v2183_v3, %v1647_v9  ;;  %v1650_v15 = vadd.f32 %v1649_v12, %v1360_v11  ;;  %v1651_v16 = vpop.f32.mrb[43].mxu0 }
 0x169   :  { %v2208_v49 = vpop.permute.xlu1 %2207  ;;  %v2213_v52 = vpop.permute.xlu0 %2212 }
 0x16a   :  { %v2491_v18 = vadd.f32 %v3415_v8, %v2420_v14  ;;  %v2421_v19 = vmul.f32 %v2188_v17, %v1650_v15 }
 0x16c   :  { %2555 = vst [vmem:[%s3700_s4 + $0xa0] sm:$0xff] %v2491_v18  ;;  %v2492_v21 = vadd.f32 %v3415_v8, %v2421_v19 }
 0x16d   :  { %v1365_v22 = vpop.f32.mrb[44].mxu1  ;;  %v1654_v23 = vpop.f32.mrb[44].mxu0 }
 0x16e   :  { %v1367_v24 = vpop.f32.mrb[45].mxu1  ;;  %2556 = vst [vmem:[%s3700_s4 + $0xa8] sm:$0xff] %v2492_v21  ;;  %v1655_v25 = vadd.f32 %v1654_v23, %v1365_v22  ;;  %v1656_v26 = vpop.f32.mrb[45].mxu0 }
 0x16f   :  { %v1368_v27 = vpop.f32.mrb[46].mxu1  ;;  %v1657_v28 = vpop.f32.mrb[46].mxu0 }
 0x170   :  { %v1370_v29 = vpop.f32.mrb[47].mxu1  ;;  %v2422_v30 = vmul.f32 %v2193_v20, %v1655_v25  ;;  %v1658_v31 = vadd.f32 %v1657_v28, %v1368_v27  ;;  %v1659_v32 = vpop.f32.mrb[47].mxu0 }
 0x171   :  { %v2218_v1 = vpop.permute.xlu1 %2217  ;;  %v2223_v4 = vpop.permute.xlu0 %2222 }
 0x172   :  { %v2493_v34 = vadd.f32 %v3415_v8, %v2422_v30  ;;  %v2423_v35 = vmul.f32 %v2198_v33, %v1658_v31 }
 0x174   :  { %2557 = vst [vmem:[%s3700_s4 + $0xb0] sm:$0xff] %v2493_v34  ;;  %v2494_v37 = vadd.f32 %v3415_v8, %v2423_v35 }
 0x175   :  { %v1373_v38 = vpop.f32.mrb[48].mxu1  ;;  %v1662_v39 = vpop.f32.mrb[48].mxu0 }
 0x176   :  { %v1375_v40 = vpop.f32.mrb[49].mxu1  ;;  %2558 = vst [vmem:[%s3700_s4 + $0xb8] sm:$0xff] %v2494_v37  ;;  %v1663_v41 = vadd.f32 %v1662_v39, %v1373_v38  ;;  %v1664_v42 = vpop.f32.mrb[49].mxu0 }
 0x177   :  { %v1376_v43 = vpop.f32.mrb[50].mxu1  ;;  %v1665_v44 = vpop.f32.mrb[50].mxu0 }
 0x178   :  { %v1378_v45 = vpop.f32.mrb[51].mxu1  ;;  %v2424_v46 = vmul.f32 %v2203_v36, %v1663_v41  ;;  %v1666_v47 = vadd.f32 %v1665_v44, %v1376_v43  ;;  %v1667_v48 = vpop.f32.mrb[51].mxu0 }
 0x179   :  { %v2228_v18 = vpop.permute.xlu1 %2227  ;;  %v2233_v21 = vpop.permute.xlu0 %2232 }
 0x17a   :  { %v2495_v50 = vadd.f32 %v3415_v8, %v2424_v46  ;;  %v2425_v51 = vmul.f32 %v2208_v49, %v1666_v47 }
 0x17c   :  { %2559 = vst [vmem:[%s3700_s4 + $0xc0] sm:$0xff] %v2495_v50  ;;  %v2496_v53 = vadd.f32 %v3415_v8, %v2425_v51 }
 0x17d   :  { %v1381_v54 = vpop.f32.mrb[52].mxu1  ;;  %v1670_v55 = vpop.f32.mrb[52].mxu0 }
 0x17e   :  { %v1383_v56 = vpop.f32.mrb[53].mxu1  ;;  %2560 = vst [vmem:[%s3700_s4 + $0xc8] sm:$0xff] %v2496_v53  ;;  %v1671_v57 = vadd.f32 %v1670_v55, %v1381_v54  ;;  %v1672_v58 = vpop.f32.mrb[53].mxu0 }
 0x17f   :  { %v1384_v59 = vpop.f32.mrb[54].mxu1  ;;  %v1673_v60 = vpop.f32.mrb[54].mxu0 }
 0x180   :  { %v1386_v61 = vpop.f32.mrb[55].mxu1  ;;  %v2426_v62 = vmul.f32 %v2213_v52, %v1671_v57  ;;  %v1674_v63 = vadd.f32 %v1673_v60, %v1384_v59  ;;  %v1675_v0 = vpop.f32.mrb[55].mxu0 }
 0x181   :  { %v2238_v34 = vpop.permute.xlu1 %2237  ;;  %v2243_v37 = vpop.permute.xlu0 %2242 }
 0x182   :  { %v2497_v2 = vadd.f32 %v3415_v8, %v2426_v62  ;;  %v2427_v3 = vmul.f32 %v2218_v1, %v1674_v63 }
 0x184   :  { %2561 = vst [vmem:[%s3700_s4 + $0xd0] sm:$0xff] %v2497_v2  ;;  %v2498_v5 = vadd.f32 %v3415_v8, %v2427_v3 }
 0x185   :  { %v1389_v6 = vpop.f32.mrb[56].mxu1  ;;  %v1678_v7 = vpop.f32.mrb[56].mxu0 }
 0x186   :  { %v1391_v9 = vpop.f32.mrb[57].mxu1  ;;  %2562 = vst [vmem:[%s3700_s4 + $0xd8] sm:$0xff] %v2498_v5  ;;  %v1679_v10 = vadd.f32 %v1678_v7, %v1389_v6  ;;  %v1680_v11 = vpop.f32.mrb[57].mxu0 }
 0x187   :  { %v1392_v12 = vpop.f32.mrb[58].mxu1  ;;  %v1681_v13 = vpop.f32.mrb[58].mxu0 }
 0x188   :  { %v1394_v14 = vpop.f32.mrb[59].mxu1  ;;  %v2428_v15 = vmul.f32 %v2223_v4, %v1679_v10  ;;  %v1682_v16 = vadd.f32 %v1681_v13, %v1392_v12  ;;  %v1683_v17 = vpop.f32.mrb[59].mxu0 }
 0x189   :  { %v2248_v50 = vpop.permute.xlu1 %2247  ;;  %v2253_v53 = vpop.permute.xlu0 %2252 }
 0x18a   :  { %v2499_v19 = vadd.f32 %v3415_v8, %v2428_v15  ;;  %v2429_v20 = vmul.f32 %v2228_v18, %v1682_v16 }
 0x18c   :  { %2563 = vst [vmem:[%s3700_s4 + $0xe0] sm:$0xff] %v2499_v19  ;;  %v2500_v22 = vadd.f32 %v3415_v8, %v2429_v20 }
 0x18d   :  { %v1397_v23 = vpop.f32.mrb[60].mxu1  ;;  %v1686_v24 = vpop.f32.mrb[60].mxu0 }
 0x18e   :  { %v1399_v25 = vpop.f32.mrb[61].mxu1  ;;  %2564 = vst [vmem:[%s3700_s4 + $0xe8] sm:$0xff] %v2500_v22  ;;  %v1687_v26 = vadd.f32 %v1686_v24, %v1397_v23  ;;  %v1688_v27 = vpop.f32.mrb[61].mxu0 }
 0x18f   :  { %v1400_v28 = vpop.f32.mrb[62].mxu1  ;;  %v1689_v29 = vpop.f32.mrb[62].mxu0 }
 0x190   :  { %v1402_v30 = vpop.f32.mrb[63].mxu1  ;;  %v2430_v31 = vmul.f32 %v2233_v21, %v1687_v26  ;;  %v1690_v32 = vadd.f32 %v1689_v29, %v1400_v28  ;;  %v1691_v33 = vpop.f32.mrb[63].mxu0 }
 0x191   :  { %v2258_v2 = vpop.permute.xlu1 %2257  ;;  %v2263_v5 = vpop.permute.xlu0 %2262 }
 0x192   :  { %v2501_v35 = vadd.f32 %v3415_v8, %v2430_v31  ;;  %v2431_v36 = vmul.f32 %v2238_v34, %v1690_v32 }
 0x194   :  { %2565 = vst [vmem:[%s3700_s4 + $0xf0] sm:$0xff] %v2501_v35  ;;  %v2502_v38 = vadd.f32 %v3415_v8, %v2431_v36 }
 0x195   :  { %v1405_v39 = vpop.f32.mrb[64].mxu1  ;;  %v1694_v40 = vpop.f32.mrb[64].mxu0 }
 0x196   :  { %v1407_v41 = vpop.f32.mrb[65].mxu1  ;;  %2566 = vst [vmem:[%s3700_s4 + $0xf8] sm:$0xff] %v2502_v38  ;;  %v1695_v42 = vadd.f32 %v1694_v40, %v1405_v39  ;;  %v1696_v43 = vpop.f32.mrb[65].mxu0 }
 0x197   :  { %v1408_v44 = vpop.f32.mrb[66].mxu1  ;;  %v1697_v45 = vpop.f32.mrb[66].mxu0 }
 0x198   :  { %v1410_v46 = vpop.f32.mrb[67].mxu1  ;;  %v2432_v47 = vmul.f32 %v2243_v37, %v1695_v42  ;;  %v1698_v48 = vadd.f32 %v1697_v45, %v1408_v44  ;;  %v1699_v49 = vpop.f32.mrb[67].mxu0 }
 0x199   :  { %v2268_v19 = vpop.permute.xlu1 %2267  ;;  %v2273_v22 = vpop.permute.xlu0 %2272 }
 0x19a   :  { %v2503_v51 = vadd.f32 %v3415_v8, %v2432_v47  ;;  %v2433_v52 = vmul.f32 %v2248_v50, %v1698_v48 }
 0x19c   :  { %2567 = vst [vmem:[%s3700_s4 + $0x100] sm:$0xff] %v2503_v51  ;;  %v2504_v54 = vadd.f32 %v3415_v8, %v2433_v52 }
 0x19d   :  { %v1413_v55 = vpop.f32.mrb[68].mxu1  ;;  %v1702_v56 = vpop.f32.mrb[68].mxu0 }
 0x19e   :  { %v1415_v57 = vpop.f32.mrb[69].mxu1  ;;  %2568 = vst [vmem:[%s3700_s4 + $0x108] sm:$0xff] %v2504_v54  ;;  %v1703_v58 = vadd.f32 %v1702_v56, %v1413_v55  ;;  %v1704_v59 = vpop.f32.mrb[69].mxu0 }
 0x19f   :  { %v1416_v60 = vpop.f32.mrb[70].mxu1  ;;  %v1705_v61 = vpop.f32.mrb[70].mxu0 }
 0x1a0   :  { %v1418_v62 = vpop.f32.mrb[71].mxu1  ;;  %v2434_v63 = vmul.f32 %v2253_v53, %v1703_v58  ;;  %v1706_v0 = vadd.f32 %v1705_v61, %v1416_v60  ;;  %v1707_v1 = vpop.f32.mrb[71].mxu0 }
 0x1a1   :  { %v2278_v35 = vpop.permute.xlu1 %2277  ;;  %v2283_v38 = vpop.permute.xlu0 %2282 }
 0x1a2   :  { %v2505_v3 = vadd.f32 %v3415_v8, %v2434_v63  ;;  %v2435_v4 = vmul.f32 %v2258_v2, %v1706_v0 }
 0x1a4   :  { %2569 = vst [vmem:[%s3700_s4 + $0x110] sm:$0xff] %v2505_v3  ;;  %v2506_v6 = vadd.f32 %v3415_v8, %v2435_v4 }
 0x1a5   :  { %v1421_v7 = vpop.f32.mrb[72].mxu1  ;;  %v1710_v9 = vpop.f32.mrb[72].mxu0 }
 0x1a6   :  { %v1423_v10 = vpop.f32.mrb[73].mxu1  ;;  %2570 = vst [vmem:[%s3700_s4 + $0x118] sm:$0xff] %v2506_v6  ;;  %v1711_v11 = vadd.f32 %v1710_v9, %v1421_v7  ;;  %v1712_v12 = vpop.f32.mrb[73].mxu0 }
 0x1a7   :  { %v1424_v13 = vpop.f32.mrb[74].mxu1  ;;  %v1713_v14 = vpop.f32.mrb[74].mxu0 }
 0x1a8   :  { %v1426_v15 = vpop.f32.mrb[75].mxu1  ;;  %v2436_v16 = vmul.f32 %v2263_v5, %v1711_v11  ;;  %v1714_v17 = vadd.f32 %v1713_v14, %v1424_v13  ;;  %v1715_v18 = vpop.f32.mrb[75].mxu0 }
 0x1a9   :  { %v2288_v51 = vpop.permute.xlu1 %2287  ;;  %v2293_v54 = vpop.permute.xlu0 %2292 }
 0x1aa   :  { %v2507_v20 = vadd.f32 %v3415_v8, %v2436_v16  ;;  %v2437_v21 = vmul.f32 %v2268_v19, %v1714_v17 }
 0x1ac   :  { %2571 = vst [vmem:[%s3700_s4 + $0x120] sm:$0xff] %v2507_v20  ;;  %v2508_v23 = vadd.f32 %v3415_v8, %v2437_v21 }
 0x1ad   :  { %v1429_v24 = vpop.f32.mrb[76].mxu1  ;;  %v1718_v25 = vpop.f32.mrb[76].mxu0 }
 0x1ae   :  { %v1431_v26 = vpop.f32.mrb[77].mxu1  ;;  %2572 = vst [vmem:[%s3700_s4 + $0x128] sm:$0xff] %v2508_v23  ;;  %v1719_v27 = vadd.f32 %v1718_v25, %v1429_v24  ;;  %v1720_v28 = vpop.f32.mrb[77].mxu0 }
 0x1af   :  { %v1432_v29 = vpop.f32.mrb[78].mxu1  ;;  %v1721_v30 = vpop.f32.mrb[78].mxu0 }
 0x1b0   :  { %v1434_v31 = vpop.f32.mrb[79].mxu1  ;;  %v2438_v32 = vmul.f32 %v2273_v22, %v1719_v27  ;;  %v1722_v33 = vadd.f32 %v1721_v30, %v1432_v29  ;;  %v1723_v34 = vpop.f32.mrb[79].mxu0 }
 0x1b1   :  { %v2298_v3 = vpop.permute.xlu1 %2297  ;;  %v2303_v6 = vpop.permute.xlu0 %2302 }
 0x1b2   :  { %v2509_v36 = vadd.f32 %v3415_v8, %v2438_v32  ;;  %v2439_v37 = vmul.f32 %v2278_v35, %v1722_v33 }
 0x1b4   :  { %2573 = vst [vmem:[%s3700_s4 + $0x130] sm:$0xff] %v2509_v36  ;;  %v2510_v39 = vadd.f32 %v3415_v8, %v2439_v37 }
 0x1b5   :  { %v1437_v40 = vpop.f32.mrb[80].mxu1  ;;  %v1726_v41 = vpop.f32.mrb[80].mxu0 }
 0x1b6   :  { %v1439_v42 = vpop.f32.mrb[81].mxu1  ;;  %2574 = vst [vmem:[%s3700_s4 + $0x138] sm:$0xff] %v2510_v39  ;;  %v1727_v43 = vadd.f32 %v1726_v41, %v1437_v40  ;;  %v1728_v44 = vpop.f32.mrb[81].mxu0 }
 0x1b7   :  { %v1440_v45 = vpop.f32.mrb[82].mxu1  ;;  %v1729_v46 = vpop.f32.mrb[82].mxu0 }
 0x1b8   :  { %v1442_v47 = vpop.f32.mrb[83].mxu1  ;;  %v2440_v48 = vmul.f32 %v2283_v38, %v1727_v43  ;;  %v1730_v49 = vadd.f32 %v1729_v46, %v1440_v45  ;;  %v1731_v50 = vpop.f32.mrb[83].mxu0 }
 0x1b9   :  { %v2308_v20 = vpop.permute.xlu1 %2307  ;;  %v2313_v23 = vpop.permute.xlu0 %2312 }
 0x1ba   :  { %v2511_v52 = vadd.f32 %v3415_v8, %v2440_v48  ;;  %v2441_v53 = vmul.f32 %v2288_v51, %v1730_v49 }
 0x1bc   :  { %2575 = vst [vmem:[%s3700_s4 + $0x140] sm:$0xff] %v2511_v52  ;;  %v2512_v55 = vadd.f32 %v3415_v8, %v2441_v53 }
 0x1bd   :  { %v1445_v56 = vpop.f32.mrb[84].mxu1  ;;  %v1734_v57 = vpop.f32.mrb[84].mxu0 }
 0x1be   :  { %v1447_v58 = vpop.f32.mrb[85].mxu1  ;;  %2576 = vst [vmem:[%s3700_s4 + $0x148] sm:$0xff] %v2512_v55  ;;  %v1735_v59 = vadd.f32 %v1734_v57, %v1445_v56  ;;  %v1736_v60 = vpop.f32.mrb[85].mxu0 }
 0x1bf   :  { %v1448_v61 = vpop.f32.mrb[86].mxu1  ;;  %v1737_v62 = vpop.f32.mrb[86].mxu0 }
 0x1c0   :  { %v1450_v63 = vpop.f32.mrb[87].mxu1  ;;  %v2442_v0 = vmul.f32 %v2293_v54, %v1735_v59  ;;  %v1738_v1 = vadd.f32 %v1737_v62, %v1448_v61  ;;  %v1739_v2 = vpop.f32.mrb[87].mxu0 }
 0x1c1   :  { %v2318_v36 = vpop.permute.xlu1 %2317  ;;  %v2323_v39 = vpop.permute.xlu0 %2322 }
 0x1c2   :  { %v2513_v4 = vadd.f32 %v3415_v8, %v2442_v0  ;;  %v2443_v5 = vmul.f32 %v2298_v3, %v1738_v1 }
 0x1c4   :  { %2577 = vst [vmem:[%s3700_s4 + $0x150] sm:$0xff] %v2513_v4  ;;  %v2514_v7 = vadd.f32 %v3415_v8, %v2443_v5 }
 0x1c5   :  { %v1453_v9 = vpop.f32.mrb[88].mxu1  ;;  %v1742_v10 = vpop.f32.mrb[88].mxu0 }
 0x1c6   :  { %v1455_v11 = vpop.f32.mrb[89].mxu1  ;;  %2578 = vst [vmem:[%s3700_s4 + $0x158] sm:$0xff] %v2514_v7  ;;  %v1743_v12 = vadd.f32 %v1742_v10, %v1453_v9  ;;  %v1744_v13 = vpop.f32.mrb[89].mxu0  ;;  %v3642_v9 = vld [vmem:[%s3699_s3] ss:$0 sm:$0xff] }
 0x1c7   :  { %v1456_v14 = vpop.f32.mrb[90].mxu1  ;;  %v1745_v15 = vpop.f32.mrb[90].mxu0 }
 0x1c8   :  { %v1458_v16 = vpop.f32.mrb[91].mxu1  ;;  %v2444_v17 = vmul.f32 %v2303_v6, %v1743_v12  ;;  %v1746_v18 = vadd.f32 %v1745_v15, %v1456_v14  ;;  %v1747_v19 = vpop.f32.mrb[91].mxu0 }
 0x1c9   :  { %v2328_v52 = vpop.permute.xlu1 %2327  ;;  %v2333_v55 = vpop.permute.xlu0 %2332 }
 0x1ca   :  { %v2515_v21 = vadd.f32 %v3415_v8, %v2444_v17  ;;  %v2445_v22 = vmul.f32 %v2308_v20, %v1746_v18 }
 0x1cc   :  { %2579 = vst [vmem:[%s3700_s4 + $0x160] sm:$0xff] %v2515_v21  ;;  %v2516_v24 = vadd.f32 %v3415_v8, %v2445_v22 }
 0x1cd   :  { %v1461_v25 = vpop.f32.mrb[92].mxu1  ;;  %v1750_v26 = vpop.f32.mrb[92].mxu0 }
 0x1ce   :  { %v1463_v27 = vpop.f32.mrb[93].mxu1  ;;  %2580 = vst [vmem:[%s3700_s4 + $0x168] sm:$0xff] %v2516_v24  ;;  %v1751_v28 = vadd.f32 %v1750_v26, %v1461_v25  ;;  %v1752_v29 = vpop.f32.mrb[93].mxu0 }
 0x1cf   :  { %v1464_v30 = vpop.f32.mrb[94].mxu1  ;;  %v1753_v31 = vpop.f32.mrb[94].mxu0 }
 0x1d0   :  { %v1466_v32 = vpop.f32.mrb[95].mxu1  ;;  %v2446_v33 = vmul.f32 %v2313_v23, %v1751_v28  ;;  %v1754_v34 = vadd.f32 %v1753_v31, %v1464_v30  ;;  %v1755_v35 = vpop.f32.mrb[95].mxu0 }
 0x1d1   :  { %v2338_v4 = vpop.permute.xlu1 %2337  ;;  %v2343_v7 = vpop.permute.xlu0 %2342 }
 0x1d2   :  { %v2517_v37 = vadd.f32 %v3415_v8, %v2446_v33  ;;  %v2447_v38 = vmul.f32 %v2318_v36, %v1754_v34 }
 0x1d4   :  { %2581 = vst [vmem:[%s3700_s4 + $0x170] sm:$0xff] %v2517_v37  ;;  %v2518_v40 = vadd.f32 %v3415_v8, %v2447_v38 }
 0x1d5   :  { %v1469_v41 = vpop.f32.mrb[96].mxu1  ;;  %v1758_v42 = vpop.f32.mrb[96].mxu0 }
 0x1d6   :  { %v1471_v43 = vpop.f32.mrb[97].mxu1  ;;  %2582 = vst [vmem:[%s3700_s4 + $0x178] sm:$0xff] %v2518_v40  ;;  %v1759_v44 = vadd.f32 %v1758_v42, %v1469_v41  ;;  %v1760_v45 = vpop.f32.mrb[97].mxu0 }
 0x1d7   :  { %v1472_v46 = vpop.f32.mrb[98].mxu1  ;;  %v1761_v47 = vpop.f32.mrb[98].mxu0 }
 0x1d8   :  { %v1474_v48 = vpop.f32.mrb[99].mxu1  ;;  %v2448_v49 = vmul.f32 %v2323_v39, %v1759_v44  ;;  %v1762_v50 = vadd.f32 %v1761_v47, %v1472_v46  ;;  %v1763_v51 = vpop.f32.mrb[99].mxu0 }
 0x1d9   :  { %v2348_v21 = vpop.permute.xlu1 %2347  ;;  %v2353_v24 = vpop.permute.xlu0 %2352 }
 0x1da   :  { %v2519_v53 = vadd.f32 %v3415_v8, %v2448_v49  ;;  %v2449_v54 = vmul.f32 %v2328_v52, %v1762_v50 }
 0x1dc   :  { %2583 = vst [vmem:[%s3700_s4 + $0x180] sm:$0xff] %v2519_v53  ;;  %v2520_v56 = vadd.f32 %v3415_v8, %v2449_v54 }
 0x1dd   :  { %v1477_v57 = vpop.f32.mrb[100].mxu1  ;;  %v1766_v58 = vpop.f32.mrb[100].mxu0 }
 0x1de   :  { %v1479_v59 = vpop.f32.mrb[101].mxu1  ;;  %2584 = vst [vmem:[%s3700_s4 + $0x188] sm:$0xff] %v2520_v56  ;;  %v1767_v60 = vadd.f32 %v1766_v58, %v1477_v57  ;;  %v1768_v61 = vpop.f32.mrb[101].mxu0 }
 0x1df   :  { %v1480_v62 = vpop.f32.mrb[102].mxu1  ;;  %v1769_v63 = vpop.f32.mrb[102].mxu0 }
 0x1e0   :  { %v1482_v0 = vpop.f32.mrb[103].mxu1  ;;  %v2450_v1 = vmul.f32 %v2333_v55, %v1767_v60  ;;  %v1770_v2 = vadd.f32 %v1769_v63, %v1480_v62  ;;  %v1771_v3 = vpop.f32.mrb[103].mxu0 }
 0x1e1   :  { %v2358_v37 = vpop.permute.xlu1 %2357  ;;  %v2363_v40 = vpop.permute.xlu0 %2362 }
 0x1e2   :  { %v2521_v5 = vadd.f32 %v3415_v8, %v2450_v1  ;;  %v2451_v6 = vmul.f32 %v2338_v4, %v1770_v2 }
 0x1e4   :  { %2585 = vst [vmem:[%s3700_s4 + $0x190] sm:$0xff] %v2521_v5  ;;  %v2522_v10 = vadd.f32 %v3642_v9, %v2451_v6 }
 0x1e5   :  { %v1485_v11 = vpop.f32.mrb[104].mxu1  ;;  %v1774_v12 = vpop.f32.mrb[104].mxu0 }
 0x1e6   :  { %v1487_v13 = vpop.f32.mrb[105].mxu1  ;;  %2586 = vst [vmem:[%s3700_s4 + $0x198] sm:$0xff] %v2522_v10  ;;  %v1775_v8 = vadd.f32 %v1774_v12, %v1485_v11  ;;  %v1776_v14 = vpop.f32.mrb[105].mxu0 }
 0x1e7   :  { %v1488_v15 = vpop.f32.mrb[106].mxu1  ;;  %v1777_v16 = vpop.f32.mrb[106].mxu0 }
 0x1e8   :  { %v1490_v17 = vpop.f32.mrb[107].mxu1  ;;  %v2452_v18 = vmul.f32 %v2343_v7, %v1775_v8  ;;  %v1778_v19 = vadd.f32 %v1777_v16, %v1488_v15  ;;  %v1779_v20 = vpop.f32.mrb[107].mxu0 }
 0x1e9   :  { %v2368_v53 = vpop.permute.xlu1 %2367  ;;  %v2373_v56 = vpop.permute.xlu0 %2372 }
 0x1ea   :  { %v2523_v22 = vadd.f32 %v3642_v9, %v2452_v18  ;;  %v2453_v23 = vmul.f32 %v2348_v21, %v1778_v19 }
 0x1ec   :  { %2587 = vst [vmem:[%s3700_s4 + $0x1a0] sm:$0xff] %v2523_v22  ;;  %v2524_v25 = vadd.f32 %v3642_v9, %v2453_v23 }
 0x1ed   :  { %v1493_v26 = vpop.f32.mrb[108].mxu1  ;;  %v1782_v27 = vpop.f32.mrb[108].mxu0 }
 0x1ee   :  { %v1495_v28 = vpop.f32.mrb[109].mxu1  ;;  %2588 = vst [vmem:[%s3700_s4 + $0x1a8] sm:$0xff] %v2524_v25  ;;  %v1783_v29 = vadd.f32 %v1782_v27, %v1493_v26  ;;  %v1784_v30 = vpop.f32.mrb[109].mxu0 }
 0x1ef   :  { %v1496_v31 = vpop.f32.mrb[110].mxu1  ;;  %v1785_v32 = vpop.f32.mrb[110].mxu0 }
 0x1f0   :  { %v1498_v33 = vpop.f32.mrb[111].mxu1  ;;  %v2454_v34 = vmul.f32 %v2353_v24, %v1783_v29  ;;  %v1786_v35 = vadd.f32 %v1785_v32, %v1496_v31  ;;  %v1787_v36 = vpop.f32.mrb[111].mxu0 }
 0x1f1   :  { %v2378_v5 = vpop.permute.xlu1 %2377  ;;  %v2383_v10 = vpop.permute.xlu0 %2382 }
 0x1f2   :  { %v2525_v38 = vadd.f32 %v3642_v9, %v2454_v34  ;;  %v2455_v39 = vmul.f32 %v2358_v37, %v1786_v35 }
 0x1f4   :  { %2589 = vst [vmem:[%s3700_s4 + $0x1b0] sm:$0xff] %v2525_v38  ;;  %v2526_v41 = vadd.f32 %v3642_v9, %v2455_v39 }
 0x1f5   :  { %v1501_v42 = vpop.f32.mrb[112].mxu1  ;;  %v1790_v43 = vpop.f32.mrb[112].mxu0 }
 0x1f6   :  { %v1503_v44 = vpop.f32.mrb[113].mxu1  ;;  %2590 = vst [vmem:[%s3700_s4 + $0x1b8] sm:$0xff] %v2526_v41  ;;  %v1791_v45 = vadd.f32 %v1790_v43, %v1501_v42  ;;  %v1792_v46 = vpop.f32.mrb[113].mxu0 }
 0x1f7   :  { %v1504_v47 = vpop.f32.mrb[114].mxu1  ;;  %v1793_v48 = vpop.f32.mrb[114].mxu0 }
 0x1f8   :  { %v1506_v49 = vpop.f32.mrb[115].mxu1  ;;  %v2456_v50 = vmul.f32 %v2363_v40, %v1791_v45  ;;  %v1794_v51 = vadd.f32 %v1793_v48, %v1504_v47  ;;  %v1795_v52 = vpop.f32.mrb[115].mxu0 }
 0x1f9   :  { %v2388_v22 = vpop.permute.xlu1 %2387  ;;  %v2393_v25 = vpop.permute.xlu0 %2392 }
 0x1fa   :  { %v2527_v54 = vadd.f32 %v3642_v9, %v2456_v50  ;;  %v2457_v55 = vmul.f32 %v2368_v53, %v1794_v51 }
 0x1fc   :  { %2591 = vst [vmem:[%s3700_s4 + $0x1c0] sm:$0xff] %v2527_v54  ;;  %v2528_v57 = vadd.f32 %v3642_v9, %v2457_v55 }
 0x1fd   :  { %v1509_v58 = vpop.f32.mrb[116].mxu1  ;;  %v1798_v59 = vpop.f32.mrb[116].mxu0 }
 0x1fe   :  { %v1511_v60 = vpop.f32.mrb[117].mxu1  ;;  %2592 = vst [vmem:[%s3700_s4 + $0x1c8] sm:$0xff] %v2528_v57  ;;  %v1799_v61 = vadd.f32 %v1798_v59, %v1509_v58  ;;  %v1800_v62 = vpop.f32.mrb[117].mxu0 }
 0x1ff   :  { %v1512_v63 = vpop.f32.mrb[118].mxu1  ;;  %v1801_v0 = vpop.f32.mrb[118].mxu0 }
 0x200   :  { %v1514_v1 = vpop.f32.mrb[119].mxu1  ;;  %v2458_v2 = vmul.f32 %v2373_v56, %v1799_v61  ;;  %v1802_v3 = vadd.f32 %v1801_v0, %v1512_v63  ;;  %v1803_v4 = vpop.f32.mrb[119].mxu0 }
 0x201   :  { %v2398_v38 = vpop.permute.xlu1 %2397 }
 0x202   :  { %v2529_v6 = vadd.f32 %v3642_v9, %v2458_v2  ;;  %v2459_v7 = vmul.f32 %v2378_v5, %v1802_v3 }
 0x204   :  { %2593 = vst [vmem:[%s3700_s4 + $0x1d0] sm:$0xff] %v2529_v6  ;;  %v2530_v11 = vadd.f32 %v3642_v9, %v2459_v7 }
 0x205   :  { %v1517_v12 = vpop.f32.mrb[120].mxu1  ;;  %v1806_v13 = vpop.f32.mrb[120].mxu0 }
 0x206   :  { %v1519_v8 = vpop.f32.mrb[121].mxu1  ;;  %2594 = vst [vmem:[%s3700_s4 + $0x1d8] sm:$0xff] %v2530_v11  ;;  %v1807_v14 = vadd.f32 %v1806_v13, %v1517_v12  ;;  %v1808_v15 = vpop.f32.mrb[121].mxu0 }
 0x207   :  { %v1520_v16 = vpop.f32.mrb[122].mxu1  ;;  %v1809_v17 = vpop.f32.mrb[122].mxu0 }
 0x208   :  { %v1522_v18 = vpop.f32.mrb[123].mxu1  ;;  %v2460_v19 = vmul.f32 %v2383_v10, %v1807_v14  ;;  %v1810_v20 = vadd.f32 %v1809_v17, %v1520_v16  ;;  %v1811_v21 = vpop.f32.mrb[123].mxu0 }
 0x20a   :  { %v2531_v23 = vadd.f32 %v3642_v9, %v2460_v19  ;;  %v2461_v24 = vmul.f32 %v2388_v22, %v1810_v20 }
 0x20c   :  { %2595 = vst [vmem:[%s3700_s4 + $0x1e0] sm:$0xff] %v2531_v23  ;;  %v2532_v26 = vadd.f32 %v3642_v9, %v2461_v24 }
 0x20d   :  { %v1525_v27 = vpop.f32.mrb[124].mxu1  ;;  %v1814_v28 = vpop.f32.mrb[124].mxu0 }
 0x20e   :  { %v1527_v29 = vpop.f32.mrb[125].mxu1  ;;  %2596 = vst [vmem:[%s3700_s4 + $0x1e8] sm:$0xff] %v2532_v26  ;;  %v1815_v30 = vadd.f32 %v1814_v28, %v1525_v27  ;;  %v1816_v31 = vpop.f32.mrb[125].mxu0 }
 0x20f   :  { %v1528_v32 = vpop.f32.mrb[126].mxu1  ;;  %v1817_v33 = vpop.f32.mrb[126].mxu0 }
 0x210   :  { %v1530_v34 = vpop.f32.mrb[127].mxu1  ;;  %v2462_v35 = vmul.f32 %v2393_v25, %v1815_v30  ;;  %v1818_v36 = vadd.f32 %v1817_v33, %v1528_v32  ;;  %v1819_v37 = vpop.f32.mrb[127].mxu0 }
 0x212   :  { %v2533_v39 = vadd.f32 %v3642_v9, %v2462_v35  ;;  %v2463_v40 = vmul.f32 %v2398_v38, %v1818_v36 }
 0x214   :  { %2597 = vst [vmem:[%s3700_s4 + $0x1f0] sm:$0xff] %v2533_v39  ;;  %v2534_v41 = vadd.f32 %v3642_v9, %v2463_v40 }
 0x216   :  { %2598 = vst [vmem:[%s3700_s4 + $0x1f8] sm:$0xff] %v2534_v41 }

</bundles_post_ra>
